<compile_context>
chip_gen: v5e
topology: v5e:2x2
jax: 0.10.0
libtpu: 0.0.40
codegen_flags: <defaults>
</compile_context>

<pallas_src>
import jax
import jax.numpy as jnp
import numpy as np
from jax.experimental import pallas as pl
from jax.experimental.pallas import tpu as pltpu


def _round_up(x, m):
    return (x + m - 1) // m * m


def _edgeconv_kernel(x_ref, ii_ref, ij_ref, wu_ref, wv_ref, b_ref, o_ref,
                     u_ref, v_ref):
    t = pl.program_id(1)

    # Per-batch projections, computed once per batch (t == 0) and kept resident
    # in VMEM scratch across all vertex tiles of this batch.
    @pl.when(t == 0)
    def _():
        xb = x_ref[0]                                            # [Np, Cp]
        u_ref[...] = jnp.dot(xb, wu_ref[...],                    # X @ (W_i - W_d)
                             preferred_element_type=jnp.float32)
        v_ref[...] = jnp.dot(xb, wv_ref[...],                    # X @ W_d
                             preferred_element_type=jnp.float32)

    u = u_ref[...]                                               # [Np, Coutp]
    v = v_ref[...]
    idx_i = ii_ref[0]                                            # [tn, K] int32
    idx_j = ij_ref[0]
    tn, num_k = idx_i.shape
    np_rows = u.shape[0]
    iota = jax.lax.broadcasted_iota(jnp.int32, (tn, np_rows), 1)

    acc = jnp.full((tn, u.shape[1]), -jnp.inf, dtype=jnp.float32)
    for k in range(num_k):                     # K is small & static -> unrolled
        oh_i = (idx_i[:, k:k + 1] == iota).astype(jnp.float32)   # [tn, Np] one-hot
        oh_j = (idx_j[:, k:k + 1] == iota).astype(jnp.float32)
        zk = (jnp.dot(oh_i, u, preferred_element_type=jnp.float32) +
              jnp.dot(oh_j, v, preferred_element_type=jnp.float32))
        acc = jnp.maximum(acc, zk)                               # max over neighbors

    y = jnp.maximum(acc + b_ref[...], 0.0)                       # bias+ReLU after max
    o_ref[0] = y.T.astype(o_ref.dtype)                           # channels-first store


def edgeconv3d_pallas(x, edge_index, weight, bias, *, tile_n=512):
    """EdgeConv3d forward.

    x:          [B, C, N, 1, 1]   (N = D*H*W vertices, channels-first)
    edge_index: [2, B, N, K] int  (row 0 = neighbor j, row 1 = center i)
    weight:     [Cout, 2*C]       (1x1x1 Conv3d weight, squeezed)
    bias:       [Cout]
    returns     [B, Cout, N, 1, 1]
    """
    B, C, N = x.shape[:3]
    K = edge_index.shape[-1]
    Cout, two_c = weight.shape
    assert two_c == 2 * C

    LANE = 128
    Cp = _round_up(C, LANE)
    Coutp = _round_up(Cout, LANE)
    Np = _round_up(N, LANE)
    tn = max(LANE, (min(tile_n, Np) // LANE) * LANE)
    while Np % tn:                      # tn is a multiple of 128 that divides Np
        tn -= LANE

    # Channels-last, zero-padded copy of x: [B, Np, Cp] (tiny vs. the K-blown-up
    # feature slab the previous version streamed through HBM).
    xcl = jnp.transpose(x.reshape(B, C, N), (0, 2, 1)).astype(jnp.float32)
    xcl = jnp.pad(xcl, ((0, 0), (0, Np - N), (0, Cp - C)))

    idx_i = jnp.pad(edge_index[1].astype(jnp.int32), ((0, 0), (0, Np - N), (0, 0)))
    idx_j = jnp.pad(edge_index[0].astype(jnp.int32), ((0, 0), (0, Np - N), (0, 0)))

    w = weight.astype(jnp.float32)
    w_i = w[:, :C].T                                             # [C, Cout]
    w_d = w[:, C:].T
    wu = jnp.zeros((Cp, Coutp), jnp.float32).at[:C, :Cout].set(w_i - w_d)
    wv = jnp.zeros((Cp, Coutp), jnp.float32).at[:C, :Cout].set(w_d)
    b2 = jnp.zeros((1, Coutp), jnp.float32).at[0, :Cout].set(bias.astype(jnp.float32))

    grid = (B, Np // tn)

    out = pl.pallas_call(
        _edgeconv_kernel,
        out_shape=jax.ShapeDtypeStruct((B, Coutp, Np), x.dtype),
        grid_spec=pltpu.PrefetchScalarGridSpec(
            num_scalar_prefetch=0,
            grid=grid,
            in_specs=[
                pl.BlockSpec((1, Np, Cp), lambda b, t: (b, 0, 0)),   # x (per-batch)
                pl.BlockSpec((1, tn, K), lambda b, t: (b, t, 0)),    # center idx tile
                pl.BlockSpec((1, tn, K), lambda b, t: (b, t, 0)),    # neighbor idx tile
                pl.BlockSpec((Cp, Coutp), lambda b, t: (0, 0)),      # W_i - W_d
                pl.BlockSpec((Cp, Coutp), lambda b, t: (0, 0)),      # W_d
                pl.BlockSpec((1, Coutp), lambda b, t: (0, 0)),       # bias
            ],
            out_specs=pl.BlockSpec((1, Coutp, tn), lambda b, t: (b, 0, t)),
            scratch_shapes=[
                pltpu.VMEM((Np, Coutp), jnp.float32),                # U scratch
                pltpu.VMEM((Np, Coutp), jnp.float32),                # V scratch
            ],
        ),
        compiler_params=pltpu.CompilerParams(
            dimension_semantics=("parallel", "arbitrary"),
            # Headroom above the 32 MiB scoped default while staying inside
            # v7x's 64 MiB physical VMEM (v5e/v6e have 128 MiB).
            vmem_limit_bytes=48 * 1024 * 1024,
        ),
    )(xcl, idx_i, idx_j, wu, wv, b2)

    out = out[:, :Cout, :N]                      # already channels-first [B,Cout,N]
    return out.reshape(B, Cout, N, 1, 1)


def _gather(xf, idx):
    # xf: [B, C, N], idx: [B, N, K] -> [B, C, N, K]  (batched_index_select)
    return jax.vmap(lambda xb, ib: xb[:, ib])(xf, idx)


def edgeconv3d_ref(x, edge_index, weight, bias):
    # Pure-JAX reference mirroring the PyTorch forward (conv='edge', norm=None, relu).
    B, C, N = x.shape[:3]
    Cout = weight.shape[0]
    xf = x.reshape(B, C, N)
    x_i = _gather(xf, edge_index[1])
    x_j = _gather(xf, edge_index[0])
    feat = jnp.concatenate([x_i, x_j - x_i], axis=1)             # [B, 2C, N, K]
    y = jnp.einsum("oc,bcnk->bonk", weight, feat,
                   precision=jax.lax.Precision.HIGHEST) + bias[None, :, None, None]
    y = jnp.maximum(y, 0.0)
    y = jnp.max(y, axis=-1)                                      # [B, Cout, N]
    return y.reshape(B, Cout, N, 1, 1)


if __name__ == "__main__":
    key = jax.random.PRNGKey(0)
    B, C_in, C_out = 2, 4, 8
    D = H = W = 4
    N = D * H * W          # 64 vertices
    K = 8                  # neighbors per vertex

    k1, k2, k3, k4 = jax.random.split(key, 4)
    x = jax.random.normal(k1, (B, C_in, N, 1, 1), dtype=jnp.float32)
    edge_index = jax.random.randint(k2, (2, B, N, K), 0, N, dtype=jnp.int32)
    # Deterministic synthetic parameters: Conv3d(2*C_in -> C_out, kernel=1) + bias.
    weight = 0.1 * jax.random.normal(k3, (C_out, 2 * C_in), dtype=jnp.float32)
    bias = 0.1 * jax.random.normal(k4, (C_out,), dtype=jnp.float32)

    fwd = jax.jit(edgeconv3d_pallas)
    out = jax.block_until_ready(fwd(x, edge_index, weight, bias))

    ref = edgeconv3d_ref(x, edge_index, weight, bias)
    np.testing.assert_allclose(np.asarray(out), np.asarray(ref), rtol=1e-4, atol=1e-5)
    print("KERNEL_OK")
</pallas_src>

<mosaic_0001>
module attributes {stable_mosaic.version = 11 : i64} {
  func.func @_edgeconv_kernel(%arg0: i32, %arg1: i32, %arg2: memref<1x128x128xf32, #tpu.memory_space<vmem>>, %arg3: memref<1x128x8xi32, #tpu.memory_space<vmem>>, %arg4: memref<1x128x8xi32, #tpu.memory_space<vmem>>, %arg5: memref<128x128xf32, #tpu.memory_space<vmem>>, %arg6: memref<128x128xf32, #tpu.memory_space<vmem>>, %arg7: memref<1x128xf32, #tpu.memory_space<vmem>>, %arg8: memref<1x128x128xf32, #tpu.memory_space<vmem>>, %arg9: memref<128x128xf32, #tpu.memory_space<vmem>>, %arg10: memref<128x128xf32, #tpu.memory_space<vmem>>) attributes {dimension_semantics = [#tpu.dimension_semantics<parallel>, #tpu.dimension_semantics<arbitrary>], iteration_bounds = array<i64: 2, 1>, scalar_prefetch = 0 : i64, scratch_operands = 2 : i64, tpu.core_type = #tpu.core_type<tc>, window_params = [{transform_indices = @transform_0, window_bounds = array<i64: 1, 128, 128>}, {transform_indices = @transform_1, window_bounds = array<i64: 1, 128, 8>}, {transform_indices = @transform_2, window_bounds = array<i64: 1, 128, 8>}, {pipeline_mode = #tpu.pipeline_mode<synchronous>, transform_indices = @transform_3, window_bounds = array<i64: 128, 128>}, {pipeline_mode = #tpu.pipeline_mode<synchronous>, transform_indices = @transform_4, window_bounds = array<i64: 128, 128>}, {pipeline_mode = #tpu.pipeline_mode<synchronous>, transform_indices = @transform_5, window_bounds = array<i64: 1, 128>}, {transform_indices = @transform_6, window_bounds = array<i64: 1, 128, 128>}]} {
    %c0_i32 = arith.constant 0 : i32
    %0 = arith.cmpi eq, %arg1, %c0_i32 : i32
    %1 = arith.extui %0 : i1 to i32
    %c0_i32_0 = arith.constant 0 : i32
    %2 = arith.cmpi ne, %1, %c0_i32_0 : i32
    scf.if %2 {
      %c0_32 = arith.constant 0 : index
      %c0_33 = arith.constant 0 : index
      %c0_34 = arith.constant 0 : index
      %132 = vector.load %arg2[%c0_32, %c0_33, %c0_34] : memref<1x128x128xf32, #tpu.memory_space<vmem>>, vector<1x128x128xf32>
      %133 = vector.shape_cast %132 : vector<1x128x128xf32> to vector<128x128xf32>
      %c0_35 = arith.constant 0 : index
      %c0_36 = arith.constant 0 : index
      %134 = vector.load %arg5[%c0_35, %c0_36] : memref<128x128xf32, #tpu.memory_space<vmem>>, vector<128x128xf32>
      %cst_37 = arith.constant dense<0.000000e+00> : vector<128x128xf32>
      %135 = tpu.matmul %133, %134, %cst_37 {dimension_numbers = #tpu.dot_dimension_numbers<[1], [0], [0], [1], [0, 0, 1, 1], [], []>} : vector<128x128xf32>, vector<128x128xf32>, vector<128x128xf32> -> vector<128x128xf32>
      %c0_38 = arith.constant 0 : index
      %c0_39 = arith.constant 0 : index
      %136 = vector.load %arg9[%c0_38, %c0_39] : memref<128x128xf32, #tpu.memory_space<vmem>>, vector<128x128xf32>
      tpu.vector_store %arg9[%c0_38, %c0_39], %135 {strides = array<i32>} : memref<128x128xf32, #tpu.memory_space<vmem>>, vector<128x128xf32>,
      %c0_40 = arith.constant 0 : index
      %c0_41 = arith.constant 0 : index
      %137 = vector.load %arg6[%c0_40, %c0_41] : memref<128x128xf32, #tpu.memory_space<vmem>>, vector<128x128xf32>
      %cst_42 = arith.constant dense<0.000000e+00> : vector<128x128xf32>
      %138 = tpu.matmul %133, %137, %cst_42 {dimension_numbers = #tpu.dot_dimension_numbers<[1], [0], [0], [1], [0, 0, 1, 1], [], []>} : vector<128x128xf32>, vector<128x128xf32>, vector<128x128xf32> -> vector<128x128xf32>
      %c0_43 = arith.constant 0 : index
      %c0_44 = arith.constant 0 : index
      %139 = vector.load %arg10[%c0_43, %c0_44] : memref<128x128xf32, #tpu.memory_space<vmem>>, vector<128x128xf32>
      tpu.vector_store %arg10[%c0_43, %c0_44], %138 {strides = array<i32>} : memref<128x128xf32, #tpu.memory_space<vmem>>, vector<128x128xf32>,
    } else {
    }
    %c0 = arith.constant 0 : index
    %c0_1 = arith.constant 0 : index
    %3 = vector.load %arg9[%c0, %c0_1] : memref<128x128xf32, #tpu.memory_space<vmem>>, vector<128x128xf32>
    %c0_2 = arith.constant 0 : index
    %c0_3 = arith.constant 0 : index
    %4 = vector.load %arg10[%c0_2, %c0_3] : memref<128x128xf32, #tpu.memory_space<vmem>>, vector<128x128xf32>
    %c0_4 = arith.constant 0 : index
    %c0_5 = arith.constant 0 : index
    %c0_6 = arith.constant 0 : index
    %5 = vector.load %arg3[%c0_4, %c0_5, %c0_6] : memref<1x128x8xi32, #tpu.memory_space<vmem>>, vector<1x128x8xi32>
    %6 = vector.shape_cast %5 : vector<1x128x8xi32> to vector<128x8xi32>
    %c0_7 = arith.constant 0 : index
    %c0_8 = arith.constant 0 : index
    %c0_9 = arith.constant 0 : index
    %7 = vector.load %arg4[%c0_7, %c0_8, %c0_9] : memref<1x128x8xi32, #tpu.memory_space<vmem>>, vector<1x128x8xi32>
    %8 = vector.shape_cast %7 : vector<1x128x8xi32> to vector<128x8xi32>
    %9 = tpu.iota {dimensions = array<i32: 1>} : vector<128x128xi32>
    %cst = arith.constant 0xFF800000 : f32
    %10 = vector.broadcast %cst : f32 to vector<128x128xf32>
    %11 = vector.extract_strided_slice %6 {offsets = [0, 0], sizes = [128, 1], strides = [1, 1]} : vector<128x8xi32> to vector<128x1xi32>
    %12 = vector.broadcast %11 : vector<128x1xi32> to vector<128x128xi32>
    %13 = arith.cmpi eq, %12, %9 : vector<128x128xi32>
    %14 = arith.extui %13 : vector<128x128xi1> to vector<128x128xi32>
    %15 = arith.sitofp %14 : vector<128x128xi32> to vector<128x128xf32>
    %16 = vector.extract_strided_slice %8 {offsets = [0, 0], sizes = [128, 1], strides = [1, 1]} : vector<128x8xi32> to vector<128x1xi32>
    %17 = vector.broadcast %16 : vector<128x1xi32> to vector<128x128xi32>
    %18 = arith.cmpi eq, %17, %9 : vector<128x128xi32>
    %19 = arith.extui %18 : vector<128x128xi1> to vector<128x128xi32>
    %20 = arith.sitofp %19 : vector<128x128xi32> to vector<128x128xf32>
    %cst_10 = arith.constant dense<0.000000e+00> : vector<128x128xf32>
    %21 = tpu.matmul %15, %3, %cst_10 {dimension_numbers = #tpu.dot_dimension_numbers<[1], [0], [0], [1], [0, 0, 1, 1], [], []>} : vector<128x128xf32>, vector<128x128xf32>, vector<128x128xf32> -> vector<128x128xf32>
    %cst_11 = arith.constant dense<0.000000e+00> : vector<128x128xf32>
    %22 = tpu.matmul %20, %4, %cst_11 {dimension_numbers = #tpu.dot_dimension_numbers<[1], [0], [0], [1], [0, 0, 1, 1], [], []>} : vector<128x128xf32>, vector<128x128xf32>, vector<128x128xf32> -> vector<128x128xf32>
    %23 = arith.addf %21, %22 : vector<128x128xf32>
    %24 = arith.maximumf %10, %23 : vector<128x128xf32>
    %25 = vector.extract_strided_slice %6 {offsets = [0, 1], sizes = [128, 1], strides = [1, 1]} : vector<128x8xi32> to vector<128x1xi32>
    %26 = vector.broadcast %25 : vector<128x1xi32> to vector<128x128xi32>
    %27 = arith.cmpi eq, %26, %9 : vector<128x128xi32>
    %28 = arith.extui %27 : vector<128x128xi1> to vector<128x128xi32>
    %29 = arith.sitofp %28 : vector<128x128xi32> to vector<128x128xf32>
    %30 = vector.extract_strided_slice %8 {offsets = [0, 1], sizes = [128, 1], strides = [1, 1]} : vector<128x8xi32> to vector<128x1xi32>
    %31 = vector.broadcast %30 : vector<128x1xi32> to vector<128x128xi32>
    %32 = arith.cmpi eq, %31, %9 : vector<128x128xi32>
    %33 = arith.extui %32 : vector<128x128xi1> to vector<128x128xi32>
    %34 = arith.sitofp %33 : vector<128x128xi32> to vector<128x128xf32>
    %cst_12 = arith.constant dense<0.000000e+00> : vector<128x128xf32>
    %35 = tpu.matmul %29, %3, %cst_12 {dimension_numbers = #tpu.dot_dimension_numbers<[1], [0], [0], [1], [0, 0, 1, 1], [], []>} : vector<128x128xf32>, vector<128x128xf32>, vector<128x128xf32> -> vector<128x128xf32>
    %cst_13 = arith.constant dense<0.000000e+00> : vector<128x128xf32>
    %36 = tpu.matmul %34, %4, %cst_13 {dimension_numbers = #tpu.dot_dimension_numbers<[1], [0], [0], [1], [0, 0, 1, 1], [], []>} : vector<128x128xf32>, vector<128x128xf32>, vector<128x128xf32> -> vector<128x128xf32>
    %37 = arith.addf %35, %36 : vector<128x128xf32>
    %38 = arith.maximumf %24, %37 : vector<128x128xf32>
    %39 = vector.extract_strided_slice %6 {offsets = [0, 2], sizes = [128, 1], strides = [1, 1]} : vector<128x8xi32> to vector<128x1xi32>
    %40 = vector.broadcast %39 : vector<128x1xi32> to vector<128x128xi32>
    %41 = arith.cmpi eq, %40, %9 : vector<128x128xi32>
    %42 = arith.extui %41 : vector<128x128xi1> to vector<128x128xi32>
    %43 = arith.sitofp %42 : vector<128x128xi32> to vector<128x128xf32>
    %44 = vector.extract_strided_slice %8 {offsets = [0, 2], sizes = [128, 1], strides = [1, 1]} : vector<128x8xi32> to vector<128x1xi32>
    %45 = vector.broadcast %44 : vector<128x1xi32> to vector<128x128xi32>
    %46 = arith.cmpi eq, %45, %9 : vector<128x128xi32>
    %47 = arith.extui %46 : vector<128x128xi1> to vector<128x128xi32>
    %48 = arith.sitofp %47 : vector<128x128xi32> to vector<128x128xf32>
    %cst_14 = arith.constant dense<0.000000e+00> : vector<128x128xf32>
    %49 = tpu.matmul %43, %3, %cst_14 {dimension_numbers = #tpu.dot_dimension_numbers<[1], [0], [0], [1], [0, 0, 1, 1], [], []>} : vector<128x128xf32>, vector<128x128xf32>, vector<128x128xf32> -> vector<128x128xf32>
    %cst_15 = arith.constant dense<0.000000e+00> : vector<128x128xf32>
    %50 = tpu.matmul %48, %4, %cst_15 {dimension_numbers = #tpu.dot_dimension_numbers<[1], [0], [0], [1], [0, 0, 1, 1], [], []>} : vector<128x128xf32>, vector<128x128xf32>, vector<128x128xf32> -> vector<128x128xf32>
    %51 = arith.addf %49, %50 : vector<128x128xf32>
    %52 = arith.maximumf %38, %51 : vector<128x128xf32>
    %53 = vector.extract_strided_slice %6 {offsets = [0, 3], sizes = [128, 1], strides = [1, 1]} : vector<128x8xi32> to vector<128x1xi32>
    %54 = vector.broadcast %53 : vector<128x1xi32> to vector<128x128xi32>
    %55 = arith.cmpi eq, %54, %9 : vector<128x128xi32>
    %56 = arith.extui %55 : vector<128x128xi1> to vector<128x128xi32>
    %57 = arith.sitofp %56 : vector<128x128xi32> to vector<128x128xf32>
    %58 = vector.extract_strided_slice %8 {offsets = [0, 3], sizes = [128, 1], strides = [1, 1]} : vector<128x8xi32> to vector<128x1xi32>
    %59 = vector.broadcast %58 : vector<128x1xi32> to vector<128x128xi32>
    %60 = arith.cmpi eq, %59, %9 : vector<128x128xi32>
    %61 = arith.extui %60 : vector<128x128xi1> to vector<128x128xi32>
    %62 = arith.sitofp %61 : vector<128x128xi32> to vector<128x128xf32>
    %cst_16 = arith.constant dense<0.000000e+00> : vector<128x128xf32>
    %63 = tpu.matmul %57, %3, %cst_16 {dimension_numbers = #tpu.dot_dimension_numbers<[1], [0], [0], [1], [0, 0, 1, 1], [], []>} : vector<128x128xf32>, vector<128x128xf32>, vector<128x128xf32> -> vector<128x128xf32>
    %cst_17 = arith.constant dense<0.000000e+00> : vector<128x128xf32>
    %64 = tpu.matmul %62, %4, %cst_17 {dimension_numbers = #tpu.dot_dimension_numbers<[1], [0], [0], [1], [0, 0, 1, 1], [], []>} : vector<128x128xf32>, vector<128x128xf32>, vector<128x128xf32> -> vector<128x128xf32>
    %65 = arith.addf %63, %64 : vector<128x128xf32>
    %66 = arith.maximumf %52, %65 : vector<128x128xf32>
    %67 = vector.extract_strided_slice %6 {offsets = [0, 4], sizes = [128, 1], strides = [1, 1]} : vector<128x8xi32> to vector<128x1xi32>
    %68 = vector.broadcast %67 : vector<128x1xi32> to vector<128x128xi32>
    %69 = arith.cmpi eq, %68, %9 : vector<128x128xi32>
    %70 = arith.extui %69 : vector<128x128xi1> to vector<128x128xi32>
    %71 = arith.sitofp %70 : vector<128x128xi32> to vector<128x128xf32>
    %72 = vector.extract_strided_slice %8 {offsets = [0, 4], sizes = [128, 1], strides = [1, 1]} : vector<128x8xi32> to vector<128x1xi32>
    %73 = vector.broadcast %72 : vector<128x1xi32> to vector<128x128xi32>
    %74 = arith.cmpi eq, %73, %9 : vector<128x128xi32>
    %75 = arith.extui %74 : vector<128x128xi1> to vector<128x128xi32>
    %76 = arith.sitofp %75 : vector<128x128xi32> to vector<128x128xf32>
    %cst_18 = arith.constant dense<0.000000e+00> : vector<128x128xf32>
    %77 = tpu.matmul %71, %3, %cst_18 {dimension_numbers = #tpu.dot_dimension_numbers<[1], [0], [0], [1], [0, 0, 1, 1], [], []>} : vector<128x128xf32>, vector<128x128xf32>, vector<128x128xf32> -> vector<128x128xf32>
    %cst_19 = arith.constant dense<0.000000e+00> : vector<128x128xf32>
    %78 = tpu.matmul %76, %4, %cst_19 {dimension_numbers = #tpu.dot_dimension_numbers<[1], [0], [0], [1], [0, 0, 1, 1], [], []>} : vector<128x128xf32>, vector<128x128xf32>, vector<128x128xf32> -> vector<128x128xf32>
    %79 = arith.addf %77, %78 : vector<128x128xf32>
    %80 = arith.maximumf %66, %79 : vector<128x128xf32>
    %81 = vector.extract_strided_slice %6 {offsets = [0, 5], sizes = [128, 1], strides = [1, 1]} : vector<128x8xi32> to vector<128x1xi32>
    %82 = vector.broadcast %81 : vector<128x1xi32> to vector<128x128xi32>
    %83 = arith.cmpi eq, %82, %9 : vector<128x128xi32>
    %84 = arith.extui %83 : vector<128x128xi1> to vector<128x128xi32>
    %85 = arith.sitofp %84 : vector<128x128xi32> to vector<128x128xf32>
    %86 = vector.extract_strided_slice %8 {offsets = [0, 5], sizes = [128, 1], strides = [1, 1]} : vector<128x8xi32> to vector<128x1xi32>
    %87 = vector.broadcast %86 : vector<128x1xi32> to vector<128x128xi32>
    %88 = arith.cmpi eq, %87, %9 : vector<128x128xi32>
    %89 = arith.extui %88 : vector<128x128xi1> to vector<128x128xi32>
    %90 = arith.sitofp %89 : vector<128x128xi32> to vector<128x128xf32>
    %cst_20 = arith.constant dense<0.000000e+00> : vector<128x128xf32>
    %91 = tpu.matmul %85, %3, %cst_20 {dimension_numbers = #tpu.dot_dimension_numbers<[1], [0], [0], [1], [0, 0, 1, 1], [], []>} : vector<128x128xf32>, vector<128x128xf32>, vector<128x128xf32> -> vector<128x128xf32>
    %cst_21 = arith.constant dense<0.000000e+00> : vector<128x128xf32>
    %92 = tpu.matmul %90, %4, %cst_21 {dimension_numbers = #tpu.dot_dimension_numbers<[1], [0], [0], [1], [0, 0, 1, 1], [], []>} : vector<128x128xf32>, vector<128x128xf32>, vector<128x128xf32> -> vector<128x128xf32>
    %93 = arith.addf %91, %92 : vector<128x128xf32>
    %94 = arith.maximumf %80, %93 : vector<128x128xf32>
    %95 = vector.extract_strided_slice %6 {offsets = [0, 6], sizes = [128, 1], strides = [1, 1]} : vector<128x8xi32> to vector<128x1xi32>
    %96 = vector.broadcast %95 : vector<128x1xi32> to vector<128x128xi32>
    %97 = arith.cmpi eq, %96, %9 : vector<128x128xi32>
    %98 = arith.extui %97 : vector<128x128xi1> to vector<128x128xi32>
    %99 = arith.sitofp %98 : vector<128x128xi32> to vector<128x128xf32>
    %100 = vector.extract_strided_slice %8 {offsets = [0, 6], sizes = [128, 1], strides = [1, 1]} : vector<128x8xi32> to vector<128x1xi32>
    %101 = vector.broadcast %100 : vector<128x1xi32> to vector<128x128xi32>
    %102 = arith.cmpi eq, %101, %9 : vector<128x128xi32>
    %103 = arith.extui %102 : vector<128x128xi1> to vector<128x128xi32>
    %104 = arith.sitofp %103 : vector<128x128xi32> to vector<128x128xf32>
    %cst_22 = arith.constant dense<0.000000e+00> : vector<128x128xf32>
    %105 = tpu.matmul %99, %3, %cst_22 {dimension_numbers = #tpu.dot_dimension_numbers<[1], [0], [0], [1], [0, 0, 1, 1], [], []>} : vector<128x128xf32>, vector<128x128xf32>, vector<128x128xf32> -> vector<128x128xf32>
    %cst_23 = arith.constant dense<0.000000e+00> : vector<128x128xf32>
    %106 = tpu.matmul %104, %4, %cst_23 {dimension_numbers = #tpu.dot_dimension_numbers<[1], [0], [0], [1], [0, 0, 1, 1], [], []>} : vector<128x128xf32>, vector<128x128xf32>, vector<128x128xf32> -> vector<128x128xf32>
    %107 = arith.addf %105, %106 : vector<128x128xf32>
    %108 = arith.maximumf %94, %107 : vector<128x128xf32>
    %109 = vector.extract_strided_slice %6 {offsets = [0, 7], sizes = [128, 1], strides = [1, 1]} : vector<128x8xi32> to vector<128x1xi32>
    %110 = vector.broadcast %109 : vector<128x1xi32> to vector<128x128xi32>
    %111 = arith.cmpi eq, %110, %9 : vector<128x128xi32>
    %112 = arith.extui %111 : vector<128x128xi1> to vector<128x128xi32>
    %113 = arith.sitofp %112 : vector<128x128xi32> to vector<128x128xf32>
    %114 = vector.extract_strided_slice %8 {offsets = [0, 7], sizes = [128, 1], strides = [1, 1]} : vector<128x8xi32> to vector<128x1xi32>
    %115 = vector.broadcast %114 : vector<128x1xi32> to vector<128x128xi32>
    %116 = arith.cmpi eq, %115, %9 : vector<128x128xi32>
    %117 = arith.extui %116 : vector<128x128xi1> to vector<128x128xi32>
    %118 = arith.sitofp %117 : vector<128x128xi32> to vector<128x128xf32>
    %cst_24 = arith.constant dense<0.000000e+00> : vector<128x128xf32>
    %119 = tpu.matmul %113, %3, %cst_24 {dimension_numbers = #tpu.dot_dimension_numbers<[1], [0], [0], [1], [0, 0, 1, 1], [], []>} : vector<128x128xf32>, vector<128x128xf32>, vector<128x128xf32> -> vector<128x128xf32>
    %cst_25 = arith.constant dense<0.000000e+00> : vector<128x128xf32>
    %120 = tpu.matmul %118, %4, %cst_25 {dimension_numbers = #tpu.dot_dimension_numbers<[1], [0], [0], [1], [0, 0, 1, 1], [], []>} : vector<128x128xf32>, vector<128x128xf32>, vector<128x128xf32> -> vector<128x128xf32>
    %121 = arith.addf %119, %120 : vector<128x128xf32>
    %122 = arith.maximumf %108, %121 : vector<128x128xf32>
    %c0_26 = arith.constant 0 : index
    %c0_27 = arith.constant 0 : index
    %123 = vector.load %arg7[%c0_26, %c0_27] : memref<1x128xf32, #tpu.memory_space<vmem>>, vector<1x128xf32>
    %124 = vector.broadcast %123 : vector<1x128xf32> to vector<128x128xf32>
    %125 = arith.addf %122, %124 : vector<128x128xf32>
    %cst_28 = arith.constant 0.000000e+00 : f32
    %126 = vector.broadcast %cst_28 : f32 to vector<128x128xf32>
    %127 = arith.maximumf %125, %126 : vector<128x128xf32>
    %128 = tpu.transpose %127, [1, 0] : vector<128x128xf32> -> vector<128x128xf32>
    %c0_29 = arith.constant 0 : index
    %c0_30 = arith.constant 0 : index
    %c0_31 = arith.constant 0 : index
    %129 = vector.load %arg8[%c0_29, %c0_30, %c0_31] : memref<1x128x128xf32, #tpu.memory_space<vmem>>, vector<1x128x128xf32>
    %130 = vector.shape_cast %129 : vector<1x128x128xf32> to vector<128x128xf32>
    %131 = vector.shape_cast %128 : vector<128x128xf32> to vector<1x128x128xf32>
    tpu.vector_store %arg8[%c0_29, %c0_30, %c0_31], %131 {strides = array<i32>} : memref<1x128x128xf32, #tpu.memory_space<vmem>>, vector<1x128x128xf32>,
    return
  }
  func.func @transform_0(%arg0: i32, %arg1: i32) -> (i32, i32, i32) {
    %c0_i32 = arith.constant 0 : i32
    %c0_i32_0 = arith.constant 0 : i32
    %c0_i32_1 = arith.constant 0 : i32
    return %arg0, %c0_i32, %c0_i32_0 : i32, i32, i32
  }
  func.func @transform_1(%arg0: i32, %arg1: i32) -> (i32, i32, i32) {
    %c0_i32 = arith.constant 0 : i32
    %c0_i32_0 = arith.constant 0 : i32
    return %arg0, %arg1, %c0_i32 : i32, i32, i32
  }
  func.func @transform_2(%arg0: i32, %arg1: i32) -> (i32, i32, i32) {
    %c0_i32 = arith.constant 0 : i32
    %c0_i32_0 = arith.constant 0 : i32
    return %arg0, %arg1, %c0_i32 : i32, i32, i32
  }
  func.func @transform_3(%arg0: i32, %arg1: i32) -> (i32, i32) {
    %c0_i32 = arith.constant 0 : i32
    %c0_i32_0 = arith.constant 0 : i32
    %c0_i32_1 = arith.constant 0 : i32
    return %c0_i32, %c0_i32_0 : i32, i32
  }
  func.func @transform_4(%arg0: i32, %arg1: i32) -> (i32, i32) {
    %c0_i32 = arith.constant 0 : i32
    %c0_i32_0 = arith.constant 0 : i32
    %c0_i32_1 = arith.constant 0 : i32
    return %c0_i32, %c0_i32_0 : i32, i32
  }
  func.func @transform_5(%arg0: i32, %arg1: i32) -> (i32, i32) {
    %c0_i32 = arith.constant 0 : i32
    %c0_i32_0 = arith.constant 0 : i32
    %c0_i32_1 = arith.constant 0 : i32
    return %c0_i32, %c0_i32_0 : i32, i32
  }
  func.func @transform_6(%arg0: i32, %arg1: i32) -> (i32, i32, i32) {
    %c0_i32 = arith.constant 0 : i32
    %c0_i32_0 = arith.constant 0 : i32
    return %arg0, %c0_i32, %arg1 : i32, i32, i32
  }
}

</mosaic_0001>

<bundles_post_ra>
// kernel: edgeconv3d_pallas.1
= control target key start
LH: loop header
LB: loop body
LE: loop exit
PB: predicated region body
PF: predicated region fallthrough
CT: control target
= control target key end

     0   :  { %s4265_s21 = smov 0   ;;  %s4267_s22 = smov 0   ;;  %s6985_s0 = inlined_call_operand.vmem [shape: f32[2,128,128], index: 0, kind: input, shape index: {}]   ;;  %s6986_s1 = inlined_call_operand.vmem [shape: s32[2,128,8], index: 1, kind: input, shape index: {}]   ;;  %s6987_s2 = inlined_call_operand.vmem [shape: s32[2,128,8], index: 2, kind: input, shape index: {}]   ;;  %s6988_s3 = inlined_call_operand.vmem [shape: f32[128,128], index: 3, kind: input, shape index: {}]   ;;  %s6989_s4 = inlined_call_operand.vmem [shape: f32[128,128], index: 4, kind: input, shape index: {}]   ;;  %s6990_s5 = inlined_call_operand.vmem [shape: f32[1,128], index: 5, kind: input, shape index: {}]   ;;  %s6991_s6 = inlined_call_operand.vmem [shape: f32[2,128,128], index: 6, kind: output, shape index: {}]  }
   0x1   :  { %s4269_s23 = smov 0  }
   0x2 LB: > { %s28_s24 = sadd.s32 1, %s4215_s22  ;;  %p3513_p0 = scmp.ge.s32.totalorder %s4219_s23, 1  ;;  %s4219_s23 = sphi %s4269_s23, %s16_s23   ;;  %s4215_s22 = sphi %s4267_s22, %s7408_s22   ;;  %s4211_s21 = sphi %s4265_s21, %s7407_s21  }
   0x3   : > { %p30_p1 = scmp.ge.s32.totalorder %s28_s24, 2  ;;  %p260_p2 = scmp.lt.s32.totalorder %s4219_s23, 3 }
   0x5   : > { %s7410_s24 = smov (%p30_p1, %s28_s24), 0  ;;  %p261_p3 = pnand %p3513_p0, %p260_p2 }
   0x7   : > { %264 = sbr.rel (%p261_p3) target bundleno = 1197 (0x4ad), region = 44 }
   0xc   : > { %v379_v0 = vld [vmem:[%s6988_s3 + $0x78] sm:$0xff]  ;;  %v378_v2 = vld [vmem:[%s6988_s3 + $0x70] sm:$0xff]  ;;  %p311_p4 = scmp.lt.s32.totalorder %s4211_s21, 1  ;;  %v377_v4 = vld [vmem:[%s6988_s3 + $0x68] sm:$0xff]  ;;  %v4221_v6 = vmov 0  }
   0xd   : > { %v476_v1 = vld [vmem:[%s6989_s4 + $0x78] sm:$0xff]  ;;  %4040 = vmatpush.msra.mxu2 %v379_v0  ;;  %v475_v3 = vld [vmem:[%s6989_s4 + $0x70] sm:$0xff]  ;;  %v474_v5 = vld [vmem:[%s6989_s4 + $0x68] sm:$0xff]  ;;  %4107 = vset.pattern.permute.xlu2 %v4221_v6 }
   0xe   : > { %4056 = vmatpush.msra.mxu3 %v476_v1  ;;  %4106 = vset.pattern.permute.xlu1 %v4221_v6  ;;  %s7412_s21 = smov (!%p311_p4, %s4211_s21), 1  ;;  %v376_v7 = vld [vmem:[%s6988_s3 + $0x60] sm:$0xff]  ;;  %v375_v9 = vld [vmem:[%s6988_s3 + $0x58] sm:$0xff]  ;;  %v374_v14 = vld [vmem:[%s6988_s3 + $0x50] sm:$0xff] }
   0xf   : > { %4041 = vmatpush.msra.mxu2 %v378_v2  ;;  %4105 = vset.pattern.permute.xlu0 %v4221_v6  ;;  %v473_v8 = vld [vmem:[%s6989_s4 + $0x60] sm:$0xff]  ;;  %s4307_s17 = sshll.u32 %s7412_s21, 7  ;;  %v472_v13 = vld [vmem:[%s6989_s4 + $0x58] sm:$0xff]  ;;  %v471_v15 = vld [vmem:[%s6989_s4 + $0x50] sm:$0xff] }
  0x10   : > { %4057 = vmatpush.msra.mxu3 %v475_v3  ;;  %380 = vmatpush.msra.mxu0 %v379_v0  ;;  %s4313_s20 = scalar_lea.vmem %s6986_s1, %s4307_s17  ;;  %v373_v16 = vld [vmem:[%s6988_s3 + $0x48] sm:$0xff]  ;;  %v372_v18 = vld [vmem:[%s6988_s3 + $0x40] sm:$0xff]  ;;  %v371_v23 = vld [vmem:[%s6988_s3 + $0x38] sm:$0xff]  ;;  %s4424_s10 = scalar_lea.vmem %s6985_s0, %s4307_s17 }
  0x11   : > { %4042 = vmatpush.msra.mxu2 %v377_v4  ;;  %v4319_v10 = vld [vmem:[%s4313_s20 + $0x20] sm:$0xff]  ;;  %v4322_v11 = vld [vmem:[%s4313_s20 + $0x10] sm:$0xff]  ;;  %477 = vmatpush.msra.mxu1 %v476_v1  ;;  %v470_v17 = vld [vmem:[%s6989_s4 + $0x48] sm:$0xff]  ;;  %s4459_s15 = scalar_lea.vmem %s6987_s2, %s4307_s17  ;;  %s6958_s25 = scalar_lea.vmem %s6991_s6, %s4307_s17 }
  0x12   : > { %4058 = vmatpush.msra.mxu3 %v474_v5  ;;  %v4325_v12 = vld [vmem:[%s4313_s20] sm:$0xff]  ;;  %381 = vmatpush.msra.mxu0 %v378_v2  ;;  %v4352_v20 = vld [vmem:[%s4313_s20 + $0x28] sm:$0xff]  ;;  %v4355_v21 = vld [vmem:[%s4313_s20 + $0x18] sm:$0xff] }
  0x13   : > { %4043 = vmatpush.msra.mxu2 %v376_v7  ;;  %637 = vperm.xlu2 %4107, %v4319_v10   ;;  %v469_v19 = vld [vmem:[%s6989_s4 + $0x40] sm:$0xff]  ;;  %v4358_v22 = vld [vmem:[%s4313_s20 + $0x8] sm:$0xff]  ;;  %v468_v24 = vld [vmem:[%s6989_s4 + $0x38] sm:$0xff] }
  0x14   : > { %4059 = vmatpush.msra.mxu3 %v473_v8  ;;  %631 = vperm.xlu1 %4106, %v4322_v11   ;;  %v370_v25 = vld [vmem:[%s6988_s3 + $0x30] sm:$0xff]  ;;  %v369_v27 = vld [vmem:[%s6988_s3 + $0x28] sm:$0xff]  ;;  %v368_v29 = vld [vmem:[%s6988_s3 + $0x20] sm:$0xff] }
  0x15   : > { %625 = vperm.xlu0 %4105, %v4325_v12   ;;  %4044 = vmatpush.msra.mxu2 %v375_v9  ;;  %v467_v26 = vld [vmem:[%s6989_s4 + $0x30] sm:$0xff]  ;;  %v466_v28 = vld [vmem:[%s6989_s4 + $0x28] sm:$0xff]  ;;  %v465_v30 = vld [vmem:[%s6989_s4 + $0x20] sm:$0xff] }
  0x16   : > { %4060 = vmatpush.msra.mxu3 %v472_v13  ;;  %478 = vmatpush.msra.mxu1 %v475_v3  ;;  %v4388_v31 = vld [vmem:[%s4313_s20 + $0x40] sm:$0xff]  ;;  %v4391_v32 = vld [vmem:[%s4313_s20 + $0x38] sm:$0xff]  ;;  %v4394_v33 = vld [vmem:[%s4313_s20 + $0x30] sm:$0xff] }
  0x17   : > { %4045 = vmatpush.msra.mxu2 %v374_v14  ;;  %382 = vmatpush.msra.mxu0 %v377_v4  ;;  %v367_v34 = vld [vmem:[%s6988_s3 + $0x18] sm:$0xff]  ;;  %v366_v36 = vld [vmem:[%s6988_s3 + $0x10] sm:$0xff]  ;;  %v365_v38 = vld [vmem:[%s6988_s3 + $0x8] sm:$0xff] }
  0x18   : > { %4061 = vmatpush.msra.mxu3 %v471_v15  ;;  %479 = vmatpush.msra.mxu1 %v474_v5  ;;  %v464_v35 = vld [vmem:[%s6989_s4 + $0x18] sm:$0xff]  ;;  %v463_v37 = vld [vmem:[%s6989_s4 + $0x10] sm:$0xff]  ;;  %v462_v39 = vld [vmem:[%s6989_s4 + $0x8] sm:$0xff] }
  0x19   : > { %4046 = vmatpush.msra.mxu2 %v373_v16  ;;  %383 = vmatpush.msra.mxu0 %v376_v7  ;;  %v364_v40 = vld [vmem:[%s6988_s3] sm:$0xff]  ;;  %v4430_v42 = vld [vmem:[%s4313_s20 + $0x58] sm:$0xff]  ;;  %v4433_v43 = vld [vmem:[%s4313_s20 + $0x50] sm:$0xff] }
  0x1a   : > { %4062 = vmatpush.msra.mxu3 %v470_v17  ;;  %480 = vmatpush.msra.mxu1 %v473_v8  ;;  %v461_v41 = vld [vmem:[%s6989_s4] sm:$0xff]  ;;  %v4436_v44 = vld [vmem:[%s4313_s20 + $0x48] sm:$0xff]  ;;  %v4443_v46 = vld [vmem:[%s4313_s20 + $0x70] sm:$0xff] }
  0x1b   : > { %4047 = vmatpush.msra.mxu2 %v372_v18  ;;  %384 = vmatpush.msra.mxu0 %v375_v9  ;;  %v356_v45 = vld [vmem:[%s4424_s10 + $0x40] sm:$0xff]  ;;  %v4446_v47 = vld [vmem:[%s4313_s20 + $0x68] sm:$0xff]  ;;  %v4469_v53 = vld [vmem:[%s4313_s20 + $0x78] sm:$0xff] }
  0x1c   : > { %4063 = vmatpush.msra.mxu3 %v469_v19  ;;  %640 = vperm.xlu2 %4107, %v4352_v20   ;;  %v4449_v48 = vld [vmem:[%s4313_s20 + $0x60] sm:$0xff]  ;;  %v357_v49 = vld [vmem:[%s4424_s10 + $0x48] sm:$0xff]  ;;  %7041 = vst [vmem:[#allocation5_spill] sm:$0xff] %v4469_v53  ;;  %v358_v54 = vld [vmem:[%s4424_s10 + $0x50] sm:$0xff] }
  0x1d   : > { %634 = vperm.xlu1 %4106, %v4355_v21   ;;  %628 = vperm.xlu0 %4105, %v4358_v22   ;;  %7040 = vst [vmem:[#allocation4_spill] sm:$0xff] %v4449_v48  ;;  %v348_v50 = vld [vmem:[%s4424_s10] sm:$0xff]  ;;  %v4463_v51 = vld [vmem:[%s4459_s15 + $0x8] sm:$0xff]  ;;  %v4480_v57 = vld [vmem:[%s4459_s15 + $0x18] sm:$0xff] }
  0x1e   : > { %4048 = vmatpush.msra.mxu2 %v371_v23  ;;  %4064 = vmatpush.msra.mxu3 %v468_v24  ;;  %v4466_v52 = vld [vmem:[%s4459_s15] sm:$0xff]  ;;  %v349_v55 = vld [vmem:[%s4424_s10 + $0x8] sm:$0xff]  ;;  %v4483_v58 = vld [vmem:[%s4459_s15 + $0x10] sm:$0xff] }
  0x1f   : > { %481 = vmatpush.msra.mxu1 %v472_v13  ;;  %385 = vmatpush.msra.mxu0 %v374_v14  ;;  %v4477_v56 = vld [vmem:[%s4459_s15 + $0x20] sm:$0xff]  ;;  %7042 = vst [vmem:[#allocation6_spill] sm:$0xff] %v4483_v58  ;;  %v359_v59 = vld [vmem:[%s4424_s10 + $0x58] sm:$0xff]  ;;  %v350_v60 = vld [vmem:[%s4424_s10 + $0x10] sm:$0xff] }
  0x20   : > { %4049 = vmatpush.msra.mxu2 %v370_v25  ;;  %4065 = vmatpush.msra.mxu3 %v467_v26  ;;  %v4491_v61 = vld [vmem:[%s4459_s15 + $0x38] sm:$0xff]  ;;  %v4494_v62 = vld [vmem:[%s4459_s15 + $0x30] sm:$0xff]  ;;  %v4497_v63 = vld [vmem:[%s4459_s15 + $0x28] sm:$0xff] }
  0x21   : > { %482 = vmatpush.msra.mxu1 %v471_v15  ;;  %386 = vmatpush.msra.mxu0 %v373_v16  ;;  %7043 = vst [vmem:[#allocation7_spill] sm:$0xff] %v4497_v63  ;;  %v360_v0 = vld [vmem:[%s4424_s10 + $0x60] sm:$0xff]  ;;  %v351_v1 = vld [vmem:[%s4424_s10 + $0x18] sm:$0xff]  ;;  %v4505_v2 = vld [vmem:[%s4459_s15 + $0x50] sm:$0xff] }
  0x22   : > { %4050 = vmatpush.msra.mxu2 %v369_v27  ;;  %4066 = vmatpush.msra.mxu3 %v466_v28  ;;  %v4508_v3 = vld [vmem:[%s4459_s15 + $0x48] sm:$0xff]  ;;  %v4511_v4 = vld [vmem:[%s4459_s15 + $0x40] sm:$0xff]  ;;  %v4525_v9 = vld [vmem:[%s4459_s15 + $0x58] sm:$0xff] }
  0x23   : > { %483 = vmatpush.msra.mxu1 %v470_v17  ;;  %387 = vmatpush.msra.mxu0 %v372_v18  ;;  %v361_v5 = vld [vmem:[%s4424_s10 + $0x68] sm:$0xff]  ;;  %v352_v6 = vld [vmem:[%s4424_s10 + $0x20] sm:$0xff]  ;;  %v362_v13 = vld [vmem:[%s4424_s10 + $0x70] sm:$0xff]  ;;  %v4222_v18 = vmov 1  }
  0x24   : > { %4051 = vmatpush.msra.mxu2 %v368_v29  ;;  %4067 = vmatpush.msra.mxu3 %v465_v30  ;;  %v4519_v7 = vld [vmem:[%s4459_s15 + $0x68] sm:$0xff]  ;;  %v4522_v8 = vld [vmem:[%s4459_s15 + $0x60] sm:$0xff]  ;;  %v4533_v15 = vld [vmem:[%s4459_s15 + $0x78] sm:$0xff] }
  0x25   : > { %649 = vperm.xlu2 %4107, %v4388_v31   ;;  %646 = vperm.xlu1 %4106, %v4391_v32   ;;  %v353_v14 = vld [vmem:[%s4424_s10 + $0x28] sm:$0xff]  ;;  %v4536_v16 = vld [vmem:[%s4459_s15 + $0x70] sm:$0xff]  ;;  %v363_v17 = vld [vmem:[%s4424_s10 + $0x78] sm:$0xff] }
  0x26   : > { %643 = vperm.xlu0 %4105, %v4394_v33   ;;  %4052 = vmatpush.msra.mxu2 %v367_v34 }
  0x27   : > { %4068 = vmatpush.msra.mxu3 %v464_v35  ;;  %484 = vmatpush.msra.mxu1 %v469_v19  ;;  %v354_v19 = vld [vmem:[%s4424_s10 + $0x30] sm:$0xff] }
  0x28   : > { %4053 = vmatpush.msra.mxu2 %v366_v36  ;;  %388 = vmatpush.msra.mxu0 %v371_v23 }
  0x29   : > { %4069 = vmatpush.msra.mxu3 %v463_v37  ;;  %485 = vmatpush.msra.mxu1 %v468_v24  ;;  %v355_v24 = vld [vmem:[%s4424_s10 + $0x38] sm:$0xff] }
  0x2a   : > { %4054 = vmatpush.msra.mxu2 %v365_v38  ;;  %389 = vmatpush.msra.mxu0 %v370_v25 }
  0x2b   : > { %4070 = vmatpush.msra.mxu3 %v462_v39  ;;  %486 = vmatpush.msra.mxu1 %v467_v26 }
  0x2c   : > { %4055 = vmatpush.msra.mxu2 %v364_v40  ;;  %390 = vmatpush.msra.mxu0 %v369_v27 }
  0x2d   : > { %4071 = vmatpush.msra.mxu3 %v461_v41  ;;  %658 = vperm.xlu2 %4107, %v4430_v42  }
  0x2e   : > { %655 = vperm.xlu1 %4106, %v4433_v43   ;;  %652 = vperm.xlu0 %4105, %v4436_v44  }
  0x2f   : > { %420 = vmatmul.f32.vlgmr.msra.gmra.mxu2 %v356_v45  ;;  %517 = vmatmul.f32.vlgmr.msra.gmra.mxu3 %v356_v45 }
  0x30   : > { %487 = vmatpush.msra.mxu1 %v466_v28  ;;  %391 = vmatpush.msra.mxu0 %v368_v29 }
  0x32   : > { %488 = vmatpush.msra.mxu1 %v465_v30  ;;  %392 = vmatpush.msra.mxu0 %v367_v34 }
  0x34   : > { %489 = vmatpush.msra.mxu1 %v464_v35  ;;  %393 = vmatpush.msra.mxu0 %v366_v36 }
  0x35   : > { %667 = vperm.xlu2 %4107, %v4443_v46  }
  0x36   : > { %664 = vperm.xlu1 %4106, %v4446_v47   ;;  %661 = vperm.xlu0 %4105, %v4449_v48  }
  0x37   : > { %423 = vmatmul.f32.gmra.mxu2 %v357_v49  ;;  %520 = vmatmul.f32.gmra.mxu3 %v357_v49 }
  0x38   : > { %490 = vmatpush.msra.mxu1 %v463_v37  ;;  %394 = vmatpush.msra.mxu0 %v365_v38 }
  0x3a   : > { %491 = vmatpush.msra.mxu1 %v462_v39  ;;  %395 = vmatpush.msra.mxu0 %v364_v40 }
  0x3b   : > { %396 = vmatmul.f32.vlgmr.msra.gmra.mxu0 %v348_v50 }
  0x3c   : > { %492 = vmatpush.msra.mxu1 %v461_v41 }
  0x3d   : > { %724 = vperm.xlu2 %4107, %v4463_v51   ;;  %493 = vmatmul.f32.vlgmr.msra.gmra.mxu1 %v348_v50 }
  0x3e   : > { %721 = vperm.xlu1 %4106, %v4466_v52   ;;  %670 = vperm.xlu0 %4105, %v4469_v53  }
  0x3f   : > { %426 = vmatmul.f32.gmra.mxu2 %v358_v54  ;;  %523 = vmatmul.f32.gmra.mxu3 %v358_v54 }
  0x43   : > { %399 = vmatmul.f32.gmra.mxu0 %v349_v55 }
  0x45   : > { %733 = vperm.xlu2 %4107, %v4477_v56   ;;  %496 = vmatmul.f32.gmra.mxu1 %v349_v55 }
  0x46   : > { %730 = vperm.xlu1 %4106, %v4480_v57   ;;  %727 = vperm.xlu0 %4105, %v4483_v58  }
  0x47   : > { %429 = vmatmul.f32.gmra.mxu2 %v359_v59  ;;  %526 = vmatmul.f32.gmra.mxu3 %v359_v59 }
  0x4b   : > { %402 = vmatmul.f32.gmra.mxu0 %v350_v60 }
  0x4d   : > { %742 = vperm.xlu2 %4107, %v4491_v61   ;;  %499 = vmatmul.f32.gmra.mxu1 %v350_v60 }
  0x4e   : > { %739 = vperm.xlu1 %4106, %v4494_v62   ;;  %736 = vperm.xlu0 %4105, %v4497_v63  }
  0x4f   : > { %432 = vmatmul.f32.gmra.mxu2 %v360_v0  ;;  %529 = vmatmul.f32.gmra.mxu3 %v360_v0 }
  0x53   : > { %405 = vmatmul.f32.gmra.mxu0 %v351_v1 }
  0x55   : > { %751 = vperm.xlu2 %4107, %v4505_v2   ;;  %502 = vmatmul.f32.gmra.mxu1 %v351_v1 }
  0x56   : > { %748 = vperm.xlu1 %4106, %v4508_v3   ;;  %745 = vperm.xlu0 %4105, %v4511_v4  }
  0x57   : > { %435 = vmatmul.f32.gmra.mxu2 %v361_v5  ;;  %532 = vmatmul.f32.gmra.mxu3 %v361_v5 }
  0x5b   : > { %408 = vmatmul.f32.gmra.mxu0 %v352_v6 }
  0x5d   : > { %760 = vperm.xlu2 %4107, %v4519_v7   ;;  %505 = vmatmul.f32.gmra.mxu1 %v352_v6 }
  0x5e   : > { %757 = vperm.xlu1 %4106, %v4522_v8   ;;  %754 = vperm.xlu0 %4105, %v4525_v9  }
  0x5f   : > { %438 = vmatmul.f32.gmra.mxu2 %v362_v13  ;;  %535 = vmatmul.f32.gmra.mxu3 %v362_v13 }
  0x63   : > { %411 = vmatmul.f32.gmra.mxu0 %v353_v14 }
  0x65   : > { %4108 = vset.pattern.permute.xlu2 %v4222_v18  ;;  %508 = vmatmul.f32.gmra.mxu1 %v353_v14 }
  0x66   : > { %766 = vperm.xlu1 %4106, %v4533_v15   ;;  %763 = vperm.xlu0 %4105, %v4536_v16  }
  0x67   : > { %947 = vperm.xlu2 %4108, %v4325_v12   ;;  %441 = vmatmul.f32.gmra.mxu2 %v363_v17 }
  0x68   : > { %538 = vmatmul.f32.gmra.mxu3 %v363_v17 }
  0x6b   : > { %414 = vmatmul.f32.gmra.mxu0 %v354_v19 }
  0x6d   : > { %511 = vmatmul.f32.gmra.mxu1 %v354_v19  ;;  %v4543_v23 = vpop.permute.xlu2 %637  ;;  %v4223_v19 = vmov 2  }
  0x6e   : > { %4110 = vset.pattern.permute.xlu1 %v4222_v18  ;;  %4109 = vset.pattern.permute.xlu0 %v4222_v18  ;;  %7044 = vst [vmem:[#allocation8_spill] sm:$0xff] %v4543_v23 }
  0x6f   : > { %953 = vperm.xlu1 %4110, %v4322_v11   ;;  %956 = vperm.xlu2 %4108, %v4355_v21  }
  0x70   : > { %950 = vperm.xlu0 %4109, %v4358_v22  }
  0x73   : > { %417 = vmatmul.f32.gmra.mxu0 %v355_v24 }
  0x75   : > { %514 = vmatmul.f32.gmra.mxu1 %v355_v24 }
  0x76   : > { %v4549_v25 = vpop.permute.xlu2 %640 }
  0x77   : > { %7045 = vst [vmem:[#allocation9_spill] sm:$0xff] %v4549_v25  ;;  %959 = vperm.xlu1 %4110, %v4319_v10   ;;  %962 = vperm.xlu2 %4108, %v4352_v20  }
  0x78   : > { %965 = vperm.xlu0 %4109, %v4394_v33  }
  0x7f   : > { %968 = vperm.xlu1 %4110, %v4391_v32   ;;  %971 = vperm.xlu2 %4108, %v4388_v31   ;;  %v4556_v26 = vpop.permute.xlu2 %649 }
  0x80   : > { %7046 = vst [vmem:[#allocation10_spill] sm:$0xff] %v4556_v26  ;;  %974 = vperm.xlu0 %4109, %v4436_v44  }
  0x86   : > { %v4559_v27 = vpop.permute.xlu1 %631 }
  0x87   : > { %977 = vperm.xlu1 %4110, %v4433_v43   ;;  %980 = vperm.xlu2 %4108, %v4430_v42   ;;  %v4563_v28 = vpop.permute.xlu2 %658  ;;  %v4565_v29 = vpop.permute.xlu0 %625 }
  0x88   : > { %7047 = vst [vmem:[#allocation11_spill] sm:$0xff] %v4563_v28  ;;  %983 = vperm.xlu0 %4109, %v4449_v48  }
  0x8f   : > { %986 = vperm.xlu1 %4110, %v4446_v47   ;;  %989 = vperm.xlu2 %4108, %v4443_v46   ;;  %v4570_v30 = vpop.permute.xlu2 %667  ;;  %v4572_v34 = vpop.permute.xlu1 %634 }
  0x90   : > { %7048 = vst [vmem:[#allocation12_spill] sm:$0xff] %v4570_v30  ;;  %992 = vperm.xlu0 %4109, %v4469_v53   ;;  %v4575_v35 = vpop.permute.xlu0 %628 }
  0x91   : > { %7049 = vst [vmem:[#allocation13_spill] sm:$0xff] %v4572_v34 }
  0x97   : > { %1043 = vperm.xlu1 %4110, %v4466_v52   ;;  %1046 = vperm.xlu2 %4108, %v4463_v51   ;;  %v4579_v36 = vpop.permute.xlu2 %724  ;;  %v4581_v37 = vpop.permute.xlu1 %646 }
  0x98   : > { %7050 = vst [vmem:[#allocation14_spill] sm:$0xff] %v4581_v37  ;;  %1049 = vperm.xlu0 %4109, %v4483_v58   ;;  %v4584_v38 = vpop.permute.xlu0 %643 }
  0x99   : > { %7051 = vst [vmem:[#allocation15_spill] sm:$0xff] %v4584_v38 }
  0x9f   : > { %1052 = vperm.xlu1 %4110, %v4480_v57   ;;  %1055 = vperm.xlu2 %4108, %v4477_v56   ;;  %v4588_v39 = vpop.permute.xlu2 %733 }
  0xa0   : > { %7052 = vst [vmem:[#allocation16_spill] sm:$0xff] %v4588_v39  ;;  %1058 = vperm.xlu0 %4109, %v4497_v63   ;;  %v4591_v40 = vpop.permute.xlu1 %655  ;;  %v4593_v41 = vpop.permute.xlu0 %652 }
  0xa1   : > { %7053 = vst [vmem:[#allocation17_spill] sm:$0xff] %v4591_v40 }
  0xa2   : > { %7054 = vst [vmem:[#allocation18_spill] sm:$0xff] %v4593_v41 }
  0xa7   : > { %1061 = vperm.xlu1 %4110, %v4494_v62   ;;  %1064 = vperm.xlu2 %4108, %v4491_v61   ;;  %v4597_v45 = vpop.permute.xlu2 %742 }
  0xa8   : > { %7055 = vst [vmem:[#allocation19_spill] sm:$0xff] %v4597_v45  ;;  %1067 = vperm.xlu0 %4109, %v4511_v4   ;;  %v4600_v49 = vpop.permute.xlu1 %664  ;;  %v4602_v50 = vpop.permute.xlu0 %661 }
  0xa9   : > { %7056 = vst [vmem:[#allocation20_spill] sm:$0xff] %v4600_v49 }
  0xaa   : > { %7057 = vst [vmem:[#allocation21_spill] sm:$0xff] %v4602_v50 }
  0xaf   : > { %1070 = vperm.xlu1 %4110, %v4508_v3   ;;  %1073 = vperm.xlu2 %4108, %v4505_v2   ;;  %v4606_v54 = vpop.permute.xlu2 %751 }
  0xb0   : > { %7058 = vst [vmem:[#allocation22_spill] sm:$0xff] %v4606_v54  ;;  %1076 = vperm.xlu0 %4109, %v4525_v9   ;;  %v4609_v55 = vpop.permute.xlu1 %721  ;;  %v4611_v59 = vpop.permute.xlu0 %670 }
  0xb1   : > { %7059 = vst [vmem:[#allocation23_spill] sm:$0xff] %v4611_v59 }
  0xb2   : > { %v4613_v60 = vpop.f32.mrf.mxu2  ;;  %v4615_v0 = vpop.f32.mrf.mxu3 }
  0xb7   : > { %1079 = vperm.xlu1 %4110, %v4522_v8   ;;  %1082 = vperm.xlu2 %4108, %v4519_v7   ;;  %v4619_v1 = vpop.permute.xlu2 %760 }
  0xb8   : > { %7060 = vst [vmem:[#allocation24_spill] sm:$0xff] %v4619_v1  ;;  %1085 = vperm.xlu0 %4109, %v4536_v16   ;;  %v4622_v5 = vpop.permute.xlu1 %730  ;;  %v4624_v6 = vpop.permute.xlu0 %727 }
  0xb9   : > { %7061 = vst [vmem:[#allocation25_spill] sm:$0xff] %v4622_v5  ;;  %v4626_v13 = vpop.f32.mrf.mxu0 }
  0xba   : > { %7062 = vst [vmem:[#allocation26_spill] sm:$0xff] %v4626_v13  ;;  %v4628_v14 = vpop.f32.mrf.mxu2  ;;  %v4630_v17 = vpop.f32.mrf.mxu3 }
  0xbb   : > { %v4632_v18 = vpop.f32.mrf.mxu1 }
  0xbc   : > { %7063 = vst [vmem:[#allocation27_spill] sm:$0xff] %v4632_v18 }
  0xbf   : > { %1088 = vperm.xlu1 %4110, %v4533_v15   ;;  %4111 = vset.pattern.permute.xlu2 %v4223_v19 }
  0xc0   : > { %4112 = vset.pattern.permute.xlu0 %v4223_v19  ;;  %v4635_v24 = vpop.permute.xlu1 %739  ;;  %1285 = vperm.xlu2 %4111, %v4325_v12   ;;  %v4638_v59 = vpop.permute.xlu0 %736 }
  0xc1   : > { %7064 = vst [vmem:[#allocation28_spill] sm:$0xff] %v4635_v24  ;;  %1288 = vperm.xlu0 %4112, %v4358_v22   ;;  %v4641_v30 = vpop.permute.xlu2 %947  ;;  %v4643_v49 = vpop.f32.mrf.mxu0 }
  0xc2   : > { %7065 = vst [vmem:[#allocation29_spill] sm:$0xff] %v4638_v59  ;;  %v4645_v1 = vpop.f32.mrf.mxu2  ;;  %v4647_v50 = vpop.f32.mrf.mxu3 }
  0xc3   : > { %v4649_v28 = vpop.f32.mrf.mxu1 }
  0xc7   : > { %4113 = vset.pattern.permute.xlu1 %v4223_v19 }
  0xc8   : > { %1291 = vperm.xlu1 %4113, %v4322_v11   ;;  %v4652_v40 = vpop.permute.xlu1 %748  ;;  %1294 = vperm.xlu2 %4111, %v4355_v21   ;;  %v4655_v54 = vpop.permute.xlu0 %745 }
  0xc9   : > { %7066 = vst [vmem:[#allocation30_spill] sm:$0xff] %v4652_v40  ;;  %1303 = vperm.xlu0 %4112, %v4394_v33   ;;  %v4658_v41 = vpop.permute.xlu2 %956  ;;  %v4660_v26 = vpop.f32.mrf.mxu0 }
  0xca   : > { %7067 = vst [vmem:[#allocation31_spill] sm:$0xff] %v4655_v54  ;;  %v4662_v37 = vpop.f32.mrf.mxu2  ;;  %v4664_v45 = vpop.f32.mrf.mxu3 }
  0xcb   : > { %7068 = vst [vmem:[#allocation32_spill] sm:$0xff] %v4658_v41  ;;  %v4666_v38 = vpop.f32.mrf.mxu1 }
  0xd0   : > { %1297 = vperm.xlu1 %4113, %v4319_v10   ;;  %v4669_v19 = vpop.permute.xlu1 %757  ;;  %1300 = vperm.xlu2 %4111, %v4352_v20   ;;  %v4672_v40 = vpop.permute.xlu0 %754 }
  0xd1   : > { %7069 = vst [vmem:[#allocation33_spill] sm:$0xff] %v4669_v19  ;;  %1312 = vperm.xlu0 %4112, %v4436_v44   ;;  %v4675_v54 = vpop.permute.xlu2 %962  ;;  %v4677_v24 = vpop.f32.mrf.mxu0 }
  0xd2   : > { %7070 = vst [vmem:[#allocation34_spill] sm:$0xff] %v4672_v40  ;;  %v4679_v25 = vpop.f32.mrf.mxu2  ;;  %v4681_v59 = vpop.f32.mrf.mxu3 }
  0xd3   : > { %7071 = vst [vmem:[#allocation35_spill] sm:$0xff] %v4675_v54  ;;  %v4683_v23 = vpop.f32.mrf.mxu1 }
  0xd8   : > { %1306 = vperm.xlu1 %4113, %v4391_v32   ;;  %v4686_v10 = vpop.permute.xlu1 %766  ;;  %1309 = vperm.xlu2 %4111, %v4388_v31   ;;  %v4689_v20 = vpop.permute.xlu0 %763 }
  0xd9   : > { %7072 = vst [vmem:[#allocation36_spill] sm:$0xff] %v4686_v10  ;;  %1321 = vperm.xlu0 %4112, %v4449_v48   ;;  %v4692_v19 = vpop.permute.xlu2 %971  ;;  %v4698_v39 = vpop.f32.mrf.mxu0 }
  0xda   : > { %7073 = vst [vmem:[#allocation37_spill] sm:$0xff] %v4689_v20  ;;  %v4694_v40 = vpop.f32.mrf.mxu2  ;;  %v4696_v54 = vpop.f32.mrf.mxu3 }
  0xdb   : > { %7074 = vst [vmem:[#allocation38_spill] sm:$0xff] %v4692_v19  ;;  %v4700_v41 = vpop.f32.mrf.mxu1 }
  0xe0   : > { %1315 = vperm.xlu1 %4113, %v4433_v43   ;;  %1318 = vperm.xlu2 %4111, %v4430_v42  }
  0xe1   : > { %1330 = vperm.xlu0 %4112, %v4469_v53   ;;  %v4705_v31 = vpop.permute.xlu1 %953  ;;  %v4707_v32 = vpop.permute.xlu2 %980 }
  0xe2   : > { %7075 = vst [vmem:[#allocation39_spill] sm:$0xff] %v4707_v32  ;;  %v4709_v10 = vpop.permute.xlu0 %950  ;;  %v4711_v20 = vpop.f32.mrf.mxu2 }
  0xe3   : > { %v4713_v19 = vpop.f32.mrf.mxu3  ;;  %v4715_v48 = vpop.f32.mrf.mxu0 }
  0xe4   : > { %v4717_v34 = vpop.f32.mrf.mxu1 }
  0xe8   : > { %1324 = vperm.xlu1 %4113, %v4446_v47   ;;  %1327 = vperm.xlu2 %4111, %v4443_v46  }
  0xe9   : > { %1387 = vperm.xlu0 %4112, %v4483_v58   ;;  %v4722_v42 = vpop.permute.xlu1 %959  ;;  %v4724_v43 = vpop.permute.xlu2 %989 }
  0xea   : > { %7076 = vst [vmem:[#allocation40_spill] sm:$0xff] %v4724_v43  ;;  %v4726_v32 = vpop.permute.xlu0 %965  ;;  %v4728_v53 = vpop.f32.mrf.mxu2 }
  0xeb   : > { %7077 = vst [vmem:[#allocation41_spill] sm:$0xff] %v4726_v32  ;;  %v4730_v5 = vpop.f32.mrf.mxu3  ;;  %881 = vmatpush.msrb.mxu3 %v4728_v53  ;;  %1203 = vmatpush.msrb.mxu1 %v4728_v53  ;;  %v4744_v46 = vpop.f32.mrf.mxu0 }
  0xec   : > { %816 = vmatpush.msrb.mxu2 %v4730_v5  ;;  %1138 = vmatpush.msrb.mxu0 %v4730_v5  ;;  %v4746_v47 = vpop.f32.mrf.mxu1 }
  0xed   : > { %882 = vmatpush.msrb.mxu3 %v4711_v20  ;;  %1204 = vmatpush.msrb.mxu1 %v4711_v20 }
  0xee   : > { %817 = vmatpush.msrb.mxu2 %v4713_v19  ;;  %1139 = vmatpush.msrb.mxu0 %v4713_v19 }
  0xef   : > { %883 = vmatpush.msrb.mxu3 %v4694_v40  ;;  %1205 = vmatpush.msrb.mxu1 %v4694_v40 }
  0xf0   : > { %818 = vmatpush.msrb.mxu2 %v4696_v54  ;;  %1140 = vmatpush.msrb.mxu0 %v4696_v54 }
  0xf1   : > { %1381 = vperm.xlu1 %4113, %v4466_v52   ;;  %1384 = vperm.xlu2 %4111, %v4463_v51   ;;  %v4750_v43 = vpop.permute.xlu1 %968  ;;  %v4752_v32 = vpop.permute.xlu2 %1046 }
  0xf2   : > { %7078 = vst [vmem:[#allocation42_spill] sm:$0xff] %v4750_v43  ;;  %1396 = vperm.xlu0 %4112, %v4497_v63   ;;  %v4755_v58 = vpop.permute.xlu0 %974  ;;  %819 = vmatpush.msrb.mxu2 %v4681_v59 }
  0xf3   : > { %7079 = vst [vmem:[#allocation43_spill] sm:$0xff] %v4755_v58  ;;  %884 = vmatpush.msrb.mxu3 %v4679_v25  ;;  %1141 = vmatpush.msrb.mxu0 %v4681_v59  ;;  %v4782_v43 = vpop.f32.mrf.mxu0 }
  0xf4   : > { %1206 = vmatpush.msrb.mxu1 %v4679_v25  ;;  %820 = vmatpush.msrb.mxu2 %v4664_v45  ;;  %v4784_v63 = vpop.f32.mrf.mxu1 }
  0xf5   : > { %885 = vmatpush.msrb.mxu3 %v4662_v37  ;;  %1142 = vmatpush.msrb.mxu0 %v4664_v45 }
  0xf6   : > { %1207 = vmatpush.msrb.mxu1 %v4662_v37  ;;  %821 = vmatpush.msrb.mxu2 %v4647_v50 }
  0xf7   : > { %886 = vmatpush.msrb.mxu3 %v4645_v1  ;;  %1143 = vmatpush.msrb.mxu0 %v4647_v50 }
  0xf8   : > { %1208 = vmatpush.msrb.mxu1 %v4645_v1  ;;  %822 = vmatpush.msrb.mxu2 %v4630_v17 }
  0xf9   : > { %887 = vmatpush.msrb.mxu3 %v4628_v14  ;;  %1144 = vmatpush.msrb.mxu0 %v4630_v17  ;;  %v4772_v51 = vpop.permute.xlu1 %977  ;;  %v4774_v52 = vpop.permute.xlu2 %1055 }
  0xfa   : > { %1209 = vmatpush.msrb.mxu1 %v4628_v14  ;;  %1390 = vperm.xlu1 %4113, %v4480_v57   ;;  %v4778_v58 = vpop.permute.xlu0 %983 }
  0xfb   : > { %7080 = vst [vmem:[#allocation44_spill] sm:$0xff] %v4778_v58  ;;  %1393 = vperm.xlu2 %4111, %v4477_v56   ;;  %1405 = vperm.xlu0 %4112, %v4511_v4  }
  0xfc   : > { %823 = vmatpush.msrb.mxu2 %v4615_v0  ;;  %888 = vmatpush.msrb.mxu3 %v4613_v60 }
  0xfd   : > { %1145 = vmatpush.msrb.mxu0 %v4615_v0  ;;  %1210 = vmatpush.msrb.mxu1 %v4613_v60 }
  0xfe   : > { %824 = vmatpush.msrb.mxu2 %v4784_v63  ;;  %889 = vmatpush.msrb.mxu3 %v4782_v43 }
  0xff   : > { %1146 = vmatpush.msrb.mxu0 %v4784_v63  ;;  %1211 = vmatpush.msrb.mxu1 %v4782_v43 }
 0x100   : > { %825 = vmatpush.msrb.mxu2 %v4746_v47  ;;  %890 = vmatpush.msrb.mxu3 %v4744_v46 }
 0x101   : > { %1147 = vmatpush.msrb.mxu0 %v4746_v47  ;;  %1212 = vmatpush.msrb.mxu1 %v4744_v46  ;;  %v4798_v56 = vpop.permute.xlu1 %986  ;;  %v4800_v57 = vpop.permute.xlu2 %1064 }
 0x102   : > { %7081 = vst [vmem:[#allocation45_spill] sm:$0xff] %v4798_v56  ;;  %826 = vmatpush.msrb.mxu2 %v4717_v34  ;;  %891 = vmatpush.msrb.mxu3 %v4715_v48  ;;  %v4804_v58 = vpop.permute.xlu0 %992 }
 0x103   : > { %7082 = vst [vmem:[#allocation46_spill] sm:$0xff] %v4804_v58  ;;  %1148 = vmatpush.msrb.mxu0 %v4717_v34  ;;  %1213 = vmatpush.msrb.mxu1 %v4715_v48  ;;  %v622_v58 = vlaneseq }
 0x104   : > { %1399 = vperm.xlu1 %4113, %v4494_v62   ;;  %1402 = vperm.xlu2 %4111, %v4491_v61  }
 0x105   : > { %1414 = vperm.xlu0 %4112, %v4525_v9   ;;  %827 = vmatpush.msrb.mxu2 %v4700_v41 }
 0x106   : > { %892 = vmatpush.msrb.mxu3 %v4698_v39  ;;  %1149 = vmatpush.msrb.mxu0 %v4700_v41 }
 0x107   : > { %1214 = vmatpush.msrb.mxu1 %v4698_v39  ;;  %828 = vmatpush.msrb.mxu2 %v4683_v23 }
 0x108   : > { %893 = vmatpush.msrb.mxu3 %v4677_v24  ;;  %1150 = vmatpush.msrb.mxu0 %v4683_v23 }
 0x109   : > { %1215 = vmatpush.msrb.mxu1 %v4677_v24  ;;  %829 = vmatpush.msrb.mxu2 %v4666_v38  ;;  %v1044_v61 = vpop.permute.xlu1 %1043  ;;  %v4820_v62 = vpop.permute.xlu2 %1073 }
 0x10a   : > { %7083 = vst [vmem:[#allocation47_spill] sm:$0xff] %v4820_v62  ;;  %894 = vmatpush.msrb.mxu3 %v4660_v26  ;;  %1151 = vmatpush.msrb.mxu0 %v4666_v38  ;;  %v4824_v56 = vpop.permute.xlu0 %1049  ;;  %v4832_v62 = vand.u32 127, %v622_v58  ;;  %v6996_v58 = vmov 1.0  }
 0x10b   : > { %1216 = vmatpush.msrb.mxu1 %v4660_v26  ;;  %830 = vmatpush.msrb.mxu2 %v4649_v28 }
 0x10c   : > { %895 = vmatpush.msrb.mxu3 %v4643_v49  ;;  %1152 = vmatpush.msrb.mxu0 %v4649_v28  ;;  %vm672_vm0 = vcmp.eq.s32.totalorder %v4565_v29, %v4832_v62  ;;  %vm768_vm1 = vcmp.eq.s32.totalorder %v4609_v55, %v4832_v62  ;;  %vm994_vm2 = vcmp.eq.s32.totalorder %v4641_v30, %v4832_v62  ;;  %v4225_v30 = vmov 3  }
 0x10d   : > { %1217 = vmatpush.msrb.mxu1 %v4643_v49  ;;  %1408 = vperm.xlu1 %4113, %v4508_v3   ;;  %vm1090_vm3 = vcmp.eq.s32.totalorder %v1044_v61, %v4832_v62  ;;  %vm995_vm4 = vcmp.eq.s32.totalorder %v4709_v10, %v4832_v62  ;;  %vm769_vm5 = vcmp.eq.s32.totalorder %v4579_v36, %v4832_v62  ;;  %v7086_v36 = vld [vmem:[#allocation13_spill] sm:$0xff] }
 0x10e   : > { %1411 = vperm.xlu2 %4111, %v4505_v2   ;;  %1423 = vperm.xlu0 %4112, %v4536_v16   ;;  %vm673_vm6 = vcmp.eq.s32.totalorder %v4575_v35, %v4832_v62  ;;  %vm1091_vm7 = vcmp.eq.s32.totalorder %v4752_v32, %v4832_v62  ;;  %vm770_vm8 = vcmp.eq.s32.totalorder %v4624_v6, %v4832_v62  ;;  %v7087_v6 = vld [vmem:[#allocation32_spill] sm:$0xff] }
 0x10f   : > { %831 = vmatpush.msrb.mxu2 %v4632_v18  ;;  %896 = vmatpush.msrb.mxu3 %v4626_v13  ;;  %vm674_vm9 = vcmp.eq.s32.totalorder %v4559_v27, %v4832_v62  ;;  %vm996_vm10 = vcmp.eq.s32.totalorder %v4705_v31, %v4832_v62  ;;  %vm1092_vm11 = vcmp.eq.s32.totalorder %v4824_v56, %v4832_v62  ;;  %v7085_v27 = vld [vmem:[#allocation25_spill] sm:$0xff]  ;;  %v7089_v56 = vld [vmem:[#allocation4_spill] sm:$0xff] }
 0x110   : > { %1153 = vmatpush.msrb.mxu0 %v4632_v18  ;;  %1218 = vmatpush.msrb.mxu1 %v4626_v13  ;;  %vm771_vm12 = vcmp.eq.s32.totalorder %v7085_v27, %v4832_v62  ;;  %vm675_vm13 = vcmp.eq.s32.totalorder %v7086_v36, %v4832_v62  ;;  %vm997_vm14 = vcmp.eq.s32.totalorder %v7087_v6, %v4832_v62  ;;  %v4995_v31 = vld [vmem:[%s4313_s20 + $0x28] sm:$0xff]  ;;  %v5042_v6 = vld [vmem:[%s4313_s20 + $0x40] sm:$0xff] }
 0x111   : > { %3554 = vmatmul.msk.f32.vlgmr.msrb.gmra.mxu2 %vm768_vm1, %v6996_v58  ;;  %3570 = vmatmul.msk.f32.vlgmr.msrb.gmra.mxu3 %vm672_vm0, %v6996_v58  ;;  %v4849_v2 = vpop.permute.xlu1 %1052  ;;  %v4857_v16 = vpop.permute.xlu2 %1082 }
 0x112   : > { %3634 = vmatmul.msk.f32.vlgmr.msrb.gmra.mxu1 %vm994_vm2, %v6996_v58  ;;  %1476 = vmatpush.msra.mxu2 %v4730_v5  ;;  %v4853_v3 = vpop.permute.xlu0 %1058  ;;  %vm1093_vm15 = vcmp.eq.s32.totalorder %v4849_v2, %v4832_v62  ;;  %v7091_v2 = vld [vmem:[#allocation16_spill] sm:$0xff]  ;;  %vm998_vm2 = vcmp.eq.s32.totalorder %v4722_v42, %v4832_v62 }
 0x113   : > { %1541 = vmatpush.msra.mxu3 %v4728_v53  ;;  %1814 = vmatpush.msra.mxu0 %v4730_v5  ;;  %vm772_vm0 = vcmp.eq.s32.totalorder %v7091_v2, %v4832_v62  ;;  %v7097_v2 = vld [vmem:[#allocation29_spill] sm:$0xff] }
 0x114   : > { %1879 = vmatpush.msra.mxu1 %v4728_v53  ;;  %3618 = vmatmul.msk.f32.vlgmr.msrb.gmra.mxu0 %vm1090_vm3, %v6996_v58  ;;  %vm1094_vm3 = vcmp.eq.s32.totalorder %v4774_v52, %v4832_v62  ;;  %v5036_v52 = vld [vmem:[%s4313_s20 + $0x38] sm:$0xff] }
 0x115   : > { %1477 = vmatpush.msra.mxu2 %v4713_v19  ;;  %1542 = vmatpush.msra.mxu3 %v4711_v20 }
 0x116   : > { %1815 = vmatpush.msra.mxu0 %v4713_v19  ;;  %1880 = vmatpush.msra.mxu1 %v4711_v20 }
 0x117   : > { %1478 = vmatpush.msra.mxu2 %v4696_v54  ;;  %1543 = vmatpush.msra.mxu3 %v4694_v40 }
 0x118   : > { %1816 = vmatpush.msra.mxu0 %v4696_v54  ;;  %1881 = vmatpush.msra.mxu1 %v4694_v40 }
 0x119   : > { %1417 = vperm.xlu1 %4113, %v4522_v8   ;;  %1420 = vperm.xlu2 %4111, %v4519_v7   ;;  %v4871_v29 = vpop.permute.xlu1 %1061 }
 0x11a   : > { %4115 = vset.pattern.permute.xlu0 %v4225_v30  ;;  %1479 = vmatpush.msra.mxu2 %v4681_v59  ;;  %v4874_v55 = vpop.permute.xlu0 %1067  ;;  %v4888_v7 = vpop.permute.xlu2 %1285 }
 0x11b   : > { %1544 = vmatpush.msra.mxu3 %v4679_v25  ;;  %1817 = vmatpush.msra.mxu0 %v4681_v59 }
 0x11c   : > { %1882 = vmatpush.msra.mxu1 %v4679_v25  ;;  %1626 = vperm.xlu0 %4115, %v4358_v22  }
 0x11d   : > { %3555 = vmatmul.msk.f32.gmra.mxu2 %vm769_vm5, %v6996_v58  ;;  %3571 = vmatmul.msk.f32.gmra.mxu3 %vm673_vm6, %v6996_v58 }
 0x11e   : > { %3635 = vmatmul.msk.f32.gmra.mxu1 %vm995_vm4, %v6996_v58  ;;  %1480 = vmatpush.msra.mxu2 %v4664_v45  ;;  %vm773_vm4 = vcmp.eq.s32.totalorder %v7097_v2, %v4832_v62 }
 0x11f   : > { %1545 = vmatpush.msra.mxu3 %v4662_v37  ;;  %1818 = vmatpush.msra.mxu0 %v4664_v45 }
 0x120   : > { %1883 = vmatpush.msra.mxu1 %v4662_v37  ;;  %3619 = vmatmul.msk.f32.gmra.mxu0 %vm1091_vm7, %v6996_v58  ;;  %vm1095_vm7 = vcmp.eq.s32.totalorder %v4853_v3, %v4832_v62 }
 0x121   : > { %1481 = vmatpush.msra.mxu2 %v4647_v50  ;;  %1546 = vmatpush.msra.mxu3 %v4645_v1  ;;  %v4900_v22 = vpop.permute.xlu1 %1070 }
 0x122   : > { %1819 = vmatpush.msra.mxu0 %v4647_v50  ;;  %1884 = vmatpush.msra.mxu1 %v4645_v1  ;;  %v4904_v8 = vpop.permute.xlu0 %1076  ;;  %v4915_v35 = vpop.permute.xlu2 %1294 }
 0x123   : > { %1482 = vmatpush.msra.mxu2 %v4630_v17  ;;  %1547 = vmatpush.msra.mxu3 %v4628_v14 }
 0x124   : > { %1820 = vmatpush.msra.mxu0 %v4630_v17  ;;  %1885 = vmatpush.msra.mxu1 %v4628_v14 }
 0x125   : > { %1426 = vperm.xlu1 %4113, %v4533_v15   ;;  %4114 = vset.pattern.permute.xlu2 %v4225_v30 }
 0x126   : > { %1483 = vmatpush.msra.mxu2 %v4615_v0  ;;  %1548 = vmatpush.msra.mxu3 %v4613_v60 }
 0x127   : > { %1821 = vmatpush.msra.mxu0 %v4615_v0  ;;  %1886 = vmatpush.msra.mxu1 %v4613_v60 }
 0x128   : > { %1623 = vperm.xlu2 %4114, %v4325_v12   ;;  %1641 = vperm.xlu0 %4115, %v4394_v33  }
 0x129   : > { %3556 = vmatmul.msk.f32.gmra.mxu2 %vm770_vm8, %v6996_v58  ;;  %3572 = vmatmul.msk.f32.gmra.mxu3 %vm674_vm9, %v6996_v58  ;;  %v4933_v12 = vpop.permute.xlu1 %1079 }
 0x12a   : > { %3636 = vmatmul.msk.f32.gmra.mxu1 %vm996_vm10, %v6996_v58  ;;  %1484 = vmatpush.msra.mxu2 %v4784_v63  ;;  %v4937_v33 = vpop.permute.xlu0 %1085  ;;  %v4948_v15 = vpop.permute.xlu2 %1300 }
 0x12b   : > { %1549 = vmatpush.msra.mxu3 %v4782_v43  ;;  %1822 = vmatpush.msra.mxu0 %v4784_v63  ;;  %7084 = vst [vmem:[#allocation48_spill] sm:$0xff] %v4948_v15 }
 0x12c   : > { %1887 = vmatpush.msra.mxu1 %v4782_v43  ;;  %3620 = vmatmul.msk.f32.gmra.mxu0 %vm1092_vm11, %v6996_v58  ;;  %vm1096_vm11 = vcmp.eq.s32.totalorder %v4871_v29, %v4832_v62 }
 0x12d   : > { %1485 = vmatpush.msra.mxu2 %v4746_v47  ;;  %1550 = vmatpush.msra.mxu3 %v4744_v46 }
 0x12e   : > { %1823 = vmatpush.msra.mxu0 %v4746_v47  ;;  %1888 = vmatpush.msra.mxu1 %v4744_v46 }
 0x12f   : > { %1486 = vmatpush.msra.mxu2 %v4717_v34  ;;  %1551 = vmatpush.msra.mxu3 %v4715_v48 }
 0x130   : > { %1824 = vmatpush.msra.mxu0 %v4717_v34  ;;  %1889 = vmatpush.msra.mxu1 %v4715_v48 }
 0x131   : > { %4116 = vset.pattern.permute.xlu1 %v4225_v30  ;;  %1487 = vmatpush.msra.mxu2 %v4700_v41  ;;  %v4964_v10 = vpop.permute.xlu1 %1088  ;;  %v7092_v30 = vld [vmem:[#allocation8_spill] sm:$0xff] }
 0x132   : > { %1552 = vmatpush.msra.mxu3 %v4698_v39  ;;  %1825 = vmatpush.msra.mxu0 %v4700_v41  ;;  %vm676_vm1 = vcmp.eq.s32.totalorder %v7092_v30, %v4832_v62  ;;  %v7098_v30 = vld [vmem:[#allocation9_spill] sm:$0xff] }
 0x133   : > { %1890 = vmatpush.msra.mxu1 %v4698_v39  ;;  %1629 = vperm.xlu1 %4116, %v4322_v11   ;;  %v4968_v11 = vpop.permute.xlu0 %1288  ;;  %vm677_vm5 = vcmp.eq.s32.totalorder %v7098_v30, %v4832_v62  ;;  %v5081_v30 = vld [vmem:[%s4313_s20 + $0x50] sm:$0xff] }
 0x134   : > { %1632 = vperm.xlu2 %4114, %v4355_v21   ;;  %1650 = vperm.xlu0 %4115, %v4436_v44   ;;  %v4982_v21 = vpop.permute.xlu2 %1309  ;;  %v4991_v44 = vld [vmem:[%s4313_s20 + $0x20] sm:$0xff] }
 0x135   : > { %3557 = vmatmul.msk.f32.gmra.mxu2 %vm771_vm12, %v6996_v58  ;;  %3573 = vmatmul.msk.f32.gmra.mxu3 %vm675_vm13, %v6996_v58  ;;  %7088 = vst [vmem:[#allocation25_spill] sm:$0xff] %v4982_v21  ;;  %v7107_v21 = vld [vmem:[#allocation41_spill] sm:$0xff] }
 0x136   : > { %3637 = vmatmul.msk.f32.gmra.mxu1 %vm997_vm14, %v6996_v58  ;;  %1488 = vmatpush.msra.mxu2 %v4683_v23  ;;  %vm1000_vm10 = vcmp.eq.s32.totalorder %v7107_v21, %v4832_v62 }
 0x137   : > { %1553 = vmatpush.msra.mxu3 %v4677_v24  ;;  %1826 = vmatpush.msra.mxu0 %v4683_v23 }
 0x138   : > { %1891 = vmatpush.msra.mxu1 %v4677_v24  ;;  %3621 = vmatmul.msk.f32.gmra.mxu0 %vm1093_vm15, %v6996_v58  ;;  %vm1097_vm15 = vcmp.eq.s32.totalorder %v4800_v57, %v4832_v62  ;;  %v5167_v57 = vld [vmem:[%s4459_s15] sm:$0xff] }
 0x139   : > { %1489 = vmatpush.msra.mxu2 %v4666_v38  ;;  %1554 = vmatpush.msra.mxu3 %v4660_v26 }
 0x13a   : > { %1827 = vmatpush.msra.mxu0 %v4666_v38  ;;  %1892 = vmatpush.msra.mxu1 %v4660_v26  ;;  %v4998_v32 = vpop.permute.xlu1 %1291 }
 0x13b   : > { %1490 = vmatpush.msra.mxu2 %v4649_v28  ;;  %1555 = vmatpush.msra.mxu3 %v4643_v49  ;;  %v5002_v61 = vpop.permute.xlu0 %1303 }
 0x13c   : > { %1828 = vmatpush.msra.mxu0 %v4649_v28  ;;  %1893 = vmatpush.msra.mxu1 %v4643_v49  ;;  %7090 = vst [vmem:[#allocation13_spill] sm:$0xff] %v5002_v61  ;;  %v5022_v27 = vpop.permute.xlu2 %1318  ;;  %v7113_v61 = vld [vmem:[#allocation14_spill] sm:$0xff] }
 0x13d   : > { %1491 = vmatpush.msra.mxu2 %v4632_v18  ;;  %1556 = vmatpush.msra.mxu3 %v4626_v13  ;;  %7093 = vst [vmem:[#allocation32_spill] sm:$0xff] %v5022_v27  ;;  %vm679_vm13 = vcmp.eq.s32.totalorder %v7113_v61, %v4832_v62 }
 0x13e   : > { %1829 = vmatpush.msra.mxu0 %v4632_v18  ;;  %1894 = vmatpush.msra.mxu1 %v4626_v13 }
 0x13f   : > { %1635 = vperm.xlu1 %4116, %v4991_v44   ;;  %1638 = vperm.xlu2 %4114, %v4995_v31  }
 0x140   : > { %1659 = vperm.xlu0 %4115, %v7089_v56   ;;  %2152 = vmatpush.msrb.mxu2 %v4730_v5  ;;  %v7096_v56 = vld [vmem:[#allocation5_spill] sm:$0xff] }
 0x141   : > { %2217 = vmatpush.msrb.mxu3 %v4728_v53  ;;  %2490 = vmatpush.msrb.mxu0 %v4730_v5 }
 0x142   : > { %2555 = vmatpush.msrb.mxu1 %v4728_v53  ;;  %3558 = vmatmul.msk.f32.gmra.mxu2 %vm772_vm0, %v6996_v58  ;;  %v5032_v42 = vpop.permute.xlu1 %1297 }
 0x143   : > { %3574 = vmatmul.msk.f32.gmra.mxu3 %vm676_vm1, %v6996_v58  ;;  %3638 = vmatmul.msk.f32.gmra.mxu1 %vm998_vm2, %v6996_v58  ;;  %7094 = vst [vmem:[#allocation4_spill] sm:$0xff] %v5032_v42  ;;  %v5039_v36 = vpop.permute.xlu0 %1312 }
 0x144   : > { %3622 = vmatmul.msk.f32.gmra.mxu0 %vm1094_vm3, %v6996_v58  ;;  %2153 = vmatpush.msrb.mxu2 %v4713_v19  ;;  %7095 = vst [vmem:[#allocation16_spill] sm:$0xff] %v5039_v36  ;;  %v5062_v27 = vpop.permute.xlu2 %1327  ;;  %v7106_v36 = vld [vmem:[#allocation15_spill] sm:$0xff]  ;;  %vm1098_vm3 = vcmp.eq.s32.totalorder %v4874_v55, %v4832_v62  ;;  %v7122_v55 = vld [vmem:[#allocation18_spill] sm:$0xff] }
 0x145   : > { %2218 = vmatpush.msrb.mxu3 %v4711_v20  ;;  %2491 = vmatpush.msrb.mxu0 %v4713_v19  ;;  %7100 = vst [vmem:[#allocation8_spill] sm:$0xff] %v5062_v27  ;;  %v7104_v27 = vld [vmem:[#allocation28_spill] sm:$0xff]  ;;  %vm678_vm9 = vcmp.eq.s32.totalorder %v7106_v36, %v4832_v62  ;;  %v5128_v36 = vld [vmem:[%s4313_s20 + $0x70] sm:$0xff] }
 0x146   : > { %2556 = vmatpush.msrb.mxu1 %v4711_v20  ;;  %2154 = vmatpush.msrb.mxu2 %v4696_v54  ;;  %vm774_vm8 = vcmp.eq.s32.totalorder %v7104_v27, %v4832_v62  ;;  %v5124_v27 = vld [vmem:[%s4313_s20 + $0x68] sm:$0xff] }
 0x147   : > { %2219 = vmatpush.msrb.mxu3 %v4694_v40  ;;  %2492 = vmatpush.msrb.mxu0 %v4696_v54 }
 0x148   : > { %2557 = vmatpush.msrb.mxu1 %v4694_v40  ;;  %2155 = vmatpush.msrb.mxu2 %v4681_v59 }
 0x149   : > { %2220 = vmatpush.msrb.mxu3 %v4679_v25  ;;  %2493 = vmatpush.msrb.mxu0 %v4681_v59 }
 0x14a   : > { %2558 = vmatpush.msrb.mxu1 %v4679_v25  ;;  %1644 = vperm.xlu1 %4116, %v5036_v52   ;;  %v5072_v3 = vpop.permute.xlu1 %1306 }
 0x14b   : > { %1647 = vperm.xlu2 %4114, %v5042_v6   ;;  %1668 = vperm.xlu0 %4115, %v7096_v56   ;;  %v7099_v56 = vld [vmem:[#allocation35_spill] sm:$0xff]  ;;  %7101 = vst [vmem:[#allocation5_spill] sm:$0xff] %v5072_v3  ;;  %v5076_v2 = vpop.permute.xlu0 %1321 }
 0x14c   : > { %2156 = vmatpush.msrb.mxu2 %v4664_v45  ;;  %2221 = vmatpush.msrb.mxu3 %v4662_v37  ;;  %vm999_vm6 = vcmp.eq.s32.totalorder %v7099_v56, %v4832_v62  ;;  %7102 = vst [vmem:[#allocation29_spill] sm:$0xff] %v5076_v2  ;;  %v5085_v56 = vld [vmem:[%s4313_s20 + $0x58] sm:$0xff]  ;;  %v7105_v2 = vmov 1.0  }
 0x14d   : > { %2494 = vmatpush.msrb.mxu0 %v4664_v45  ;;  %2559 = vmatpush.msrb.mxu1 %v4662_v37  ;;  %v7112_v3 = vld [vmem:[#allocation19_spill] sm:$0xff] }
 0x14e   : > { %3559 = vmatmul.msk.f32.gmra.mxu2 %vm773_vm4, %v6996_v58  ;;  %3575 = vmatmul.msk.f32.gmra.mxu3 %vm677_vm5, %v6996_v58  ;;  %vm775_vm12 = vcmp.eq.s32.totalorder %v7112_v3, %v4832_v62  ;;  %vm681_vm5 = vcmp.eq.s32.totalorder %v7122_v55, %v4832_v62  ;;  %v5221_v55 = vld [vmem:[%s4459_s15 + $0x30] sm:$0xff] }
 0x14f   : > { %3639 = vmatmul.msk.f32.gmra.mxu1 %vm999_vm6, %v6996_v58  ;;  %3623 = vmatmul.msk.f32.gmra.mxu0 %vm1095_vm7, %v6996_v58  ;;  %v7103_v58 = vld [vmem:[#allocation6_spill] sm:$0xff]  ;;  %vm1099_vm7 = vcmp.eq.s32.totalorder %v4900_v22, %v4832_v62  ;;  %7126 = vst [vmem:[#allocation14_spill] sm:$0xff] %v5221_v55 }
 0x150   : > { %2157 = vmatpush.msrb.mxu2 %v4647_v50  ;;  %2222 = vmatpush.msrb.mxu3 %v4645_v1  ;;  %v7128_v22 = vld [vmem:[#allocation22_spill] sm:$0xff] }
 0x151   : > { %2495 = vmatpush.msrb.mxu0 %v4647_v50  ;;  %2560 = vmatpush.msrb.mxu1 %v4645_v1 }
 0x152   : > { %2158 = vmatpush.msrb.mxu2 %v4630_v17  ;;  %2223 = vmatpush.msrb.mxu3 %v4628_v14  ;;  %v5112_v21 = vpop.permute.xlu1 %1315 }
 0x153   : > { %2496 = vmatpush.msrb.mxu0 %v4630_v17  ;;  %2561 = vmatpush.msrb.mxu1 %v4628_v14  ;;  %7108 = vst [vmem:[#allocation9_spill] sm:$0xff] %v5112_v21  ;;  %v5116_v29 = vpop.permute.xlu0 %1330  ;;  %v7110_v21 = vld [vmem:[#allocation7_spill] sm:$0xff] }
 0x154   : > { %2159 = vmatpush.msrb.mxu2 %v4615_v0  ;;  %2224 = vmatpush.msrb.mxu3 %v4613_v60  ;;  %7109 = vst [vmem:[#allocation35_spill] sm:$0xff] %v5116_v29 }
 0x155   : > { %2497 = vmatpush.msrb.mxu0 %v4615_v0  ;;  %2562 = vmatpush.msrb.mxu1 %v4613_v60 }
 0x156   : > { %1653 = vperm.xlu1 %4116, %v5081_v30   ;;  %1656 = vperm.xlu2 %4114, %v5085_v56  }
 0x157   : > { %1725 = vperm.xlu0 %4115, %v7103_v58   ;;  %2160 = vmatpush.msrb.mxu2 %v4784_v63  ;;  %v5100_v58 = vpop.permute.xlu2 %1384 }
 0x158   : > { %2225 = vmatpush.msrb.mxu3 %v4782_v43  ;;  %2498 = vmatpush.msrb.mxu0 %v4784_v63 }
 0x159   : > { %2563 = vmatpush.msrb.mxu1 %v4782_v43  ;;  %3560 = vmatmul.msk.f32.gmra.mxu2 %vm774_vm8, %v7105_v2  ;;  %vm778_vm8 = vcmp.eq.s32.totalorder %v7128_v22, %v4832_v62 }
 0x15a   : > { %3576 = vmatmul.msk.f32.gmra.mxu3 %vm678_vm9, %v7105_v2  ;;  %3640 = vmatmul.msk.f32.gmra.mxu1 %vm1000_vm10, %v7105_v2  ;;  %v5152_v61 = vpop.permute.xlu1 %1324  ;;  %vm1004_vm10 = vcmp.eq.s32.totalorder %v4772_v51, %v4832_v62  ;;  %v7135_v51 = vld [vmem:[#allocation34_spill] sm:$0xff] }
 0x15b   : > { %3624 = vmatmul.msk.f32.gmra.mxu0 %vm1096_vm11, %v7105_v2  ;;  %2161 = vmatpush.msrb.mxu2 %v4746_v47  ;;  %7115 = vst [vmem:[#allocation28_spill] sm:$0xff] %v5152_v61  ;;  %v5156_v3 = vpop.permute.xlu0 %1387  ;;  %v7116_v61 = vld [vmem:[#allocation31_spill] sm:$0xff] }
 0x15c   : > { %2226 = vmatpush.msrb.mxu3 %v4744_v46  ;;  %2499 = vmatpush.msrb.mxu0 %v4746_v47  ;;  %vm776_vm0 = vcmp.eq.s32.totalorder %v7116_v61, %v4832_v62 }
 0x15d   : > { %2564 = vmatpush.msrb.mxu1 %v4744_v46  ;;  %2162 = vmatpush.msrb.mxu2 %v4717_v34 }
 0x15e   : > { %2227 = vmatpush.msrb.mxu3 %v4715_v48  ;;  %2500 = vmatpush.msrb.mxu0 %v4717_v34 }
 0x15f   : > { %2565 = vmatpush.msrb.mxu1 %v4715_v48  ;;  %2163 = vmatpush.msrb.mxu2 %v4700_v41  ;;  %v5134_v29 = vpop.permute.xlu2 %1393 }
 0x160   : > { %2228 = vmatpush.msrb.mxu3 %v4698_v39  ;;  %2501 = vmatpush.msrb.mxu0 %v4700_v41  ;;  %7111 = vst [vmem:[#allocation6_spill] sm:$0xff] %v5134_v29  ;;  %v7119_v29 = vld [vmem:[#allocation38_spill] sm:$0xff] }
 0x161   : > { %2566 = vmatpush.msrb.mxu1 %v4698_v39  ;;  %1662 = vperm.xlu1 %4116, %v5124_v27   ;;  %vm1002_vm2 = vcmp.eq.s32.totalorder %v7119_v29, %v4832_v62  ;;  %v7121_v29 = vld [vmem:[#allocation30_spill] sm:$0xff] }
 0x162   : > { %1665 = vperm.xlu2 %4114, %v5128_v36   ;;  %1734 = vperm.xlu0 %4115, %v7110_v21   ;;  %v7114_v21 = vld [vmem:[#allocation42_spill] sm:$0xff]  ;;  %vm777_vm4 = vcmp.eq.s32.totalorder %v7121_v29, %v4832_v62 }
 0x163   : > { %2164 = vmatpush.msrb.mxu2 %v4683_v23  ;;  %2229 = vmatpush.msrb.mxu3 %v4677_v24  ;;  %vm1001_vm14 = vcmp.eq.s32.totalorder %v7114_v21, %v4832_v62  ;;  %v5171_v21 = vld [vmem:[%s4459_s15 + $0x8] sm:$0xff]  ;;  %v5189_v61 = vpop.permute.xlu1 %1381 }
 0x164   : > { %2502 = vmatpush.msrb.mxu0 %v4683_v23  ;;  %2567 = vmatpush.msrb.mxu1 %v4677_v24 }
 0x165   : > { %3561 = vmatmul.msk.f32.gmra.mxu2 %vm775_vm12, %v7105_v2  ;;  %3577 = vmatmul.msk.f32.gmra.mxu3 %vm679_vm13, %v7105_v2  ;;  %vm779_vm12 = vcmp.eq.s32.totalorder %v7135_v51, %v4832_v62  ;;  %v7140_v51 = vld [vmem:[#allocation39_spill] sm:$0xff] }
 0x166   : > { %3641 = vmatmul.msk.f32.gmra.mxu1 %vm1001_vm14, %v7105_v2  ;;  %3625 = vmatmul.msk.f32.gmra.mxu0 %vm1097_vm15, %v7105_v2  ;;  %vm1005_vm14 = vcmp.eq.s32.totalorder %v7140_v51, %v4832_v62  ;;  %vm1101_vm15 = vcmp.eq.s32.totalorder %v4904_v8, %v4832_v62  ;;  %v7143_v51 = vld [vmem:[#allocation33_spill] sm:$0xff] }
 0x167   : > { %2165 = vmatpush.msrb.mxu2 %v4666_v38  ;;  %2230 = vmatpush.msrb.mxu3 %v4660_v26  ;;  %v5176_v15 = vpop.permute.xlu2 %1402  ;;  %v7144_v8 = vld [vmem:[#allocation21_spill] sm:$0xff] }
 0x168   : > { %2503 = vmatpush.msrb.mxu0 %v4666_v38  ;;  %2568 = vmatpush.msrb.mxu1 %v4660_v26  ;;  %7117 = vst [vmem:[#allocation15_spill] sm:$0xff] %v5176_v15  ;;  %v5194_v15 = vld [vmem:[%s4459_s15 + $0x18] sm:$0xff] }
 0x169   : > { %2166 = vmatpush.msrb.mxu2 %v4649_v28  ;;  %2231 = vmatpush.msrb.mxu3 %v4643_v49 }
 0x16a   : > { %2504 = vmatpush.msrb.mxu0 %v4649_v28  ;;  %2569 = vmatpush.msrb.mxu1 %v4643_v49 }
 0x16b   : > { %2167 = vmatpush.msrb.mxu2 %v4632_v18  ;;  %2232 = vmatpush.msrb.mxu3 %v4626_v13 }
 0x16c   : > { %2505 = vmatpush.msrb.mxu0 %v4632_v18  ;;  %2570 = vmatpush.msrb.mxu1 %v4626_v13  ;;  %v7118_v13 = vld [vmem:[#allocation10_spill] sm:$0xff] }
 0x16d   : > { %1719 = vperm.xlu1 %4116, %v5167_v57   ;;  %1722 = vperm.xlu2 %4114, %v5171_v21   ;;  %vm680_vm1 = vcmp.eq.s32.totalorder %v7118_v13, %v4832_v62  ;;  %v5198_v13 = vld [vmem:[%s4459_s15 + $0x20] sm:$0xff] }
 0x16e   : > { %1743 = vperm.xlu0 %4115, %v4511_v4   ;;  %3562 = vmatmul.msk.f32.gmra.mxu2 %vm776_vm0, %v7105_v2  ;;  %v5191_v4 = vpop.permute.xlu0 %1396  ;;  %vm780_vm0 = vcmp.eq.s32.totalorder %v7143_v51, %v4832_v62 }
 0x16f   : > { %3578 = vmatmul.msk.f32.gmra.mxu3 %vm680_vm1, %v7105_v2  ;;  %3642 = vmatmul.msk.f32.gmra.mxu1 %vm1002_vm2, %v7105_v2  ;;  %7120 = vst [vmem:[#allocation41_spill] sm:$0xff] %v5191_v4  ;;  %v7123_v4 = vld [vmem:[#allocation43_spill] sm:$0xff]  ;;  %v5213_v42 = vpop.permute.xlu2 %1411  ;;  %vm684_vm1 = vcmp.eq.s32.totalorder %v7144_v8, %v4832_v62 }
 0x170   : > { %3626 = vmatmul.msk.f32.gmra.mxu0 %vm1098_vm3, %v7105_v2  ;;  %vm1003_vm6 = vcmp.eq.s32.totalorder %v7123_v4, %v4832_v62  ;;  %7124 = vst [vmem:[#allocation7_spill] sm:$0xff] %v5213_v42  ;;  %v5225_v4 = vld [vmem:[%s4459_s15 + $0x38] sm:$0xff]  ;;  %v5231_v42 = vld [vmem:[%s4459_s15 + $0x70] sm:$0xff]  ;;  %vm1102_vm3 = vcmp.eq.s32.totalorder %v4933_v12, %v4832_v62  ;;  %v5313_v12 = vld [vmem:[%s4313_s20] sm:$0xff] }
 0x171   : > { %7127 = vst [vmem:[#allocation42_spill] sm:$0xff] %v5225_v4 }
 0x172   : > { %7129 = vst [vmem:[#allocation31_spill] sm:$0xff] %v5231_v42 }
 0x173   : > { %7151 = vst [vmem:[#allocation21_spill] sm:$0xff] %v5313_v12 }
 0x175   : > { %1728 = vperm.xlu1 %4116, %v5194_v15   ;;  %1731 = vperm.xlu2 %4114, %v5198_v13  }
 0x176   : > { %1752 = vperm.xlu0 %4115, %v4525_v9   ;;  %3563 = vmatmul.msk.f32.gmra.mxu2 %vm777_vm4, %v7105_v2  ;;  %v5216_v9 = vpop.permute.xlu1 %1390  ;;  %v5218_v29 = vpop.permute.xlu0 %1405 }
 0x177   : > { %3579 = vmatmul.msk.f32.gmra.mxu3 %vm681_vm5, %v7105_v2  ;;  %3643 = vmatmul.msk.f32.gmra.mxu1 %vm1003_vm6, %v7105_v2  ;;  %7125 = vst [vmem:[#allocation19_spill] sm:$0xff] %v5218_v29  ;;  %v7130_v29 = vld [vmem:[#allocation17_spill] sm:$0xff]  ;;  %v5244_v22 = vpop.permute.xlu2 %1420 }
 0x178   : > { %3627 = vmatmul.msk.f32.gmra.mxu0 %vm1099_vm7, %v7105_v2  ;;  %vm682_vm9 = vcmp.eq.s32.totalorder %v7130_v29, %v4832_v62  ;;  %7132 = vst [vmem:[#allocation10_spill] sm:$0xff] %v5244_v22  ;;  %v5251_v29 = vld [vmem:[%s4459_s15 + $0x50] sm:$0xff]  ;;  %v7137_v22 = vld [vmem:[#allocation11_spill] sm:$0xff]  ;;  %vm1103_vm7 = vcmp.eq.s32.totalorder %v4857_v16, %v4832_v62  ;;  %v7159_v16 = vld [vmem:[#allocation37_spill] sm:$0xff] }
 0x179   : > { %7134 = vst [vmem:[#allocation30_spill] sm:$0xff] %v5251_v29  ;;  %vm683_vm13 = vcmp.eq.s32.totalorder %v7137_v22, %v4832_v62 }
 0x17d   : > { %1737 = vperm.xlu1 %4116, %v5221_v55   ;;  %1740 = vperm.xlu2 %4114, %v5225_v4   ;;  %v7131_v4 = vld [vmem:[#allocation47_spill] sm:$0xff]  ;;  %v5247_v55 = vld [vmem:[%s4459_s15 + $0x48] sm:$0xff] }
 0x17e   : > { %1761 = vperm.xlu0 %4115, %v5231_v42   ;;  %3564 = vmatmul.msk.f32.gmra.mxu2 %vm778_vm8, %v7105_v2  ;;  %vm1100_vm11 = vcmp.eq.s32.totalorder %v7131_v4, %v4832_v62  ;;  %7133 = vst [vmem:[#allocation38_spill] sm:$0xff] %v5247_v55  ;;  %v5256_v42 = vpop.permute.xlu1 %1399  ;;  %v4226_v4 = vmov 4   ;;  %v5261_v18 = vpop.permute.xlu0 %1414  ;;  %vm782_vm8 = vcmp.eq.s32.totalorder %v7159_v16, %v4832_v62 }
 0x17f   : > { %3580 = vmatmul.msk.f32.gmra.mxu3 %vm682_vm9, %v7105_v2  ;;  %3644 = vmatmul.msk.f32.gmra.mxu1 %vm1004_vm10, %v7105_v2  ;;  %7136 = vst [vmem:[#allocation18_spill] sm:$0xff] %v5256_v42  ;;  %v5281_v42 = vld [vmem:[%s4459_s15 + $0x68] sm:$0xff] }
 0x180   : > { %3628 = vmatmul.msk.f32.gmra.mxu0 %vm1100_vm11, %v7105_v2  ;;  %7138 = vst [vmem:[#allocation43_spill] sm:$0xff] %v5261_v18  ;;  %v5277_v18 = vld [vmem:[%s4459_s15 + $0x60] sm:$0xff]  ;;  %vm1104_vm11 = vcmp.eq.s32.totalorder %v4937_v33, %v4832_v62  ;;  %v7167_v33 = vld [vmem:[#allocation23_spill] sm:$0xff] }
 0x181   : > { %7141 = vst [vmem:[#allocation17_spill] sm:$0xff] %v5277_v18 }
 0x182   : > { %v5274_v22 = vpop.permute.xlu2 %1623  ;;  %7142 = vst [vmem:[#allocation47_spill] sm:$0xff] %v5281_v42 }
 0x185   : > { %1746 = vperm.xlu1 %4116, %v5247_v55   ;;  %1749 = vperm.xlu2 %4114, %v5251_v29   ;;  %v5264_v55 = vld [vmem:[%s4313_s20 + $0x8] sm:$0xff]  ;;  %v5290_v29 = vld [vmem:[%s4313_s20 + $0x30] sm:$0xff] }
 0x186   : > { %4118 = vset.pattern.permute.xlu0 %v4226_v4  ;;  %3565 = vmatmul.msk.f32.gmra.mxu2 %vm779_vm12, %v7105_v2  ;;  %7139 = vst [vmem:[#allocation22_spill] sm:$0xff] %v5264_v55  ;;  %v5298_v51 = vpop.permute.xlu1 %1408  ;;  %v5302_v8 = vpop.permute.xlu0 %1423 }
 0x187   : > { %1964 = vperm.xlu0 %4118, %v5264_v55   ;;  %3581 = vmatmul.msk.f32.gmra.mxu3 %vm683_vm13, %v7105_v2  ;;  %7145 = vst [vmem:[#allocation34_spill] sm:$0xff] %v5290_v29  ;;  %v5341_v55 = vld [vmem:[%s4313_s20 + $0x18] sm:$0xff]  ;;  %vm687_vm13 = vcmp.eq.s32.totalorder %v7167_v33, %v4832_v62 }
 0x188   : > { %3645 = vmatmul.msk.f32.gmra.mxu1 %vm1005_vm14, %v7105_v2  ;;  %3629 = vmatmul.msk.f32.gmra.mxu0 %vm1101_vm15, %v7105_v2  ;;  %7147 = vst [vmem:[#allocation11_spill] sm:$0xff] %v5298_v51  ;;  %v5320_v51 = vld [vmem:[%s4313_s20 + $0x48] sm:$0xff]  ;;  %vm1105_vm15 = vcmp.eq.s32.totalorder %v4964_v10, %v4832_v62 }
 0x189   : > { %7148 = vst [vmem:[#allocation39_spill] sm:$0xff] %v5302_v8  ;;  %v7152_v8 = vld [vmem:[#allocation20_spill] sm:$0xff] }
 0x18a   : > { %vm685_vm5 = vcmp.eq.s32.totalorder %v7152_v8, %v4832_v62  ;;  %7158 = vst [vmem:[#allocation49_spill] sm:$0xff] %v5341_v55 }
 0x18d   : > { %1755 = vperm.xlu1 %4116, %v5277_v18   ;;  %1758 = vperm.xlu2 %4114, %v5281_v42   ;;  %v7146_v18 = vld [vmem:[#allocation44_spill] sm:$0xff]  ;;  %v5305_v42 = vld [vmem:[%s4459_s15 + $0x78] sm:$0xff] }
 0x18e   : > { %3566 = vmatmul.msk.f32.gmra.mxu2 %vm780_vm0, %v7105_v2  ;;  %vm1006_vm2 = vcmp.eq.s32.totalorder %v7146_v18, %v4832_v62  ;;  %7149 = vst [vmem:[#allocation33_spill] sm:$0xff] %v5305_v42  ;;  %v5310_v18 = vpop.permute.xlu2 %1632  ;;  %v5332_v8 = vpop.permute.xlu0 %1626  ;;  %vm1670_vm0 = vcmp.eq.s32.totalorder %v5274_v22, %v4832_v62 }
 0x18f   : > { %1979 = vperm.xlu0 %4118, %v5290_v29   ;;  %3582 = vmatmul.msk.f32.gmra.mxu3 %vm684_vm1, %v7105_v2  ;;  %v7150_v29 = vld [vmem:[#allocation24_spill] sm:$0xff]  ;;  %7153 = vst [vmem:[#allocation44_spill] sm:$0xff] %v5320_v51  ;;  %vm1428_vm1 = vcmp.eq.s32.totalorder %v5189_v61, %v4832_v62 }
 0x190   : > { %3646 = vmatmul.msk.f32.gmra.mxu1 %vm1006_vm2, %v7105_v2  ;;  %3630 = vmatmul.msk.f32.gmra.mxu0 %vm1102_vm3, %v7105_v2  ;;  %vm781_vm4 = vcmp.eq.s32.totalorder %v7150_v29, %v4832_v62  ;;  %v7154_v29 = vld [vmem:[#allocation45_spill] sm:$0xff]  ;;  %vm1332_vm2 = vcmp.eq.s32.totalorder %v4888_v7, %v4832_v62  ;;  %vm1671_vm3 = vcmp.eq.s32.totalorder %v5332_v8, %v4832_v62 }
 0x191   : > { %vm1007_vm6 = vcmp.eq.s32.totalorder %v7154_v29, %v4832_v62  ;;  %v5347_v29 = vld [vmem:[%s4313_s20 + $0x60] sm:$0xff] }
 0x192   : > { %7160 = vst [vmem:[#allocation37_spill] sm:$0xff] %v5347_v29 }
 0x194   : > { %v5362_v16 = vpop.f32.mrf.mxu2 }
 0x195   : > { %1764 = vperm.xlu1 %4116, %v5305_v42   ;;  %4117 = vset.pattern.permute.xlu2 %v4226_v4  ;;  %v5334_v42 = vpop.f32.mrf.mxu1 }
 0x196   : > { %1961 = vperm.xlu2 %4117, %v5313_v12   ;;  %3567 = vmatmul.msk.f32.gmra.mxu2 %vm781_vm4, %v7105_v2  ;;  %v5330_v12 = vpop.permute.xlu1 %1417  ;;  %7156 = vst [vmem:[#allocation20_spill] sm:$0xff] %v5334_v42  ;;  %v7162_v42 = vld [vmem:[#allocation40_spill] sm:$0xff]  ;;  %vm1429_vm4 = vcmp.eq.s32.totalorder %v5100_v58, %v4832_v62 }
 0x197   : > { %1988 = vperm.xlu0 %4118, %v5320_v51   ;;  %3583 = vmatmul.msk.f32.gmra.mxu3 %vm685_vm5, %v7105_v2  ;;  %7155 = vst [vmem:[#allocation24_spill] sm:$0xff] %v5330_v12  ;;  %v5337_v51 = vld [vmem:[%s4313_s20 + $0x10] sm:$0xff]  ;;  %vm1008_vm10 = vcmp.eq.s32.totalorder %v7162_v42, %v4832_v62  ;;  %v7166_v42 = vld [vmem:[#allocation36_spill] sm:$0xff]  ;;  %vm1333_vm5 = vcmp.eq.s32.totalorder %v4968_v11, %v4832_v62 }
 0x198   : > { %3647 = vmatmul.msk.f32.gmra.mxu1 %vm1007_vm6, %v7105_v2  ;;  %3631 = vmatmul.msk.f32.gmra.mxu0 %vm1103_vm7, %v7105_v2  ;;  %7157 = vst [vmem:[#allocation45_spill] sm:$0xff] %v5337_v51  ;;  %vm783_vm12 = vcmp.eq.s32.totalorder %v7166_v42, %v4832_v62  ;;  %vm1334_vm6 = vcmp.eq.s32.totalorder %v4998_v32, %v4832_v62 }
 0x199   : > { %v5355_v12 = vpop.permute.xlu2 %1638  ;;  %vm1430_vm7 = vcmp.eq.s32.totalorder %v5156_v3, %v4832_v62 }
 0x19d   : > { %4119 = vset.pattern.permute.xlu1 %v4226_v4  ;;  %v7161_v4 = vld [vmem:[#allocation12_spill] sm:$0xff] }
 0x19e   : > { %1967 = vperm.xlu1 %4119, %v5337_v51   ;;  %1970 = vperm.xlu2 %4117, %v5341_v55   ;;  %vm686_vm9 = vcmp.eq.s32.totalorder %v7161_v4, %v4832_v62  ;;  %7163 = vst [vmem:[#allocation12_spill] sm:$0xff] %v5362_v16  ;;  %v5364_v55 = vpop.f32.mrf.mxu3  ;;  %v5366_v51 = vpop.permute.xlu1 %1426 }
 0x19f   : > { %1997 = vperm.xlu0 %4118, %v5347_v29   ;;  %3568 = vmatmul.msk.f32.gmra.mxu2 %vm782_vm8, %v7105_v2  ;;  %7164 = vst [vmem:[#allocation40_spill] sm:$0xff] %v5364_v55  ;;  %v5368_v4 = vpop.permute.xlu0 %1641  ;;  %v5375_v29 = vld [vmem:[%s4313_s20 + $0x78] sm:$0xff]  ;;  %v7168_v55 = vld [vmem:[#allocation46_spill] sm:$0xff]  ;;  %v5383_v16 = vpop.f32.mrf.mxu1 }
 0x1a0   : > { %3584 = vmatmul.msk.f32.gmra.mxu3 %vm686_vm9, %v7105_v2  ;;  %3648 = vmatmul.msk.f32.gmra.mxu1 %vm1008_vm10, %v7105_v2  ;;  %7165 = vst [vmem:[#allocation50_spill] sm:$0xff] %v5366_v51  ;;  %vm1009_vm14 = vcmp.eq.s32.totalorder %v7168_v55, %v4832_v62  ;;  %v5392_v51 = vpop.f32.mrf.mxu2  ;;  %vm1335_vm9 = vcmp.eq.s32.totalorder %v4915_v35, %v4832_v62 }
 0x1a1   : > { %3632 = vmatmul.msk.f32.gmra.mxu0 %vm1104_vm11, %v7105_v2  ;;  %7169 = vst [vmem:[#allocation36_spill] sm:$0xff] %v5383_v16  ;;  %v5409_v16 = vld [vmem:[%s4459_s15 + $0x10] sm:$0xff]  ;;  %vm1431_vm10 = vcmp.eq.s32.totalorder %v5216_v9, %v4832_v62  ;;  %vm1673_vm11 = vcmp.eq.s32.totalorder %v5310_v18, %v4832_v62  ;;  %v5541_v9 = vpop.f32.mrf.mxu0  ;;  %v7184_v18 = vld [vmem:[#allocation31_spill] sm:$0xff] }
 0x1a2   : > { %7170 = vst [vmem:[#allocation23_spill] sm:$0xff] %v5392_v51 }
 0x1a3   : > { %7182 = vst [vmem:[#allocation61_spill] sm:$0xff] %v5541_v9  ;;  %v7205_v9 = vld [vmem:[#allocation34_spill] sm:$0xff] }
 0x1a5   : > { %v5390_v42 = vpop.permute.xlu2 %1647 }
 0x1a6   : > { %1973 = vperm.xlu1 %4119, %v4991_v44   ;;  %1976 = vperm.xlu2 %4117, %v4995_v31   ;;  %v5394_v33 = vpop.f32.mrf.mxu3  ;;  %v5398_v55 = vpop.permute.xlu1 %1629 }
 0x1a7   : > { %2006 = vperm.xlu0 %4118, %v5375_v29   ;;  %3569 = vmatmul.msk.f32.gmra.mxu2 %vm783_vm12, %v7105_v2  ;;  %7171 = vst [vmem:[#allocation46_spill] sm:$0xff] %v5394_v33  ;;  %v5404_v10 = vpop.permute.xlu0 %1650  ;;  %v5417_v61 = vpop.f32.mrf.mxu1  ;;  %vm1672_vm8 = vcmp.eq.s32.totalorder %v5398_v55, %v4832_v62 }
 0x1a8   : > { %3585 = vmatmul.msk.f32.gmra.mxu3 %vm687_vm13, %v7105_v2  ;;  %3649 = vmatmul.msk.f32.gmra.mxu1 %vm1009_vm14, %v7105_v2  ;;  %7172 = vst [vmem:[#allocation51_spill] sm:$0xff] %v5417_v61  ;;  %v5448_v61 = vld [vmem:[%s4459_s15 + $0x28] sm:$0xff] }
 0x1a9   : > { %3633 = vmatmul.msk.f32.gmra.mxu0 %vm1105_vm15, %v7105_v2 }
 0x1ac   : > { %v5429_v22 = vpop.f32.mrf.mxu2 }
 0x1ad   : > { %7173 = vst [vmem:[#allocation52_spill] sm:$0xff] %v5429_v22  ;;  %v7199_v22 = vld [vmem:[#allocation38_spill] sm:$0xff] }
 0x1ae   : > { %1982 = vperm.xlu1 %4119, %v5036_v52   ;;  %1985 = vperm.xlu2 %4117, %v5042_v6  }
 0x1af   : > { %2063 = vperm.xlu0 %4118, %v5409_v16   ;;  %3682 = vmatmul.msk.f32.vlgmr.msra.gmra.mxu2 %vm1428_vm1, %v7105_v2  ;;  %vm1675_vm1 = vcmp.eq.s32.totalorder %v5355_v12, %v4832_v62  ;;  %v7200_v12 = vld [vmem:[#allocation30_spill] sm:$0xff] }
 0x1b0   : > { %3698 = vmatmul.msk.f32.vlgmr.msra.gmra.mxu3 %vm1332_vm2, %v7105_v2  ;;  %3762 = vmatmul.msk.f32.vlgmr.msra.gmra.mxu1 %vm1670_vm0, %v7105_v2  ;;  %v5422_v7 = vpop.permute.xlu2 %1656 }
 0x1b1   : > { %2828 = vmatpush.msra.mxu2 %v4730_v5  ;;  %2893 = vmatpush.msra.mxu3 %v4728_v53 }
 0x1b2   : > { %3231 = vmatpush.msra.mxu1 %v4728_v53  ;;  %v5431_v53 = vpop.f32.mrf.mxu3 }
 0x1b3   : > { %2829 = vmatpush.msra.mxu2 %v4713_v19  ;;  %2894 = vmatpush.msra.mxu3 %v4711_v20  ;;  %7174 = vst [vmem:[#allocation53_spill] sm:$0xff] %v5431_v53  ;;  %v7196_v53 = vld [vmem:[#allocation22_spill] sm:$0xff] }
 0x1b4   : > { %3232 = vmatpush.msra.mxu1 %v4711_v20  ;;  %v5437_v20 = vpop.permute.xlu1 %1635 }
 0x1b5   : > { %2830 = vmatpush.msra.mxu2 %v4696_v54  ;;  %2895 = vmatpush.msra.mxu3 %v4694_v40  ;;  %vm1674_vm14 = vcmp.eq.s32.totalorder %v5437_v20, %v4832_v62  ;;  %v7032_v20 = vmov 5  }
 0x1b6   : > { %3233 = vmatpush.msra.mxu1 %v4694_v40  ;;  %1991 = vperm.xlu1 %4119, %v5081_v30   ;;  %v5443_v40 = vpop.permute.xlu0 %1659 }
 0x1b7   : > { %2831 = vmatpush.msra.mxu2 %v4681_v59  ;;  %2896 = vmatpush.msra.mxu3 %v4679_v25 }
 0x1b8   : > { %3234 = vmatpush.msra.mxu1 %v4679_v25  ;;  %1994 = vperm.xlu2 %4117, %v5085_v56   ;;  %v5456_v25 = vpop.f32.mrf.mxu1 }
 0x1b9   : > { %2072 = vperm.xlu0 %4118, %v5448_v61   ;;  %3683 = vmatmul.msk.f32.gmra.mxu2 %vm1429_vm4, %v7105_v2  ;;  %7175 = vst [vmem:[#allocation54_spill] sm:$0xff] %v5456_v25  ;;  %v5576_v25 = vpop.f32.mrf.mxu0 }
 0x1ba   : > { %3699 = vmatmul.msk.f32.gmra.mxu3 %vm1333_vm5, %v7105_v2  ;;  %3763 = vmatmul.msk.f32.gmra.mxu1 %vm1671_vm3, %v7105_v2  ;;  %v5471_v58 = vpop.f32.mrf.mxu3  ;;  %vm1676_vm5 = vcmp.eq.s32.totalorder %v5368_v4, %v4832_v62 }
 0x1bb   : > { %2832 = vmatpush.msra.mxu2 %v4664_v45  ;;  %2897 = vmatpush.msra.mxu3 %v4662_v37  ;;  %7177 = vst [vmem:[#allocation56_spill] sm:$0xff] %v5471_v58  ;;  %v7194_v58 = vld [vmem:[#allocation48_spill] sm:$0xff] }
 0x1bc   : > { %3235 = vmatpush.msra.mxu1 %v4662_v37  ;;  %v5461_v11 = vpop.permute.xlu2 %1665  ;;  %v5469_v37 = vpop.f32.mrf.mxu2  ;;  %vm1337_vm15 = vcmp.eq.s32.totalorder %v7194_v58, %v4832_v62 }
 0x1bd   : > { %2833 = vmatpush.msra.mxu2 %v4647_v50  ;;  %2898 = vmatpush.msra.mxu3 %v4645_v1  ;;  %7176 = vst [vmem:[#allocation55_spill] sm:$0xff] %v5469_v37  ;;  %v5475_v8 = vpop.permute.xlu1 %1644  ;;  %v7195_v37 = vld [vmem:[#allocation41_spill] sm:$0xff] }
 0x1be   : > { %3236 = vmatpush.msra.mxu1 %v4645_v1  ;;  %2000 = vperm.xlu1 %4119, %v5124_v27   ;;  %v5483_v1 = vld [vmem:[%s4459_s15 + $0x40] sm:$0xff]  ;;  %vm1433_vm0 = vcmp.eq.s32.totalorder %v7195_v37, %v4832_v62 }
 0x1bf   : > { %2834 = vmatpush.msra.mxu2 %v4630_v17  ;;  %2899 = vmatpush.msra.mxu3 %v4628_v14 }
 0x1c0   : > { %3237 = vmatpush.msra.mxu1 %v4628_v14  ;;  %2003 = vperm.xlu2 %4117, %v5128_v36   ;;  %v5486_v14 = vpop.permute.xlu0 %1668 }
 0x1c1   : > { %2835 = vmatpush.msra.mxu2 %v4615_v0  ;;  %2900 = vmatpush.msra.mxu3 %v4613_v60  ;;  %v5608_v51 = vpop.f32.mrf.mxu0 }
 0x1c2   : > { %3238 = vmatpush.msra.mxu1 %v4613_v60  ;;  %2081 = vperm.xlu0 %4118, %v5483_v1   ;;  %v5496_v60 = vpop.f32.mrf.mxu1  ;;  %7204 = vst [vmem:[#allocation48_spill] sm:$0xff] %v5608_v51  ;;  %v7212_v51 = vld [vmem:[#allocation15_spill] sm:$0xff] }
 0x1c3   : > { %3684 = vmatmul.msk.f32.gmra.mxu2 %vm1430_vm7, %v7105_v2  ;;  %3700 = vmatmul.msk.f32.gmra.mxu3 %vm1334_vm6, %v7105_v2  ;;  %7178 = vst [vmem:[#allocation57_spill] sm:$0xff] %v5496_v60  ;;  %v7186_v60 = vld [vmem:[#allocation6_spill] sm:$0xff] }
 0x1c4   : > { %3764 = vmatmul.msk.f32.gmra.mxu1 %vm1672_vm8, %v7105_v2  ;;  %2836 = vmatpush.msra.mxu2 %v4784_v63  ;;  %vm1432_vm13 = vcmp.eq.s32.totalorder %v7186_v60, %v4832_v62  ;;  %7193 = vst [vmem:[#allocation6_spill] sm:$0xff] %v5576_v25  ;;  %vm1435_vm8 = vcmp.eq.s32.totalorder %v7212_v51, %v4832_v62 }
 0x1c5   : > { %2901 = vmatpush.msra.mxu3 %v4782_v43  ;;  %3239 = vmatpush.msra.mxu1 %v4782_v43  ;;  %v5510_v43 = vld [vmem:[%s4459_s15 + $0x58] sm:$0xff]  ;;  %v5513_v3 = vpop.f32.mrf.mxu2 }
 0x1c6   : > { %2837 = vmatpush.msra.mxu2 %v4746_v47  ;;  %2057 = vperm.xlu1 %4119, %v5167_v57   ;;  %7179 = vst [vmem:[#allocation58_spill] sm:$0xff] %v5513_v3  ;;  %v5515_v55 = vpop.f32.mrf.mxu3 }
 0x1c7   : > { %2902 = vmatpush.msra.mxu3 %v4744_v46  ;;  %3240 = vmatpush.msra.mxu1 %v4744_v46  ;;  %v5502_v32 = vpop.permute.xlu2 %1722  ;;  %7180 = vst [vmem:[#allocation59_spill] sm:$0xff] %v5515_v55  ;;  %v7187_v55 = vld [vmem:[#allocation26_spill] sm:$0xff] }
 0x1c8   : > { %2838 = vmatpush.msra.mxu2 %v4717_v34  ;;  %2060 = vperm.xlu2 %4117, %v5171_v21   ;;  %vm1767_vm6 = vcmp.eq.s32.totalorder %v5502_v32, %v4832_v62  ;;  %v7213_v32 = vld [vmem:[#allocation44_spill] sm:$0xff] }
 0x1c9   : > { %2903 = vmatpush.msra.mxu3 %v4715_v48  ;;  %3241 = vmatpush.msra.mxu1 %v4715_v48  ;;  %v5523_v48 = vpop.permute.xlu1 %1653  ;;  %v5529_v46 = vpop.permute.xlu0 %1725 }
 0x1ca   : > { %2839 = vmatpush.msra.mxu2 %v4700_v41  ;;  %2090 = vperm.xlu0 %4118, %v5510_v43  }
 0x1cb   : > { %2904 = vmatpush.msra.mxu3 %v4698_v39  ;;  %3242 = vmatpush.msra.mxu1 %v4698_v39 }
 0x1cc   : > { %3685 = vmatmul.msk.f32.gmra.mxu2 %vm1431_vm10, %v7105_v2  ;;  %3701 = vmatmul.msk.f32.gmra.mxu3 %vm1335_vm9, %v7105_v2  ;;  %v5539_v35 = vpop.f32.mrf.mxu1  ;;  %vm1677_vm9 = vcmp.eq.s32.totalorder %v5475_v8, %v4832_v62  ;;  %vm1768_vm10 = vcmp.eq.s32.totalorder %v5529_v46, %v4832_v62  ;;  %v7221_v46 = vld [vmem:[#allocation25_spill] sm:$0xff] }
 0x1cd   : > { %3765 = vmatmul.msk.f32.gmra.mxu1 %vm1673_vm11, %v7105_v2  ;;  %2840 = vmatpush.msra.mxu2 %v4683_v23  ;;  %7181 = vst [vmem:[#allocation60_spill] sm:$0xff] %v5539_v35  ;;  %v7185_v35 = vld [vmem:[#allocation4_spill] sm:$0xff]  ;;  %vm1340_vm11 = vcmp.eq.s32.totalorder %v7221_v46, %v4832_v62 }
 0x1ce   : > { %2905 = vmatpush.msra.mxu3 %v4677_v24  ;;  %3243 = vmatpush.msra.mxu1 %v4677_v24  ;;  %v7183_v24 = vld [vmem:[#allocation27_spill] sm:$0xff]  ;;  %vm1336_vm12 = vcmp.eq.s32.totalorder %v7185_v35, %v4832_v62  ;;  %v7190_v35 = vld [vmem:[#allocation14_spill] sm:$0xff] }
 0x1cf   : > { %2841 = vmatpush.msra.mxu2 %v4666_v38  ;;  %2066 = vperm.xlu1 %4119, %v5194_v15   ;;  %v5537_v39 = vpop.permute.xlu2 %1731 }
 0x1d0   : > { %2906 = vmatpush.msra.mxu3 %v4660_v26  ;;  %3244 = vmatpush.msra.mxu1 %v4660_v26 }
 0x1d1   : > { %2842 = vmatpush.msra.mxu2 %v4649_v28  ;;  %2069 = vperm.xlu2 %4117, %v5198_v13   ;;  %v5557_v26 = vpop.f32.mrf.mxu2  ;;  %v5559_v3 = vpop.f32.mrf.mxu3 }
 0x1d2   : > { %2907 = vmatpush.msra.mxu3 %v4643_v49  ;;  %3245 = vmatpush.msra.mxu1 %v4643_v49  ;;  %7188 = vst [vmem:[#allocation27_spill] sm:$0xff] %v5557_v26  ;;  %v7191_v26 = vld [vmem:[#allocation42_spill] sm:$0xff] }
 0x1d3   : > { %2843 = vmatpush.msra.mxu2 %v7183_v24  ;;  %2099 = vperm.xlu0 %4118, %v7184_v18   ;;  %7189 = vst [vmem:[#allocation31_spill] sm:$0xff] %v5559_v3  ;;  %v5565_v49 = vpop.permute.xlu1 %1662 }
 0x1d4   : > { %2908 = vmatpush.msra.mxu3 %v7187_v55  ;;  %3246 = vmatpush.msra.mxu1 %v7187_v55  ;;  %v5568_v60 = vpop.permute.xlu0 %1734 }
 0x1d5   : > { %3686 = vmatmul.msk.f32.gmra.mxu2 %vm1432_vm13, %v7105_v2  ;;  %3702 = vmatmul.msk.f32.gmra.mxu3 %vm1336_vm12, %v7105_v2  ;;  %vm1678_vm13 = vcmp.eq.s32.totalorder %v5390_v42, %v4832_v62 }
 0x1d6   : > { %3766 = vmatmul.msk.f32.gmra.mxu1 %vm1674_vm14, %v7105_v2 }
 0x1d7   : > { %2075 = vperm.xlu1 %4119, %v7190_v35   ;;  %v5571_v55 = vpop.permute.xlu2 %1740  ;;  %v5574_v3 = vpop.f32.mrf.mxu1 }
 0x1d8   : > { %7192 = vst [vmem:[#allocation4_spill] sm:$0xff] %v5574_v3 }
 0x1d9   : > { %2078 = vperm.xlu2 %4117, %v7191_v26  }
 0x1db   : > { %4121 = vset.pattern.permute.xlu0 %v7032_v20 }
 0x1dc   : > { %2302 = vperm.xlu0 %4121, %v7196_v53   ;;  %v5589_v3 = vpop.f32.mrf.mxu2 }
 0x1dd   : > { %3687 = vmatmul.msk.f32.gmra.mxu2 %vm1433_vm0, %v7105_v2  ;;  %3703 = vmatmul.msk.f32.gmra.mxu3 %vm1337_vm15, %v7105_v2  ;;  %7197 = vst [vmem:[#allocation26_spill] sm:$0xff] %v5589_v3  ;;  %v5591_v20 = vpop.f32.mrf.mxu3  ;;  %v7202_v3 = vld [vmem:[#allocation13_spill] sm:$0xff] }
 0x1de   : > { %3767 = vmatmul.msk.f32.gmra.mxu1 %vm1675_vm1, %v7105_v2  ;;  %7198 = vst [vmem:[#allocation14_spill] sm:$0xff] %v5591_v20  ;;  %vm1338_vm3 = vcmp.eq.s32.totalorder %v7202_v3, %v4832_v62  ;;  %v7203_v20 = vld [vmem:[#allocation18_spill] sm:$0xff]  ;;  %vm1679_vm1 = vcmp.eq.s32.totalorder %v5404_v10, %v4832_v62 }
 0x1df   : > { %2084 = vperm.xlu1 %4119, %v7199_v22   ;;  %v1720_v58 = vpop.permute.xlu1 %1719  ;;  %v5594_v25 = vpop.permute.xlu2 %1749  ;;  %vm1434_vm4 = vcmp.eq.s32.totalorder %v7203_v20, %v4832_v62 }
 0x1e0   : > { %vm1766_vm2 = vcmp.eq.s32.totalorder %v1720_v58, %v4832_v62  ;;  %v5597_v37 = vpop.permute.xlu0 %1743  ;;  %v7209_v58 = vld [vmem:[#allocation47_spill] sm:$0xff] }
 0x1e1   : > { %2087 = vperm.xlu2 %4117, %v7200_v12   ;;  %3746 = vmatmul.msk.f32.vlgmr.msra.gmra.mxu0 %vm1766_vm2, %v7105_v2  ;;  %vm1770_vm2 = vcmp.eq.s32.totalorder %v5537_v39, %v4832_v62  ;;  %v7236_v39 = vld [vmem:[#allocation9_spill] sm:$0xff] }
 0x1e2   : > { %3166 = vmatpush.msra.mxu0 %v4730_v5  ;;  %v7206_v5 = vld [vmem:[#allocation17_spill] sm:$0xff] }
 0x1e3   : > { %v5602_v33 = vpop.f32.mrf.mxu1 }
 0x1e4   : > { %7201 = vst [vmem:[#allocation42_spill] sm:$0xff] %v5602_v33  ;;  %2317 = vperm.xlu0 %4121, %v7205_v9   ;;  %3167 = vmatpush.msra.mxu0 %v4713_v19 }
 0x1e5   : > { %3688 = vmatmul.msk.f32.gmra.mxu2 %vm1434_vm4, %v7105_v2  ;;  %3704 = vmatmul.msk.f32.gmra.mxu3 %vm1338_vm3, %v7105_v2  ;;  %vm1342_vm3 = vcmp.eq.s32.totalorder %v7236_v39, %v4832_v62 }
 0x1e6   : > { %3768 = vmatmul.msk.f32.gmra.mxu1 %vm1676_vm5, %v7105_v2  ;;  %3168 = vmatpush.msra.mxu0 %v4696_v54  ;;  %v7211_v54 = vld [vmem:[#allocation5_spill] sm:$0xff]  ;;  %vm1680_vm5 = vcmp.eq.s32.totalorder %v5523_v48, %v4832_v62 }
 0x1e7   : > { %2093 = vperm.xlu1 %4119, %v7206_v5   ;;  %v1729_v3 = vpop.permute.xlu1 %1728  ;;  %v5619_v20 = vpop.permute.xlu2 %1758  ;;  %vm1339_vm7 = vcmp.eq.s32.totalorder %v7211_v54, %v4832_v62  ;;  %v7217_v54 = vmov 5  }
 0x1e8   : > { %7207 = vst [vmem:[#allocation41_spill] sm:$0xff] %v5619_v20  ;;  %v5623_v19 = vpop.permute.xlu0 %1752  ;;  %3169 = vmatpush.msra.mxu0 %v4681_v59  ;;  %v5626_v4 = vpop.f32.mrf.mxu2  ;;  %v7216_v59 = vld [vmem:[#allocation33_spill] sm:$0xff]  ;;  %vm1769_vm14 = vcmp.eq.s32.totalorder %v1729_v3, %v4832_v62  ;;  %v7230_v3 = vld [vmem:[#allocation16_spill] sm:$0xff] }
 0x1e9   : > { %7208 = vst [vmem:[#allocation22_spill] sm:$0xff] %v5626_v4  ;;  %2096 = vperm.xlu2 %4117, %v7209_v58   ;;  %v5629_v33 = vpop.f32.mrf.mxu3  ;;  %3747 = vmatmul.msk.f32.gmra.mxu0 %vm1767_vm6, %v7105_v2  ;;  %vm1341_vm15 = vcmp.eq.s32.totalorder %v7230_v3, %v4832_v62  ;;  %vm1771_vm6 = vcmp.eq.s32.totalorder %v5568_v60, %v4832_v62 }
 0x1ea   : > { %7210 = vst [vmem:[#allocation38_spill] sm:$0xff] %v5629_v33  ;;  %3170 = vmatpush.msra.mxu0 %v4664_v45  ;;  %v5645_v45 = vpop.f32.mrf.mxu0 }
 0x1eb   : > { %7215 = vst [vmem:[#allocation13_spill] sm:$0xff] %v5645_v45 }
 0x1ec   : > { %2326 = vperm.xlu0 %4121, %v7213_v32   ;;  %v5638_v20 = vpop.f32.mrf.mxu1  ;;  %3171 = vmatpush.msra.mxu0 %v4647_v50 }
 0x1ed   : > { %7214 = vst [vmem:[#allocation30_spill] sm:$0xff] %v5638_v20  ;;  %3689 = vmatmul.msk.f32.gmra.mxu2 %vm1435_vm8, %v7105_v2  ;;  %3705 = vmatmul.msk.f32.gmra.mxu3 %vm1339_vm7, %v7105_v2  ;;  %v7222_v20 = vld [vmem:[#allocation19_spill] sm:$0xff] }
 0x1ee   : > { %3769 = vmatmul.msk.f32.gmra.mxu1 %vm1677_vm9, %v7105_v2  ;;  %3172 = vmatpush.msra.mxu0 %v4630_v17  ;;  %v7219_v17 = vld [vmem:[#allocation21_spill] sm:$0xff]  ;;  %vm1436_vm12 = vcmp.eq.s32.totalorder %v7222_v20, %v4832_v62  ;;  %vm1681_vm9 = vcmp.eq.s32.totalorder %v5422_v7, %v4832_v62 }
 0x1ef   : > { %2102 = vperm.xlu1 %4119, %v7216_v59   ;;  %v5650_v51 = vpop.permute.xlu1 %1737 }
 0x1f0   : > { %v5654_v50 = vpop.permute.xlu0 %1761  ;;  %3173 = vmatpush.msra.mxu0 %v4615_v0  ;;  %v5657_v8 = vpop.permute.xlu2 %1961  ;;  %v7223_v0 = vld [vmem:[#allocation37_spill] sm:$0xff] }
 0x1f1   : > { %4120 = vset.pattern.permute.xlu2 %v7217_v54  ;;  %v5660_v33 = vpop.f32.mrf.mxu2  ;;  %3748 = vmatmul.msk.f32.gmra.mxu0 %vm1768_vm10, %v7105_v2  ;;  %vm1772_vm10 = vcmp.eq.s32.totalorder %v5650_v51, %v4832_v62  ;;  %v7248_v51 = vld [vmem:[#allocation24_spill] sm:$0xff] }
 0x1f2   : > { %7218 = vst [vmem:[#allocation18_spill] sm:$0xff] %v5660_v33  ;;  %2299 = vperm.xlu2 %4120, %v7219_v17   ;;  %v5664_v4 = vpop.f32.mrf.mxu3  ;;  %3174 = vmatpush.msra.mxu0 %v4784_v63  ;;  %v5684_v20 = vpop.f32.mrf.mxu0 }
 0x1f3   : > { %7220 = vst [vmem:[#allocation34_spill] sm:$0xff] %v5664_v4  ;;  %v7231_v4 = vld [vmem:[#allocation11_spill] sm:$0xff] }
 0x1f4   : > { %2335 = vperm.xlu0 %4121, %v7223_v0   ;;  %v5672_v45 = vpop.f32.mrf.mxu1  ;;  %3175 = vmatpush.msra.mxu0 %v4746_v47  ;;  %7225 = vst [vmem:[#allocation47_spill] sm:$0xff] %v5684_v20  ;;  %v7226_v47 = vld [vmem:[#allocation45_spill] sm:$0xff]  ;;  %vm1437_vm0 = vcmp.eq.s32.totalorder %v7231_v4, %v4832_v62  ;;  %v4181_v20 = vld [vmem:[%s4313_s20 + $0x10] sm:$0xff] }
 0x1f5   : > { %7224 = vst [vmem:[#allocation17_spill] sm:$0xff] %v5672_v45  ;;  %3690 = vmatmul.msk.f32.gmra.mxu2 %vm1436_vm12, %v7105_v2  ;;  %3706 = vmatmul.msk.f32.gmra.mxu3 %vm1340_vm11, %v7105_v2  ;;  %vm1440_vm12 = vcmp.eq.s32.totalorder %v7248_v51, %v4832_v62 }
 0x1f6   : > { %3770 = vmatmul.msk.f32.gmra.mxu1 %vm1678_vm13, %v7105_v2  ;;  %3176 = vmatpush.msra.mxu0 %v4717_v34  ;;  %v7228_v34 = vld [vmem:[#allocation49_spill] sm:$0xff]  ;;  %vm1682_vm13 = vcmp.eq.s32.totalorder %v5443_v40, %v4832_v62 }
 0x1f7   : > { %4122 = vset.pattern.permute.xlu1 %v7217_v54  ;;  %v5682_v63 = vpop.permute.xlu1 %1746 }
 0x1f8   : > { %2305 = vperm.xlu1 %4122, %v7226_v47   ;;  %3177 = vmatpush.msra.mxu0 %v4700_v41  ;;  %v5689_v42 = vpop.permute.xlu2 %1970 }
 0x1f9   : > { %v5691_v46 = vpop.permute.xlu0 %1964  ;;  %v5693_v45 = vpop.f32.mrf.mxu2  ;;  %3749 = vmatmul.msk.f32.gmra.mxu0 %vm1769_vm14, %v7105_v2  ;;  %vm1773_vm14 = vcmp.eq.s32.totalorder %v5571_v55, %v4832_v62  ;;  %v7253_v55 = vld [vmem:[#allocation28_spill] sm:$0xff] }
 0x1fa   : > { %7227 = vst [vmem:[#allocation5_spill] sm:$0xff] %v5693_v45  ;;  %2308 = vperm.xlu2 %4120, %v7228_v34   ;;  %v5697_v54 = vpop.f32.mrf.mxu3  ;;  %3178 = vmatpush.msra.mxu0 %v4683_v23  ;;  %v5730_v4 = vpop.f32.mrf.mxu0 }
 0x1fb   : > { %7229 = vst [vmem:[#allocation15_spill] sm:$0xff] %v5697_v54  ;;  %v6050_v54 = vld [vmem:[%s4313_s20 + $0x40] sm:$0xff] }
 0x1fc   : > { %2344 = vperm.xlu0 %4121, %v5375_v29   ;;  %v5705_v41 = vpop.f32.mrf.mxu1  ;;  %3179 = vmatpush.msra.mxu0 %v4666_v38  ;;  %7235 = vst [vmem:[#allocation25_spill] sm:$0xff] %v5730_v4 }
 0x1fd   : > { %7232 = vst [vmem:[#allocation44_spill] sm:$0xff] %v5705_v41  ;;  %3691 = vmatmul.msk.f32.gmra.mxu2 %vm1437_vm0, %v7105_v2  ;;  %3707 = vmatmul.msk.f32.gmra.mxu3 %vm1341_vm15, %v7105_v2  ;;  %v7242_v41 = vld [vmem:[#allocation43_spill] sm:$0xff]  ;;  %vm1345_vm15 = vcmp.eq.s32.totalorder %v7253_v55, %v4832_v62 }
 0x1fe   : > { %3771 = vmatmul.msk.f32.gmra.mxu1 %vm1679_vm1, %v7105_v2  ;;  %3180 = vmatpush.msra.mxu0 %v4649_v28  ;;  %vm1439_vm8 = vcmp.eq.s32.totalorder %v7242_v41, %v4832_v62  ;;  %vm1683_vm1 = vcmp.eq.s32.totalorder %v5565_v49, %v4832_v62 }
 0x1ff   : > { %v5714_v23 = vpop.permute.xlu1 %1755 }
 0x200   : > { %2311 = vperm.xlu1 %4122, %v4991_v44   ;;  %3181 = vmatpush.msra.mxu0 %v7183_v24  ;;  %v5720_v38 = vpop.permute.xlu2 %1976  ;;  %v7237_v44 = vld [vmem:[#allocation7_spill] sm:$0xff] }
 0x201   : > { %v5722_v29 = vpop.permute.xlu0 %1979  ;;  %v5724_v10 = vpop.f32.mrf.mxu2  ;;  %3750 = vmatmul.msk.f32.gmra.mxu0 %vm1770_vm2, %v7105_v2  ;;  %vm1438_vm4 = vcmp.eq.s32.totalorder %v7237_v44, %v4832_v62  ;;  %vm1774_vm2 = vcmp.eq.s32.totalorder %v5597_v37, %v4832_v62  ;;  %v7260_v37 = vld [vmem:[#allocation39_spill] sm:$0xff] }
 0x202   : > { %7233 = vst [vmem:[#allocation33_spill] sm:$0xff] %v5724_v10  ;;  %2314 = vperm.xlu2 %4120, %v4995_v31   ;;  %v5728_v28 = vpop.f32.mrf.mxu3 }
 0x203   : > { %7234 = vst [vmem:[#allocation21_spill] sm:$0xff] %v5728_v28 }
 0x204   : > { %2401 = vperm.xlu0 %4121, %v5409_v16  }
 0x205   : > { %3692 = vmatmul.msk.f32.gmra.mxu2 %vm1438_vm4, %v7105_v2  ;;  %3708 = vmatmul.msk.f32.gmra.mxu3 %vm1342_vm3, %v7105_v2  ;;  %v5741_v31 = vpop.f32.mrf.mxu1  ;;  %vm1442_vm4 = vcmp.eq.s32.totalorder %v7260_v37, %v4832_v62 }
 0x206   : > { %7238 = vst [vmem:[#allocation19_spill] sm:$0xff] %v5741_v31  ;;  %3772 = vmatmul.msk.f32.gmra.mxu1 %vm1680_vm5, %v7105_v2  ;;  %v7241_v31 = vld [vmem:[#allocation32_spill] sm:$0xff]  ;;  %vm1684_vm5 = vcmp.eq.s32.totalorder %v5461_v11, %v4832_v62 }
 0x207   : > { %v5744_v24 = vpop.permute.xlu1 %1764  ;;  %vm1343_vm7 = vcmp.eq.s32.totalorder %v7241_v31, %v4832_v62 }
 0x208   : > { %2320 = vperm.xlu1 %4122, %v5036_v52   ;;  %v5749_v3 = vpop.permute.xlu2 %1985  ;;  %v5766_v52 = vpop.f32.mrf.mxu0 }
 0x209   : > { %v5751_v39 = vpop.permute.xlu0 %1988  ;;  %v5753_v48 = vpop.f32.mrf.mxu2  ;;  %3751 = vmatmul.msk.f32.gmra.mxu0 %vm1771_vm6, %v7105_v2  ;;  %7243 = vst [vmem:[#allocation49_spill] sm:$0xff] %v5766_v52  ;;  %vm1775_vm6 = vcmp.eq.s32.totalorder %v5682_v63, %v4832_v62 }
 0x20a   : > { %7239 = vst [vmem:[#allocation37_spill] sm:$0xff] %v5753_v48  ;;  %2323 = vperm.xlu2 %4120, %v5042_v6   ;;  %v5757_v44 = vpop.f32.mrf.mxu3 }
 0x20b   : > { %7240 = vst [vmem:[#allocation45_spill] sm:$0xff] %v5757_v44 }
 0x20c   : > { %2410 = vperm.xlu0 %4121, %v5448_v61  }
 0x20d   : > { %3693 = vmatmul.msk.f32.gmra.mxu2 %vm1439_vm8, %v7105_v2  ;;  %3709 = vmatmul.msk.f32.gmra.mxu3 %vm1343_vm7, %v7105_v2  ;;  %v5771_v6 = vpop.f32.mrf.mxu1 }
 0x20e   : > { %3773 = vmatmul.msk.f32.gmra.mxu1 %vm1681_vm9, %v7105_v2  ;;  %7244 = vst [vmem:[#allocation16_spill] sm:$0xff] %v5771_v6  ;;  %v7247_v6 = vld [vmem:[#allocation29_spill] sm:$0xff]  ;;  %vm1685_vm9 = vcmp.eq.s32.totalorder %v5486_v14, %v4832_v62 }
 0x20f   : > { %vm1344_vm11 = vcmp.eq.s32.totalorder %v7247_v6, %v4832_v62 }
 0x210   : > { %2329 = vperm.xlu1 %4122, %v5081_v30   ;;  %v5776_v60 = vpop.permute.xlu1 %1967  ;;  %v5798_v30 = vpop.f32.mrf.mxu0 }
 0x211   : > { %v5778_v41 = vpop.permute.xlu0 %1997  ;;  %v5780_v7 = vpop.f32.mrf.mxu2  ;;  %3752 = vmatmul.msk.f32.gmra.mxu0 %vm1772_vm10, %v7105_v2  ;;  %7249 = vst [vmem:[#allocation7_spill] sm:$0xff] %v5798_v30  ;;  %vm1776_vm10 = vcmp.eq.s32.totalorder %v5594_v25, %v4832_v62 }
 0x212   : > { %7245 = vst [vmem:[#allocation11_spill] sm:$0xff] %v5780_v7  ;;  %2332 = vperm.xlu2 %4120, %v5085_v56   ;;  %v5784_v31 = vpop.permute.xlu2 %1994  ;;  %v5786_v44 = vpop.f32.mrf.mxu3 }
 0x213   : > { %7246 = vst [vmem:[#allocation9_spill] sm:$0xff] %v5786_v44 }
 0x214   : > { %2419 = vperm.xlu0 %4121, %v5483_v1  }
 0x215   : > { %3694 = vmatmul.msk.f32.gmra.mxu2 %vm1440_vm12, %v7105_v2  ;;  %3710 = vmatmul.msk.f32.gmra.mxu3 %vm1344_vm11, %v7105_v2  ;;  %v5802_v56 = vpop.f32.mrf.mxu1  ;;  %vm2008_vm11 = vcmp.eq.s32.totalorder %v5657_v8, %v4832_v62  ;;  %vm1777_vm12 = vcmp.eq.s32.totalorder %v5623_v19, %v4832_v62 }
 0x216   : > { %3774 = vmatmul.msk.f32.gmra.mxu1 %vm1682_vm13, %v7105_v2  ;;  %7250 = vst [vmem:[#allocation32_spill] sm:$0xff] %v5802_v56  ;;  %v7254_v56 = vld [vmem:[#allocation10_spill] sm:$0xff] }
 0x217   : > { %vm1441_vm0 = vcmp.eq.s32.totalorder %v7254_v56, %v4832_v62 }
 0x218   : > { %2338 = vperm.xlu1 %4122, %v5124_v27   ;;  %v5805_v6 = vpop.permute.xlu1 %1973 }
 0x219   : > { %v5807_v51 = vpop.permute.xlu0 %2006  ;;  %v5809_v40 = vpop.f32.mrf.mxu2  ;;  %3753 = vmatmul.msk.f32.gmra.mxu0 %vm1773_vm14, %v7105_v2  ;;  %vm2009_vm14 = vcmp.eq.s32.totalorder %v5691_v46, %v4832_v62 }
 0x21a   : > { %7251 = vst [vmem:[#allocation43_spill] sm:$0xff] %v5809_v40  ;;  %2341 = vperm.xlu2 %4120, %v5128_v36   ;;  %v5813_v44 = vpop.permute.xlu2 %2003  ;;  %v5815_v30 = vpop.f32.mrf.mxu3 }
 0x21b   : > { %7252 = vst [vmem:[#allocation29_spill] sm:$0xff] %v5815_v30  ;;  %v5832_v36 = vpop.f32.mrf.mxu0 }
 0x21c   : > { %2428 = vperm.xlu0 %4121, %v5510_v43   ;;  %7255 = vst [vmem:[#allocation24_spill] sm:$0xff] %v5832_v36 }
 0x21d   : > { %3695 = vmatmul.msk.f32.gmra.mxu2 %vm1441_vm0, %v7105_v2  ;;  %3711 = vmatmul.msk.f32.gmra.mxu3 %vm1345_vm15, %v7105_v2  ;;  %v5842_v30 = vpop.f32.mrf.mxu1  ;;  %vm1778_vm15 = vcmp.eq.s32.totalorder %v5714_v23, %v4832_v62 }
 0x21e   : > { %3775 = vmatmul.msk.f32.gmra.mxu1 %vm1683_vm1, %v7105_v2  ;;  %7257 = vst [vmem:[#allocation10_spill] sm:$0xff] %v5842_v30  ;;  %v7261_v30 = vld [vmem:[#allocation35_spill] sm:$0xff]  ;;  %vm2010_vm1 = vcmp.eq.s32.totalorder %v5776_v60, %v4832_v62  ;;  %v7267_v60 = vmov 6  }
 0x21f   : > { %vm1347_vm7 = vcmp.eq.s32.totalorder %v7261_v30, %v4832_v62 }
 0x220   : > { %2395 = vperm.xlu1 %4122, %v5167_v57   ;;  %v5830_v27 = vpop.permute.xlu1 %1982  ;;  %v7259_v57 = vld [vmem:[#allocation8_spill] sm:$0xff] }
 0x221   : > { %v5834_v56 = vpop.permute.xlu0 %2063  ;;  %3754 = vmatmul.msk.f32.gmra.mxu0 %vm1774_vm2, %v7105_v2  ;;  %vm1346_vm3 = vcmp.eq.s32.totalorder %v7259_v57, %v4832_v62 }
 0x222   : > { %2398 = vperm.xlu2 %4120, %v5171_v21   ;;  %v5838_v49 = vpop.permute.xlu2 %2060  ;;  %v5840_v55 = vpop.f32.mrf.mxu2 }
 0x223   : > { %7256 = vst [vmem:[#allocation28_spill] sm:$0xff] %v5840_v55  ;;  %v5844_v40 = vpop.f32.mrf.mxu3  ;;  %v5873_v63 = vpop.f32.mrf.mxu0  ;;  %vm2105_vm0 = vcmp.eq.s32.totalorder %v5838_v49, %v4832_v62 }
 0x224   : > { %7258 = vst [vmem:[#allocation62_spill] sm:$0xff] %v5844_v40  ;;  %2437 = vperm.xlu0 %4121, %v7184_v18   ;;  %v7262_v40 = vld [vmem:[#allocation50_spill] sm:$0xff] }
 0x225   : > { %3696 = vmatmul.msk.f32.gmra.mxu2 %vm1442_vm4, %v7105_v2  ;;  %3712 = vmatmul.msk.f32.gmra.mxu3 %vm1346_vm3, %v7105_v2  ;;  %vm1443_vm8 = vcmp.eq.s32.totalorder %v7262_v40, %v4832_v62  ;;  %7263 = vst [vmem:[#allocation8_spill] sm:$0xff] %v5873_v63  ;;  %vm2106_vm3 = vcmp.eq.s32.totalorder %v5834_v56, %v4832_v62 }
 0x226   : > { %3776 = vmatmul.msk.f32.gmra.mxu1 %vm1684_vm5, %v7105_v2  ;;  %vm2011_vm4 = vcmp.eq.s32.totalorder %v5689_v42, %v4832_v62 }
 0x228   : > { %2404 = vperm.xlu1 %4122, %v5194_v15   ;;  %v5859_v57 = vpop.permute.xlu1 %1991  ;;  %v7034_v15 = vmov 6  }
 0x229   : > { %3755 = vmatmul.msk.f32.gmra.mxu0 %vm1775_vm6, %v7105_v2  ;;  %vm1780_vm6 = vcmp.eq.s32.totalorder %v5654_v50, %v4832_v62 }
 0x22a   : > { %2407 = vperm.xlu2 %4120, %v5198_v13   ;;  %v5863_v18 = vpop.f32.mrf.mxu2  ;;  %v5880_v13 = vpop.f32.mrf.mxu1 }
 0x22b   : > { %v5865_v11 = vpop.permute.xlu2 %2069  ;;  %v5867_v37 = vpop.permute.xlu0 %2072 }
 0x22c   : > { %4124 = vset.pattern.permute.xlu0 %v7034_v15  ;;  %v5876_v55 = vpop.f32.mrf.mxu3  ;;  %v5904_v25 = vpop.f32.mrf.mxu0 }
 0x22d   : > { %3697 = vmatmul.msk.f32.gmra.mxu2 %vm1443_vm8, %v7105_v2  ;;  %3713 = vmatmul.msk.f32.gmra.mxu3 %vm1347_vm7, %v7105_v2  ;;  %7264 = vst [vmem:[#allocation39_spill] sm:$0xff] %v5904_v25 }
 0x22e   : > { %3777 = vmatmul.msk.f32.gmra.mxu1 %vm1685_vm9, %v7105_v2  ;;  %2640 = vperm.xlu0 %4124, %v7196_v53   ;;  %vm2012_vm9 = vcmp.eq.s32.totalorder %v5805_v6, %v4832_v62 }
 0x230   : > { %2413 = vperm.xlu1 %4122, %v7190_v35   ;;  %v5889_v30 = vpop.permute.xlu1 %2000 }
 0x231   : > { %3756 = vmatmul.msk.f32.gmra.mxu0 %vm1776_vm10, %v7105_v2  ;;  %vm1781_vm10 = vcmp.eq.s32.totalorder %v5744_v24, %v4832_v62 }
 0x232   : > { %2416 = vperm.xlu2 %4120, %v7191_v26   ;;  %v5893_v14 = vpop.f32.mrf.mxu2  ;;  %v5907_v35 = vpop.f32.mrf.mxu1 }
 0x233   : > { %v5895_v40 = vpop.permute.xlu2 %2078 }
 0x234   : > { %v5899_v15 = vpop.permute.xlu0 %2081  ;;  %v5901_v53 = vpop.f32.mrf.mxu3 }
 0x235   : > { %3826 = vmatmul.msk.f32.vlgmr.msrb.gmra.mxu3 %vm2008_vm11, %v7105_v2  ;;  %vm2108_vm11 = vcmp.eq.s32.totalorder %v5865_v11, %v4832_v62  ;;  %v6027_v11 = vld [vmem:[%s4459_s15 + $0x18] sm:$0xff] }
 0x236   : > { %2655 = vperm.xlu0 %4124, %v7205_v9  }
 0x238   : > { %2422 = vperm.xlu1 %4122, %v7199_v22   ;;  %v2058_v26 = vpop.permute.xlu1 %2057 }
 0x239   : > { %vm2104_vm13 = vcmp.eq.s32.totalorder %v2058_v26, %v4832_v62  ;;  %3757 = vmatmul.msk.f32.gmra.mxu0 %vm1777_vm12, %v7105_v2  ;;  %v7266_v26 = vld [vmem:[#allocation41_spill] sm:$0xff]  ;;  %vm2013_vm12 = vcmp.eq.s32.totalorder %v5720_v38, %v4832_v62  ;;  %v6043_v38 = vld [vmem:[%s4313_s20 + $0x38] sm:$0xff] }
 0x23a   : > { %2425 = vperm.xlu2 %4120, %v7200_v12   ;;  %3810 = vmatmul.msk.f32.vlgmr.msrb.gmra.mxu2 %vm2104_vm13, %v7105_v2  ;;  %v5930_v12 = vpop.f32.mrf.mxu0  ;;  %v5935_v19 = vpop.f32.mrf.mxu1  ;;  %vm1779_vm2 = vcmp.eq.s32.totalorder %v7266_v26, %v4832_v62  ;;  %vm2109_vm13 = vcmp.eq.s32.totalorder %v5867_v37, %v4832_v62  ;;  %v6059_v37 = vld [vmem:[%s4459_s15 + $0x20] sm:$0xff] }
 0x23b   : > { %v5916_v8 = vpop.permute.xlu2 %2087  ;;  %7265 = vst [vmem:[#allocation35_spill] sm:$0xff] %v5930_v12 }
 0x23c   : > { %v5920_v9 = vpop.permute.xlu0 %2090  ;;  %v5922_v7 = vpop.f32.mrf.mxu2 }
 0x23d   : > { %3827 = vmatmul.msk.f32.gmra.mxu3 %vm2009_vm14, %v7105_v2  ;;  %v5925_v22 = vpop.f32.mrf.mxu3  ;;  %vm2014_vm14 = vcmp.eq.s32.totalorder %v5722_v29, %v4832_v62 }
 0x23e   : > { %2664 = vperm.xlu0 %4124, %v7213_v32  }
 0x240   : > { %2431 = vperm.xlu1 %4122, %v7206_v5  }
 0x241   : > { %v2067_v46 = vpop.permute.xlu1 %2066  ;;  %3758 = vmatmul.msk.f32.gmra.mxu0 %vm1778_vm15, %v7105_v2 }
 0x242   : > { %2434 = vperm.xlu2 %4120, %v7209_v58   ;;  %3811 = vmatmul.msk.f32.gmra.mxu2 %vm2105_vm0, %v7105_v2  ;;  %v5964_v12 = vpop.f32.mrf.mxu1  ;;  %vm2107_vm7 = vcmp.eq.s32.totalorder %v2067_v46, %v4832_v62  ;;  %v6010_v46 = vld [vmem:[%s4313_s20 + $0x20] sm:$0xff] }
 0x243   : > { %v5940_v32 = vpop.permute.xlu2 %2096 }
 0x245   : > { %3828 = vmatmul.msk.f32.gmra.mxu3 %vm2010_vm1, %v7105_v2  ;;  %v5945_v5 = vpop.permute.xlu0 %2099  ;;  %vm2015_vm1 = vcmp.eq.s32.totalorder %v5830_v27, %v4832_v62  ;;  %v4174_v27 = vld [vmem:[%s4459_s15] sm:$0xff] }
 0x246   : > { %2673 = vperm.xlu0 %4124, %v7223_v0   ;;  %v5948_v23 = vpop.f32.mrf.mxu2  ;;  %v5950_v49 = vpop.f32.mrf.mxu3 }
 0x247   : > { %v5962_v0 = vpop.f32.mrf.mxu0 }
 0x248   : > { %2440 = vperm.xlu1 %4122, %v7216_v59   ;;  %7268 = vst [vmem:[#allocation50_spill] sm:$0xff] %v5962_v0 }
 0x249   : > { %v5957_v58 = vpop.permute.xlu1 %2075  ;;  %3759 = vmatmul.msk.f32.gmra.mxu0 %vm1779_vm2, %v7105_v2  ;;  %vm2111_vm2 = vcmp.eq.s32.totalorder %v5895_v40, %v4832_v62 }
 0x24a   : > { %4123 = vset.pattern.permute.xlu2 %v7267_v60  ;;  %3812 = vmatmul.msk.f32.gmra.mxu2 %vm2106_vm3, %v7105_v2  ;;  %vm2110_vm15 = vcmp.eq.s32.totalorder %v5957_v58, %v4832_v62 }
 0x24b   : > { %2637 = vperm.xlu2 %4123, %v7219_v17  }
 0x24c   : > { %v2300_v59 = vpop.permute.xlu2 %2299 }
 0x24d   : > { %3829 = vmatmul.msk.f32.gmra.mxu3 %vm2011_vm4, %v7105_v2  ;;  %vm2346_vm5 = vcmp.eq.s32.totalorder %v2300_v59, %v4832_v62  ;;  %vm2016_vm4 = vcmp.eq.s32.totalorder %v5749_v3, %v4832_v62  ;;  %v7038_v3 = vmov 7  }
 0x24e   : > { %2736 = vperm.xlu0 %4124, %v5171_v21   ;;  %v2303_v56 = vpop.permute.xlu0 %2302  ;;  %3890 = vmatmul.msk.f32.vlgmr.msrb.gmra.mxu1 %vm2346_vm5, %v7105_v2  ;;  %vm2112_vm5 = vcmp.eq.s32.totalorder %v5899_v15, %v4832_v62 }
 0x24f   : > { %v5973_v26 = vpop.f32.mrf.mxu2  ;;  %v5975_v0 = vpop.f32.mrf.mxu3  ;;  %vm2347_vm8 = vcmp.eq.s32.totalorder %v2303_v56, %v4832_v62  ;;  %v6018_v56 = vld [vmem:[%s4313_s20 + $0x28] sm:$0xff] }
 0x250   : > { %4125 = vset.pattern.permute.xlu1 %v7267_v60  ;;  %v5992_v50 = vpop.f32.mrf.mxu0  ;;  %v6075_v60 = vld [vmem:[%s4313_s20 + $0x50] sm:$0xff] }
 0x251   : > { %2643 = vperm.xlu1 %4125, %v7226_v47   ;;  %v5982_v17 = vpop.permute.xlu1 %2084  ;;  %3760 = vmatmul.msk.f32.gmra.mxu0 %vm1780_vm6, %v7105_v2  ;;  %7269 = vst [vmem:[#allocation41_spill] sm:$0xff] %v5992_v50  ;;  %v5994_v47 = vpop.f32.mrf.mxu1 }
 0x252   : > { %3813 = vmatmul.msk.f32.gmra.mxu2 %vm2107_vm7, %v7105_v2  ;;  %vm2017_vm7 = vcmp.eq.s32.totalorder %v5751_v39, %v4832_v62 }
 0x253   : > { %2646 = vperm.xlu2 %4123, %v7228_v34  }
 0x254   : > { %v5990_v21 = vpop.permute.xlu2 %2308 }
 0x255   : > { %3830 = vmatmul.msk.f32.gmra.mxu3 %vm2012_vm9, %v7105_v2  ;;  %vm2349_vm3 = vcmp.eq.s32.totalorder %v5990_v21, %v4832_v62 }
 0x256   : > { %2739 = vperm.xlu0 %4124, %v5409_v16   ;;  %v5998_v42 = vpop.permute.xlu0 %2317  ;;  %3891 = vmatmul.msk.f32.gmra.mxu1 %vm2347_vm8, %v7105_v2  ;;  %vm2113_vm8 = vcmp.eq.s32.totalorder %v5982_v17, %v4832_v62 }
 0x258   : > { %v6003_v34 = vpop.f32.mrf.mxu2  ;;  %v6005_v6 = vpop.f32.mrf.mxu3 }
 0x259   : > { %7270 = vst [vmem:[#allocation63_spill] sm:$0xff] %v6003_v34  ;;  %2649 = vperm.xlu1 %4125, %v6010_v46   ;;  %v6013_v59 = vpop.permute.xlu1 %2093  ;;  %3761 = vmatmul.msk.f32.gmra.mxu0 %vm1781_vm10, %v7105_v2  ;;  %v6032_v48 = vpop.f32.mrf.mxu0  ;;  %vm2018_vm10 = vcmp.eq.s32.totalorder %v5859_v57, %v4832_v62 }
 0x25a   : > { %7271 = vst [vmem:[#allocation64_spill] sm:$0xff] %v6005_v6  ;;  %3814 = vmatmul.msk.f32.gmra.mxu2 %vm2108_vm11, %v7105_v2  ;;  %v6034_v25 = vpop.f32.mrf.mxu1  ;;  %v4177_v6 = vld [vmem:[%s4313_s20] sm:$0xff]  ;;  %vm2114_vm11 = vcmp.eq.s32.totalorder %v5916_v8, %v4832_v62  ;;  %v6198_v8 = vld [vmem:[%s4459_s15 + $0x48] sm:$0xff] }
 0x25b   : > { %2652 = vperm.xlu2 %4123, %v6018_v56   ;;  %7272 = vst [vmem:[#allocation65_spill] sm:$0xff] %v6032_v48 }
 0x25c   : > { %v6023_v24 = vpop.permute.xlu2 %2314  ;;  %7273 = vst [vmem:[#allocation66_spill] sm:$0xff] %v6034_v25 }
 0x25d   : > { %3831 = vmatmul.msk.f32.gmra.mxu3 %vm2013_vm12, %v7105_v2  ;;  %vm2351_vm9 = vcmp.eq.s32.totalorder %v6023_v24, %v4832_v62  ;;  %vm2352_vm12 = vcmp.eq.s32.totalorder %v5998_v42, %v4832_v62 }
 0x25e   : > { %2742 = vperm.xlu0 %4124, %v6027_v11   ;;  %v6030_v50 = vpop.permute.xlu0 %2326 }
 0x260   : > { %v6036_v28 = vpop.f32.mrf.mxu2  ;;  %v6038_v10 = vpop.f32.mrf.mxu3 }
 0x261   : > { %7274 = vst [vmem:[#allocation67_spill] sm:$0xff] %v6036_v28  ;;  %2658 = vperm.xlu1 %4125, %v6043_v38   ;;  %v6046_v63 = vpop.permute.xlu1 %2102  ;;  %v6068_v52 = vpop.f32.mrf.mxu0  ;;  %v6080_v28 = vld [vmem:[%s4313_s20 + $0x58] sm:$0xff] }
 0x262   : > { %7275 = vst [vmem:[#allocation68_spill] sm:$0xff] %v6038_v10  ;;  %3815 = vmatmul.msk.f32.gmra.mxu2 %vm2109_vm13, %v7105_v2  ;;  %v6072_v29 = vpop.f32.mrf.mxu1  ;;  %vm2019_vm13 = vcmp.eq.s32.totalorder %v5784_v31, %v4832_v62 }
 0x263   : > { %2661 = vperm.xlu2 %4123, %v6050_v54   ;;  %7278 = vst [vmem:[#allocation71_spill] sm:$0xff] %v6072_v29 }
 0x264   : > { %v6055_v48 = vpop.permute.xlu2 %2323 }
 0x265   : > { %3832 = vmatmul.msk.f32.gmra.mxu3 %vm2014_vm14, %v7105_v2  ;;  %vm2115_vm14 = vcmp.eq.s32.totalorder %v5920_v9, %v4832_v62  ;;  %v6227_v9 = vld [vmem:[%s4459_s15 + $0x50] sm:$0xff] }
 0x266   : > { %2745 = vperm.xlu0 %4124, %v6059_v37   ;;  %v6062_v45 = vpop.permute.xlu0 %2335 }
 0x268   : > { %v6064_v36 = vpop.f32.mrf.mxu2  ;;  %v6066_v33 = vpop.f32.mrf.mxu3 }
 0x269   : > { %7276 = vst [vmem:[#allocation69_spill] sm:$0xff] %v6064_v36  ;;  %2667 = vperm.xlu1 %4125, %v6075_v60  }
 0x26a   : > { %7277 = vst [vmem:[#allocation70_spill] sm:$0xff] %v6066_v33  ;;  %v2306_v10 = vpop.permute.xlu1 %2305  ;;  %3816 = vmatmul.msk.f32.gmra.mxu2 %vm2110_vm15, %v7105_v2 }
 0x26b   : > { %2670 = vperm.xlu2 %4123, %v6080_v28   ;;  %vm2348_vm0 = vcmp.eq.s32.totalorder %v2306_v10, %v4832_v62  ;;  %v6099_v10 = vpop.f32.mrf.mxu0 }
 0x26c   : > { %v6086_v58 = vpop.permute.xlu2 %2332  ;;  %3892 = vmatmul.msk.f32.gmra.mxu1 %vm2348_vm0, %v7105_v2  ;;  %vm2020_vm0 = vcmp.eq.s32.totalorder %v5778_v41, %v4832_v62 }
 0x26d   : > { %3833 = vmatmul.msk.f32.gmra.mxu3 %vm2015_vm1, %v7105_v2 }
 0x26e   : > { %2748 = vperm.xlu0 %4124, %v5448_v61   ;;  %v6091_v33 = vpop.permute.xlu0 %2344  ;;  %v6105_v61 = vpop.f32.mrf.mxu1 }
 0x26f   : > { %7281 = vst [vmem:[#allocation74_spill] sm:$0xff] %v6105_v61 }
 0x270   : > { %v6093_v36 = vpop.f32.mrf.mxu2  ;;  %v6095_v29 = vpop.f32.mrf.mxu3 }
 0x271   : > { %7279 = vst [vmem:[#allocation72_spill] sm:$0xff] %v6093_v36  ;;  %2733 = vperm.xlu1 %4125, %v4174_v27   ;;  %v6108_v36 = vld [vmem:[%s4313_s20 + $0x68] sm:$0xff] }
 0x272   : > { %7280 = vst [vmem:[#allocation73_spill] sm:$0xff] %v6095_v29  ;;  %v2312_v4 = vpop.permute.xlu1 %2311  ;;  %3817 = vmatmul.msk.f32.gmra.mxu2 %vm2111_vm2, %v7105_v2  ;;  %v6118_v29 = vld [vmem:[%s4459_s15 + $0x30] sm:$0xff]  ;;  %vm2116_vm2 = vcmp.eq.s32.totalorder %v6013_v59, %v4832_v62 }
 0x273   : > { %7282 = vst [vmem:[#allocation75_spill] sm:$0xff] %v6108_v36  ;;  %2676 = vperm.xlu2 %4123, %v6108_v36   ;;  %v6134_v34 = vpop.f32.mrf.mxu0  ;;  %vm2350_vm6 = vcmp.eq.s32.totalorder %v2312_v4, %v4832_v62 }
 0x274   : > { %v6113_v40 = vpop.permute.xlu2 %2341  ;;  %3893 = vmatmul.msk.f32.gmra.mxu1 %vm2349_vm3, %v7105_v2 }
 0x275   : > { %3834 = vmatmul.msk.f32.gmra.mxu3 %vm2016_vm4, %v7105_v2  ;;  %vm2021_vm4 = vcmp.eq.s32.totalorder %v5889_v30, %v4832_v62 }
 0x276   : > { %2751 = vperm.xlu0 %4124, %v6118_v29   ;;  %v6121_v21 = vpop.permute.xlu0 %2401 }
 0x278   : > { %v6123_v61 = vpop.f32.mrf.mxu2  ;;  %v6125_v25 = vpop.f32.mrf.mxu3 }
 0x279   : > { %7283 = vst [vmem:[#allocation76_spill] sm:$0xff] %v6123_v61  ;;  %4126 = vset.pattern.permute.xlu1 %v7038_v3 }
 0x27a   : > { %7284 = vst [vmem:[#allocation77_spill] sm:$0xff] %v6125_v25  ;;  %v6130_v36 = vpop.permute.xlu1 %2320  ;;  %2975 = vperm.xlu1 %4126, %v4177_v6   ;;  %3818 = vmatmul.msk.f32.gmra.mxu2 %vm2112_vm5, %v7105_v2  ;;  %v6143_v25 = vpop.f32.mrf.mxu1  ;;  %v6147_v6 = vld [vmem:[%s4459_s15 + $0x38] sm:$0xff]  ;;  %vm2354_vm5 = vcmp.eq.s32.totalorder %v6055_v48, %v4832_v62 }
 0x27b   : > { %4127 = vset.pattern.permute.xlu2 %v7038_v3  ;;  %7285 = vst [vmem:[#allocation78_spill] sm:$0xff] %v6143_v25  ;;  %v4180_v25 = vld [vmem:[%s4459_s15 + $0x8] sm:$0xff]  ;;  %v6170_v17 = vpop.f32.mrf.mxu0  ;;  %vm2353_vm1 = vcmp.eq.s32.totalorder %v6130_v36, %v4832_v62 }
 0x27c   : > { %3071 = vperm.xlu2 %4127, %v4174_v27   ;;  %v6140_v15 = vpop.permute.xlu2 %2398  ;;  %3894 = vmatmul.msk.f32.gmra.mxu1 %vm2350_vm6, %v7105_v2  ;;  %v4179_v27 = vld [vmem:[%s4313_s20 + $0x8] sm:$0xff]  ;;  %vm2117_vm6 = vcmp.eq.s32.totalorder %v5940_v32, %v4832_v62 }
 0x27d   : > { %3835 = vmatmul.msk.f32.gmra.mxu3 %vm2017_vm7, %v7105_v2  ;;  %vm2443_vm3 = vcmp.eq.s32.totalorder %v6140_v15, %v4832_v62  ;;  %vm2444_vm7 = vcmp.eq.s32.totalorder %v6121_v21, %v4832_v62  ;;  %v4185_v32 = vld [vmem:[%s4459_s15 + $0x28] sm:$0xff]  ;;  %v6284_v21 = vld [vmem:[%s4459_s15 + $0x60] sm:$0xff] }
 0x27e   : > { %2754 = vperm.xlu0 %4124, %v6147_v6   ;;  %v6150_v4 = vpop.permute.xlu0 %2410 }
 0x280   : > { %v6152_v3 = vpop.f32.mrf.mxu2  ;;  %v6154_v61 = vpop.f32.mrf.mxu3 }
 0x281   : > { %7286 = vst [vmem:[#allocation79_spill] sm:$0xff] %v6152_v3 }
 0x282   : > { %7287 = vst [vmem:[#allocation80_spill] sm:$0xff] %v6154_v61  ;;  %v6158_v39 = vpop.permute.xlu1 %2329  ;;  %2978 = vperm.xlu1 %4126, %v4179_v27   ;;  %3819 = vmatmul.msk.f32.gmra.mxu2 %vm2113_vm8, %v7105_v2  ;;  %v6176_v61 = vpop.f32.mrf.mxu1  ;;  %vm2022_vm8 = vcmp.eq.s32.totalorder %v5813_v44, %v4832_v62 }
 0x283   : > { %7288 = vst [vmem:[#allocation81_spill] sm:$0xff] %v6176_v61  ;;  %v4183_v61 = vld [vmem:[%s4313_s20 + $0x18] sm:$0xff] }
 0x284   : > { %3074 = vperm.xlu2 %4127, %v4180_v25   ;;  %v6167_v3 = vpop.permute.xlu2 %2407  ;;  %3895 = vmatmul.msk.f32.gmra.mxu1 %vm2351_vm9, %v7105_v2  ;;  %vm2355_vm9 = vcmp.eq.s32.totalorder %v6030_v50, %v4832_v62 }
 0x285   : > { %3836 = vmatmul.msk.f32.gmra.mxu3 %vm2018_vm10, %v7105_v2  ;;  %vm2118_vm10 = vcmp.eq.s32.totalorder %v5945_v5, %v4832_v62  ;;  %v944_v5 = vadd.f32 %v5876_v55, %v5863_v18 }
 0x286   : > { %2757 = vperm.xlu0 %4124, %v5483_v1   ;;  %v6174_v27 = vpop.permute.xlu0 %2419 }
 0x288   : > { %v6178_v24 = vpop.f32.mrf.mxu2  ;;  %v6180_v57 = vpop.f32.mrf.mxu3 }
 0x289   : > { %7289 = vst [vmem:[#allocation82_spill] sm:$0xff] %v6178_v24 }
 0x28a   : > { %7290 = vst [vmem:[#allocation83_spill] sm:$0xff] %v6180_v57  ;;  %v6184_v25 = vpop.permute.xlu1 %2338  ;;  %2981 = vperm.xlu1 %4126, %v4181_v20   ;;  %3820 = vmatmul.msk.f32.gmra.mxu2 %vm2114_vm11, %v7105_v2  ;;  %v6203_v57 = vpop.f32.mrf.mxu0 }
 0x28c   : > { %3077 = vperm.xlu2 %4127, %v5409_v16   ;;  %v6193_v1 = vpop.permute.xlu2 %2416  ;;  %3896 = vmatmul.msk.f32.gmra.mxu1 %vm2352_vm12, %v7105_v2  ;;  %v6211_v16 = vpop.f32.mrf.mxu1  ;;  %vm2023_vm12 = vcmp.eq.s32.totalorder %v5807_v51, %v4832_v62  ;;  %v1266_v51 = vadd.f32 %v5880_v13, %v6068_v52  ;;  %v7301_v13 = vld [vmem:[#allocation12_spill] sm:$0xff] }
 0x28d   : > { %3837 = vmatmul.msk.f32.gmra.mxu3 %vm2019_vm13, %v7105_v2  ;;  %vm2356_vm13 = vcmp.eq.s32.totalorder %v6158_v39, %v4832_v62 }
 0x28e   : > { %2760 = vperm.xlu0 %4124, %v6198_v8   ;;  %v6201_v20 = vpop.permute.xlu0 %2428 }
 0x290   : > { %v6205_v42 = vpop.f32.mrf.mxu2  ;;  %v6207_v31 = vpop.f32.mrf.mxu3 }
 0x291   : > { %7291 = vst [vmem:[#allocation84_spill] sm:$0xff] %v6205_v42 }
 0x292   : > { %7292 = vst [vmem:[#allocation85_spill] sm:$0xff] %v6207_v31  ;;  %v2396_v24 = vpop.permute.xlu1 %2395  ;;  %2984 = vperm.xlu1 %4126, %v4183_v61   ;;  %3821 = vmatmul.msk.f32.gmra.mxu2 %vm2115_vm14, %v7105_v2  ;;  %v6238_v36 = vpop.f32.mrf.mxu0  ;;  %vm2119_vm14 = vcmp.eq.s32.totalorder %v6046_v63, %v4832_v62 }
 0x293   : > { %vm2442_vm15 = vcmp.eq.s32.totalorder %v2396_v24, %v4832_v62 }
 0x294   : > { %3080 = vperm.xlu2 %4127, %v6027_v11   ;;  %v6221_v31 = vpop.permute.xlu2 %2425  ;;  %3874 = vmatmul.msk.f32.vlgmr.msrb.gmra.mxu0 %vm2442_vm15, %v7105_v2  ;;  %v6244_v42 = vpop.f32.mrf.mxu1 }
 0x295   : > { %3838 = vmatmul.msk.f32.gmra.mxu3 %vm2020_vm0, %v7105_v2  ;;  %3897 = vmatmul.msk.f32.gmra.mxu1 %vm2353_vm1, %v7105_v2  ;;  %vm2446_vm0 = vcmp.eq.s32.totalorder %v6167_v3, %v4832_v62  ;;  %vm2357_vm1 = vcmp.eq.s32.totalorder %v6086_v58, %v4832_v62  ;;  %v7303_v3 = vld [vmem:[#allocation61_spill] sm:$0xff]  ;;  %v7304_v58 = vld [vmem:[#allocation20_spill] sm:$0xff] }
 0x296   : > { %2763 = vperm.xlu0 %4124, %v6227_v9   ;;  %v6230_v61 = vpop.permute.xlu0 %2437 }
 0x298   : > { %v6232_v41 = vpop.f32.mrf.mxu2  ;;  %v6234_v24 = vpop.f32.mrf.mxu3 }
 0x299   : > { %7293 = vst [vmem:[#allocation86_spill] sm:$0xff] %v6232_v41 }
 0x29a   : > { %7294 = vst [vmem:[#allocation87_spill] sm:$0xff] %v6234_v24  ;;  %v2405_v11 = vpop.permute.xlu1 %2404  ;;  %2987 = vperm.xlu1 %4126, %v6010_v46   ;;  %3822 = vmatmul.msk.f32.gmra.mxu2 %vm2116_vm2, %v7105_v2  ;;  %v1283_v24 = vmax.f32 %v944_v5, %v1266_v51 }
 0x29b   : > { %vm2445_vm11 = vcmp.eq.s32.totalorder %v2405_v11, %v4832_v62 }
 0x29c   : > { %3083 = vperm.xlu2 %4127, %v6059_v37   ;;  %3875 = vmatmul.msk.f32.gmra.mxu0 %vm2443_vm3, %v7105_v2  ;;  %v6253_v46 = vpop.permute.xlu2 %2434  ;;  %v6279_v37 = vpop.f32.mrf.mxu1  ;;  %vm2447_vm3 = vcmp.eq.s32.totalorder %v6150_v4, %v4832_v62 }
 0x29d   : > { %3839 = vmatmul.msk.f32.gmra.mxu3 %vm2021_vm4, %v7105_v2  ;;  %3898 = vmatmul.msk.f32.gmra.mxu1 %vm2354_vm5, %v7105_v2  ;;  %vm2358_vm4 = vcmp.eq.s32.totalorder %v6062_v45, %v4832_v62  ;;  %v7310_v45 = vld [vmem:[#allocation6_spill] sm:$0xff] }
 0x29e   : > { %2766 = vperm.xlu0 %4124, %v5510_v43   ;;  %v6275_v43 = vpop.f32.mrf.mxu0 }
 0x2a0   : > { %v6257_v59 = vpop.f32.mrf.mxu2  ;;  %v6259_v15 = vpop.f32.mrf.mxu3 }
 0x2a1   : > { %7295 = vst [vmem:[#allocation88_spill] sm:$0xff] %v6257_v59  ;;  %v6263_v48 = vpop.permute.xlu0 %2640  ;;  %v4187_v59 = vld [vmem:[%s4313_s20 + $0x30] sm:$0xff] }
 0x2a2   : > { %7296 = vst [vmem:[#allocation89_spill] sm:$0xff] %v6259_v15  ;;  %v6265_v30 = vpop.permute.xlu1 %2413  ;;  %2990 = vperm.xlu1 %4126, %v6018_v56   ;;  %3823 = vmatmul.msk.f32.gmra.mxu2 %vm2117_vm6, %v7105_v2  ;;  %vm2685_vm2 = vcmp.eq.s32.totalorder %v6263_v48, %v4832_v62  ;;  %v7308_v48 = vld [vmem:[#allocation46_spill] sm:$0xff]  ;;  %vm2359_vm6 = vcmp.eq.s32.totalorder %v6184_v25, %v4832_v62 }
 0x2a3   : > { %vm2448_vm5 = vcmp.eq.s32.totalorder %v6265_v30, %v4832_v62  ;;  %v7313_v30 = vld [vmem:[#allocation53_spill] sm:$0xff] }
 0x2a4   : > { %3086 = vperm.xlu2 %4127, %v4185_v32   ;;  %3876 = vmatmul.msk.f32.gmra.mxu0 %vm2444_vm7, %v7105_v2  ;;  %v6317_v39 = vpop.f32.mrf.mxu1 }
 0x2a5   : > { %3840 = vmatmul.msk.f32.gmra.mxu3 %vm2022_vm8, %v7105_v2  ;;  %v2638_v56 = vpop.permute.xlu2 %2637  ;;  %3899 = vmatmul.msk.f32.gmra.mxu1 %vm2355_vm9, %v7105_v2  ;;  %7299 = vst [vmem:[#allocation92_spill] sm:$0xff] %v6317_v39  ;;  %vm2449_vm9 = vcmp.eq.s32.totalorder %v6193_v1, %v4832_v62 }
 0x2a6   : > { %2769 = vperm.xlu0 %4124, %v6284_v21   ;;  %v6312_v11 = vpop.f32.mrf.mxu0  ;;  %vm2684_vm15 = vcmp.eq.s32.totalorder %v2638_v56, %v4832_v62 }
 0x2a8   : > { %v6287_v44 = vpop.f32.mrf.mxu2  ;;  %v6289_v50 = vpop.f32.mrf.mxu3 }
 0x2a9   : > { %7297 = vst [vmem:[#allocation90_spill] sm:$0xff] %v6287_v44  ;;  %v6293_v32 = vpop.permute.xlu0 %2655 }
 0x2aa   : > { %7298 = vst [vmem:[#allocation91_spill] sm:$0xff] %v6289_v50  ;;  %v6295_v15 = vpop.permute.xlu1 %2422  ;;  %2993 = vperm.xlu1 %4126, %v4187_v59   ;;  %3824 = vmatmul.msk.f32.gmra.mxu2 %vm2118_vm10, %v7105_v2  ;;  %v4188_v50 = vld [vmem:[%s4459_s15 + $0x68] sm:$0xff]  ;;  %vm2360_vm10 = vcmp.eq.s32.totalorder %v6113_v40, %v4832_v62 }
 0x2ac   : > { %3089 = vperm.xlu2 %4127, %v6118_v29   ;;  %3877 = vmatmul.msk.f32.gmra.mxu0 %vm2445_vm11, %v7105_v2 }
 0x2ad   : > { %3841 = vmatmul.msk.f32.gmra.mxu3 %vm2023_vm12, %v7105_v2  ;;  %v6309_v59 = vpop.permute.xlu2 %2646  ;;  %3900 = vmatmul.msk.f32.gmra.mxu1 %vm2356_vm13, %v7105_v2  ;;  %vm2450_vm12 = vcmp.eq.s32.totalorder %v6174_v27, %v4832_v62  ;;  %vm2361_vm13 = vcmp.eq.s32.totalorder %v6091_v33, %v4832_v62 }
 0x2ae   : > { %2772 = vperm.xlu0 %4124, %v4188_v50   ;;  %v6350_v5 = vpop.f32.mrf.mxu0  ;;  %vm2687_vm8 = vcmp.eq.s32.totalorder %v6309_v59, %v4832_v62 }
 0x2af   : > { %7305 = vst [vmem:[#allocation12_spill] sm:$0xff] %v6350_v5 }
 0x2b0   : > { %v1538_v29 = vpop.f32.mrf.mxu2  ;;  %v1603_v44 = vpop.f32.mrf.mxu3 }
 0x2b1   : > { %v1604_v55 = vadd.f32 %v1603_v44, %v1538_v29  ;;  %v6321_v18 = vpop.permute.xlu0 %2664  ;;  %v6343_v44 = vld [vmem:[%s4313_s20 + $0x70] sm:$0xff] }
 0x2b2   : > { %v6324_v41 = vpop.permute.xlu1 %2431  ;;  %2996 = vperm.xlu1 %4126, %v6043_v38   ;;  %3825 = vmatmul.msk.f32.gmra.mxu2 %vm2119_vm14, %v7105_v2  ;;  %v7302_v38 = vld [vmem:[#allocation40_spill] sm:$0xff]  ;;  %vm2451_vm14 = vcmp.eq.s32.totalorder %v6295_v15, %v4832_v62 }
 0x2b3   : > { %v6330_v52 = vmax.f32 %v1283_v24, %v1604_v55  ;;  %v899_v56 = vadd.f32 %v7302_v38, %v7301_v13  ;;  %v1221_v24 = vadd.f32 %v7304_v58, %v7303_v3  ;;  %v1897_v13 = vadd.f32 %v5907_v35, %v6099_v10  ;;  %v6356_v38 = vpop.f32.mrf.mxu1 }
 0x2b4   : > { %3092 = vperm.xlu2 %4127, %v6147_v6   ;;  %3878 = vmatmul.msk.f32.gmra.mxu0 %vm2446_vm0, %v7105_v2  ;;  %v1559_v6 = vadd.f32 %v5901_v53, %v5893_v14  ;;  %7306 = vst [vmem:[#allocation40_spill] sm:$0xff] %v6356_v38  ;;  %v4190_v53 = vld [vmem:[%s4459_s15 + $0x40] sm:$0xff]  ;;  %v7309_v58 = vmov 7   ;;  %vm2690_vm0 = vcmp.eq.s32.totalorder %v6293_v32, %v4832_v62  ;;  %v7337_v32 = vld [vmem:[#allocation26_spill] sm:$0xff] }
 0x2b5   : > { %7300 = vst [vmem:[#allocation93_spill] sm:$0xff] %v6330_v52  ;;  %v6336_v63 = vpop.permute.xlu2 %2652  ;;  %3901 = vmatmul.msk.f32.gmra.mxu1 %vm2357_vm1, %v7105_v2  ;;  %3954 = vmatmul.msk.f32.vlgmr.msra.gmra.mxu3 %vm2684_vm15, %v7105_v2  ;;  %v1268_v55 = vmax.f32 %v899_v56, %v1221_v24  ;;  %v7311_v24 = vld [vmem:[#allocation36_spill] sm:$0xff]  ;;  %vm2452_vm1 = vcmp.eq.s32.totalorder %v6221_v31, %v4832_v62 }
 0x2b6   : > { %2679 = vperm.xlu0 %4124, %v6343_v44   ;;  %vm2689_vm15 = vcmp.eq.s32.totalorder %v6336_v63, %v4832_v62  ;;  %v7332_v63 = vld [vmem:[#allocation68_spill] sm:$0xff] }
 0x2b7   : > { %v1606_v14 = vmax.f32 %v1268_v55, %v1559_v6  ;;  %v1224_v6 = vadd.f32 %v7311_v24, %v7310_v45  ;;  %v1562_v55 = vadd.f32 %v5925_v22, %v5922_v7 }
 0x2b8   : > { %v2234_v51 = vpop.f32.mrf.mxu3 }
 0x2b9   : > { %v6352_v29 = vpop.permute.xlu0 %2673  ;;  %v1944_v4 = vmax.f32 %v1606_v14, %v1897_v13  ;;  %v6386_v13 = vpop.f32.mrf.mxu0 }
 0x2ba   : > { %v6360_v52 = vpop.permute.xlu1 %2440  ;;  %2999 = vperm.xlu1 %4126, %v6050_v54   ;;  %v7307_v54 = vld [vmem:[#allocation23_spill] sm:$0xff] }
 0x2bb   : > { %v902_v56 = vadd.f32 %v7308_v48, %v7307_v54  ;;  %v1900_v54 = vadd.f32 %v5935_v19, %v6134_v34  ;;  %v6393_v7 = vpop.f32.mrf.mxu1  ;;  %v7312_v34 = vld [vmem:[#allocation52_spill] sm:$0xff]  ;;  %v6405_v48 = vld [vmem:[%s4313_s20 + $0x78] sm:$0xff] }
 0x2bc   : > { %3095 = vperm.xlu2 %4127, %v4190_v53   ;;  %3879 = vmatmul.msk.f32.gmra.mxu0 %vm2447_vm3, %v7105_v2  ;;  %vm2453_vm3 = vcmp.eq.s32.totalorder %v6201_v20, %v4832_v62 }
 0x2bd   : > { %v6369_v35 = vpop.permute.xlu2 %2661  ;;  %3902 = vmatmul.msk.f32.gmra.mxu1 %vm2358_vm4, %v7105_v2  ;;  %3955 = vmatmul.msk.f32.gmra.mxu3 %vm2685_vm2, %v7105_v2  ;;  %v2169_v10 = vpop.f32.mrf.mxu2  ;;  %v1269_v39 = vmax.f32 %v902_v56, %v1224_v6  ;;  %v7315_v56 = vld [vmem:[#allocation51_spill] sm:$0xff] }
 0x2be   : > { %v2235_v3 = vadd.f32 %v2234_v51, %v2169_v10  ;;  %4129 = vset.pattern.permute.xlu0 %v7309_v58  ;;  %v4191_v51 = vld [vmem:[%s4313_s20 + $0x48] sm:$0xff] }
 0x2bf   : > { %3110 = vperm.xlu0 %4129, %v4188_v50   ;;  %v1607_v14 = vmax.f32 %v1269_v39, %v1562_v55  ;;  %v905_v39 = vadd.f32 %v7313_v30, %v7312_v34  ;;  %v1568_v34 = vadd.f32 %v5975_v0, %v5973_v26  ;;  %v4193_v0 = vld [vmem:[%s4459_s15 + $0x58] sm:$0xff] }
 0x2c0   : > { %v2237_v53 = vpop.f32.mrf.mxu3  ;;  %v6380_v5 = vmax.f32 %v1944_v4, %v2235_v3  ;;  %v1565_v3 = vadd.f32 %v5950_v49, %v5948_v23 }
 0x2c1   : > { %v6382_v38 = vpop.permute.xlu0 %2736  ;;  %v1945_v10 = vmax.f32 %v1607_v14, %v1900_v54  ;;  %v1903_v54 = vadd.f32 %v5964_v12, %v6170_v17  ;;  %v6425_v23 = vpop.f32.mrf.mxu0  ;;  %v7317_v17 = vld [vmem:[#allocation56_spill] sm:$0xff]  ;;  %v7318_v14 = vld [vmem:[#allocation13_spill] sm:$0xff] }
 0x2c2   : > { %3002 = vperm.xlu1 %4126, %v4191_v51   ;;  %vm2781_vm4 = vcmp.eq.s32.totalorder %v6382_v38, %v4832_v62  ;;  %v4196_v38 = vld [vmem:[%s4459_s15 + $0x78] sm:$0xff] }
 0x2c3   : > { %v2644_v50 = vpop.permute.xlu1 %2643 }
 0x2c4   : > { %3098 = vperm.xlu2 %4127, %v6198_v8   ;;  %vm2686_vm7 = vcmp.eq.s32.totalorder %v2644_v50, %v4832_v62  ;;  %3880 = vmatmul.msk.f32.gmra.mxu0 %vm2448_vm5, %v7105_v2  ;;  %v7314_v8 = vld [vmem:[#allocation48_spill] sm:$0xff]  ;;  %v6435_v50 = vpop.f32.mrf.mxu1 }
 0x2c5   : > { %v6398_v22 = vpop.permute.xlu2 %2670  ;;  %3903 = vmatmul.msk.f32.gmra.mxu1 %vm2359_vm6, %v7105_v2  ;;  %3956 = vmatmul.msk.f32.gmra.mxu3 %vm2686_vm7, %v7105_v2  ;;  %v2172_v19 = vpop.f32.mrf.mxu2  ;;  %v1227_v4 = vadd.f32 %v7315_v56, %v7314_v8  ;;  %v1906_v8 = vadd.f32 %v5994_v47, %v6203_v57  ;;  %v7321_v47 = vld [vmem:[#allocation59_spill] sm:$0xff]  ;;  %vm2454_vm7 = vcmp.eq.s32.totalorder %v6324_v41, %v4832_v62 }
 0x2c6   : > { %v2238_v25 = vadd.f32 %v2237_v53, %v2172_v19  ;;  %v7319_v19 = vld [vmem:[#allocation54_spill] sm:$0xff] }
 0x2c7   : > { %3020 = vperm.xlu0 %4129, %v6405_v48   ;;  %v1270_v55 = vmax.f32 %v905_v39, %v1227_v4 }
 0x2c8   : > { %v2240_v45 = vpop.f32.mrf.mxu3  ;;  %v6412_v24 = vmax.f32 %v1945_v10, %v2238_v25 }
 0x2c9   : > { %v6414_v6 = vpop.permute.xlu0 %2739  ;;  %v1608_v51 = vmax.f32 %v1270_v55, %v1565_v3  ;;  %v6465_v33 = vpop.f32.mrf.mxu0 }
 0x2ca   : > { %3005 = vperm.xlu1 %4126, %v6075_v60   ;;  %v7316_v60 = vld [vmem:[#allocation55_spill] sm:$0xff] }
 0x2cb   : > { %v2650_v53 = vpop.permute.xlu1 %2649  ;;  %v908_v1 = vadd.f32 %v7317_v17, %v7316_v60  ;;  %v1946_v59 = vmax.f32 %v1608_v51, %v1903_v54  ;;  %v7322_v54 = vld [vmem:[#allocation47_spill] sm:$0xff]  ;;  %v7325_v60 = vld [vmem:[#allocation64_spill] sm:$0xff] }
 0x2cc   : > { %3101 = vperm.xlu2 %4127, %v6227_v9   ;;  %3881 = vmatmul.msk.f32.gmra.mxu0 %vm2449_vm9, %v7105_v2  ;;  %v1230_v9 = vadd.f32 %v7319_v19, %v7318_v14  ;;  %vm2688_vm11 = vcmp.eq.s32.totalorder %v2650_v53, %v4832_v62  ;;  %v6463_v55 = vpop.f32.mrf.mxu1  ;;  %v7323_v53 = vld [vmem:[#allocation57_spill] sm:$0xff]  ;;  %v7326_v19 = vld [vmem:[#allocation66_spill] sm:$0xff]  ;;  %vm2782_vm9 = vcmp.eq.s32.totalorder %v6414_v6, %v4832_v62 }
 0x2cd   : > { %v6429_v12 = vpop.permute.xlu2 %2676  ;;  %3904 = vmatmul.msk.f32.gmra.mxu1 %vm2360_vm10, %v7105_v2  ;;  %3957 = vmatmul.msk.f32.gmra.mxu3 %vm2687_vm8, %v7105_v2  ;;  %v2175_v49 = vpop.f32.mrf.mxu2  ;;  %v1233_v51 = vadd.f32 %v7323_v53, %v7322_v54  ;;  %vm2692_vm8 = vcmp.eq.s32.totalorder %v6369_v35, %v4832_v62  ;;  %v7344_v35 = vld [vmem:[#allocation18_spill] sm:$0xff] }
 0x2ce   : > { %v2241_v40 = vadd.f32 %v2240_v45, %v2175_v49  ;;  %v1271_v25 = vmax.f32 %v908_v1, %v1230_v9  ;;  %v7324_v49 = vld [vmem:[#allocation63_spill] sm:$0xff]  ;;  %v1909_v9 = vadd.f32 %v7326_v19, %v6238_v36 }
 0x2cf   : > { %v1571_v17 = vadd.f32 %v7325_v60, %v7324_v49  ;;  %v7328_v36 = vld [vmem:[#allocation31_spill] sm:$0xff] }
 0x2d0   : > { %v2243_v30 = vpop.f32.mrf.mxu3  ;;  %v6441_v39 = vmax.f32 %v1946_v59, %v2241_v40  ;;  %v1609_v4 = vmax.f32 %v1271_v25, %v1568_v34  ;;  %v4194_v34 = vld [vmem:[%s4313_s20 + $0x60] sm:$0xff] }
 0x2d1   : > { %v6443_v10 = vpop.permute.xlu0 %2742  ;;  %v6499_v49 = vpop.f32.mrf.mxu0 }
 0x2d2   : > { %3008 = vperm.xlu1 %4126, %v6080_v28   ;;  %v7320_v28 = vld [vmem:[#allocation58_spill] sm:$0xff]  ;;  %v1947_v27 = vmax.f32 %v1609_v4, %v1906_v8  ;;  %v7327_v4 = vld [vmem:[#allocation27_spill] sm:$0xff] }
 0x2d3   : > { %v6451_v56 = vpop.permute.xlu1 %2658  ;;  %v911_v57 = vadd.f32 %v7321_v47, %v7320_v28  ;;  %v7329_v47 = vld [vmem:[#allocation25_spill] sm:$0xff] }
 0x2d4   : > { %3104 = vperm.xlu2 %4127, %v4193_v0   ;;  %3882 = vmatmul.msk.f32.gmra.mxu0 %vm2450_vm12, %v7105_v2  ;;  %v914_v0 = vadd.f32 %v7328_v36, %v7327_v4  ;;  %v7338_v4 = vld [vmem:[#allocation14_spill] sm:$0xff]  ;;  %vm2691_vm5 = vcmp.eq.s32.totalorder %v6451_v56, %v4832_v62  ;;  %vm2693_vm12 = vcmp.eq.s32.totalorder %v6321_v18, %v4832_v62 }
 0x2d5   : > { %3905 = vmatmul.msk.f32.gmra.mxu1 %vm2361_vm13, %v7105_v2  ;;  %3958 = vmatmul.msk.f32.gmra.mxu3 %vm2688_vm11, %v7105_v2  ;;  %v2178_v26 = vpop.f32.mrf.mxu2  ;;  %v1272_v14 = vmax.f32 %v911_v57, %v1233_v51  ;;  %v7330_v57 = vld [vmem:[#allocation60_spill] sm:$0xff]  ;;  %v6497_v51 = vpop.f32.mrf.mxu1  ;;  %v917_v36 = vadd.f32 %v7338_v4, %v7337_v32  ;;  %vm2455_vm11 = vcmp.eq.s32.totalorder %v6253_v46, %v4832_v62  ;;  %v7352_v46 = vld [vmem:[#allocation15_spill] sm:$0xff] }
 0x2d6   : > { %v6461_v3 = vpop.permute.xlu2 %3071  ;;  %v2244_v45 = vadd.f32 %v2243_v30, %v2178_v26  ;;  %vm2783_vm13 = vcmp.eq.s32.totalorder %v6443_v10, %v4832_v62 }
 0x2d7   : > { %v1610_v25 = vmax.f32 %v1272_v14, %v1571_v17  ;;  %v7334_v14 = vld [vmem:[#allocation71_spill] sm:$0xff] }
 0x2d8   : > { %v2246_v1 = vpop.f32.mrf.mxu3  ;;  %v6471_v59 = vmax.f32 %v1947_v27, %v2244_v45  ;;  %v1236_v27 = vadd.f32 %v7330_v57, %v7329_v47  ;;  %v7331_v45 = vld [vmem:[#allocation67_spill] sm:$0xff]  ;;  %v1912_v19 = vadd.f32 %v7334_v14, %v6275_v43  ;;  %v7340_v47 = vld [vmem:[#allocation4_spill] sm:$0xff] }
 0x2d9   : > { %v6473_v40 = vpop.permute.xlu0 %2745  ;;  %v1948_v26 = vmax.f32 %v1610_v25, %v1909_v9  ;;  %v1574_v54 = vadd.f32 %v7332_v63, %v7331_v45  ;;  %v7342_v45 = vld [vmem:[#allocation70_spill] sm:$0xff] }
 0x2da   : > { %3011 = vperm.xlu1 %4126, %v4194_v34   ;;  %v1273_v17 = vmax.f32 %v914_v0, %v1236_v27  ;;  %v4195_v34 = vld [vmem:[%s4459_s15 + $0x70] sm:$0xff]  ;;  %v7341_v27 = vld [vmem:[#allocation69_spill] sm:$0xff] }
 0x2db   : > { %v6480_v30 = vpop.permute.xlu1 %2667  ;;  %v1577_v63 = vadd.f32 %v7342_v45, %v7341_v27  ;;  %v7348_v27 = vld [vmem:[#allocation76_spill] sm:$0xff]  ;;  %v7349_v45 = vld [vmem:[#allocation77_spill] sm:$0xff] }
 0x2dc   : > { %3107 = vperm.xlu2 %4127, %v6284_v21   ;;  %3883 = vmatmul.msk.f32.gmra.mxu0 %vm2451_vm14, %v7105_v2  ;;  %v1611_v25 = vmax.f32 %v1273_v17, %v1574_v54 }
 0x2dd   : > { %3959 = vmatmul.msk.f32.gmra.mxu3 %vm2689_vm15, %v7105_v2  ;;  %v2181_v8 = vpop.f32.mrf.mxu2  ;;  %vm2456_vm15 = vcmp.eq.s32.totalorder %v6230_v61, %v4832_v62 }
 0x2de   : > { %v6489_v28 = vpop.permute.xlu2 %3074  ;;  %v2247_v15 = vadd.f32 %v2246_v1, %v2181_v8  ;;  %v7335_v1 = vmov 6   ;;  %v7336_v8 = vld [vmem:[#allocation75_spill] sm:$0xff]  ;;  %v1949_v0 = vmax.f32 %v1611_v25, %v1912_v19 }
 0x2e0   : > { %v2249_v21 = vpop.f32.mrf.mxu3  ;;  %v6495_v53 = vmax.f32 %v1948_v26, %v2247_v15  ;;  %v7339_v15 = vld [vmem:[#allocation49_spill] sm:$0xff] }
 0x2e1   : > { %v6501_v60 = vpop.permute.xlu0 %2748  ;;  %v1239_v57 = vadd.f32 %v7340_v47, %v7339_v15  ;;  %v7347_v47 = vld [vmem:[#allocation30_spill] sm:$0xff] }
 0x2e2   : > { %7333 = vst [vmem:[#allocation61_spill] sm:$0xff] %v6495_v53  ;;  %4128 = vset.pattern.permute.xlu1 %v7335_v1 }
 0x2e3   : > { %v2734_v9 = vpop.permute.xlu1 %2733  ;;  %2775 = vperm.xlu1 %4128, %v4195_v34  }
 0x2e4   : > { %3014 = vperm.xlu2 %4127, %v7336_v8   ;;  %vm2780_vm2 = vcmp.eq.s32.totalorder %v2734_v9, %v4832_v62  ;;  %3884 = vmatmul.msk.f32.gmra.mxu0 %vm2452_vm1, %v7105_v2  ;;  %v1274_v9 = vmax.f32 %v917_v36, %v1239_v57  ;;  %v7343_v8 = vld [vmem:[#allocation74_spill] sm:$0xff]  ;;  %vm2694_vm1 = vcmp.eq.s32.totalorder %v6480_v30, %v4832_v62 }
 0x2e5   : > { %3938 = vmatmul.msk.f32.vlgmr.msra.gmra.mxu2 %vm2780_vm2, %v7105_v2  ;;  %3960 = vmatmul.msk.f32.gmra.mxu3 %vm2690_vm0, %v7105_v2  ;;  %v2184_v43 = vpop.f32.mrf.mxu2  ;;  %v1915_v53 = vadd.f32 %v7343_v8, %v6312_v11  ;;  %vm2784_vm0 = vcmp.eq.s32.totalorder %v6473_v40, %v4832_v62  ;;  %v7359_v40 = vld [vmem:[#allocation39_spill] sm:$0xff] }
 0x2e6   : > { %v6518_v31 = vpop.permute.xlu2 %3077  ;;  %v2250_v26 = vadd.f32 %v2249_v21, %v2184_v43  ;;  %v6534_v21 = vpop.f32.mrf.mxu0  ;;  %v1612_v19 = vmax.f32 %v1274_v9, %v1577_v63  ;;  %v1583_v63 = vadd.f32 %v7349_v45, %v7348_v27 }
 0x2e8   : > { %v2252_v54 = vpop.f32.mrf.mxu3  ;;  %v6524_v17 = vmax.f32 %v1949_v0, %v2250_v26  ;;  %v1950_v11 = vmax.f32 %v1612_v19, %v1915_v53  ;;  %v7345_v26 = vld [vmem:[#allocation34_spill] sm:$0xff]  ;;  %v7350_v19 = vld [vmem:[#allocation81_spill] sm:$0xff] }
 0x2e9   : > { %v6526_v14 = vpop.permute.xlu0 %2751  ;;  %v6530_v32 = vpop.f32.mrf.mxu1  ;;  %v923_v6 = vadd.f32 %v7345_v26, %v7344_v35  ;;  %v7353_v35 = vld [vmem:[#allocation8_spill] sm:$0xff] }
 0x2eb   : > { %2682 = vperm.xlu1 %4128, %v6405_v48  }
 0x2ec   : > { %v2976_v25 = vpop.permute.xlu1 %2975  ;;  %3885 = vmatmul.msk.f32.gmra.mxu0 %vm2453_vm3, %v7105_v2  ;;  %4130 = vset.pattern.permute.xlu2 %v7335_v1  ;;  %vm2457_vm3 = vcmp.eq.s32.totalorder %v6360_v52, %v4832_v62 }
 0x2ed   : > { %vm3022_vm6 = vcmp.eq.s32.totalorder %v2976_v25, %v4832_v62  ;;  %3939 = vmatmul.msk.f32.gmra.mxu2 %vm2781_vm4, %v7105_v2  ;;  %3961 = vmatmul.msk.f32.gmra.mxu3 %vm2691_vm5, %v7105_v2  ;;  %v2187_v20 = vpop.f32.mrf.mxu2  ;;  %v1921_v25 = vadd.f32 %v7350_v19, %v6386_v13  ;;  %vm2695_vm4 = vcmp.eq.s32.totalorder %v6398_v22, %v4832_v62  ;;  %v7365_v22 = vld [vmem:[#allocation35_spill] sm:$0xff] }
 0x2ee   : > { %v6546_v48 = vpop.permute.xlu2 %3080  ;;  %v2253_v43 = vadd.f32 %v2252_v54, %v2187_v20  ;;  %4018 = vmatmul.msk.f32.vlgmr.msra.gmra.mxu1 %vm3022_vm6, %v7105_v2  ;;  %2778 = vperm.xlu2 %4130, %v4196_v38   ;;  %v6567_v0 = vpop.f32.mrf.mxu0  ;;  %vm2785_vm5 = vcmp.eq.s32.totalorder %v6501_v60, %v4832_v62 }
 0x2f0   : > { %v6550_v56 = vpop.f32.mrf.mxu3  ;;  %v6552_v4 = vmax.f32 %v1950_v11, %v2253_v43 }
 0x2f1   : > { %v6554_v1 = vpop.permute.xlu0 %2754  ;;  %v6563_v53 = vpop.f32.mrf.mxu1 }
 0x2f3   : > { %4131 = vset.pattern.permute.xlu1 %v7309_v58 }
 0x2f4   : > { %v2979_v36 = vpop.permute.xlu1 %2978  ;;  %3886 = vmatmul.msk.f32.gmra.mxu0 %vm2454_vm7, %v7105_v2  ;;  %3017 = vperm.xlu1 %4131, %v6343_v44   ;;  %v7346_v44 = vld [vmem:[#allocation24_spill] sm:$0xff]  ;;  %vm3118_vm7 = vcmp.eq.s32.totalorder %v6461_v3, %v4832_v62  ;;  %v7369_v3 = vld [vmem:[#allocation11_spill] sm:$0xff] }
 0x2f5   : > { %vm3023_vm10 = vcmp.eq.s32.totalorder %v2979_v36, %v4832_v62  ;;  %3940 = vmatmul.msk.f32.gmra.mxu2 %vm2782_vm9, %v7105_v2  ;;  %3962 = vmatmul.msk.f32.gmra.mxu3 %vm2692_vm8, %v7105_v2  ;;  %v6572_v41 = vpop.f32.mrf.mxu2  ;;  %v1245_v57 = vadd.f32 %v7347_v47, %v7346_v44  ;;  %v7356_v44 = vld [vmem:[#allocation80_spill] sm:$0xff]  ;;  %vm2696_vm8 = vcmp.eq.s32.totalorder %v6352_v29, %v4832_v62 }
 0x2f6   : > { %v6576_v15 = vpop.permute.xlu2 %3083  ;;  %4019 = vmatmul.msk.f32.gmra.mxu1 %vm3023_vm10, %v7105_v2  ;;  %4132 = vset.pattern.permute.xlu2 %v7309_v58  ;;  %v6603_v10 = vpop.f32.mrf.mxu0  ;;  %vm2786_vm9 = vcmp.eq.s32.totalorder %v6526_v14, %v4832_v62  ;;  %v7371_v14 = vld [vmem:[#allocation50_spill] sm:$0xff] }
 0x2f7   : > { %3113 = vperm.xlu2 %4132, %v4195_v34   ;;  %v1276_v8 = vmax.f32 %v923_v6, %v1245_v57  ;;  %v7351_v34 = vld [vmem:[#allocation5_spill] sm:$0xff]  ;;  %v7355_v6 = vld [vmem:[#allocation79_spill] sm:$0xff] }
 0x2f8   : > { %v2258_v54 = vpop.f32.mrf.mxu3  ;;  %v926_v11 = vadd.f32 %v7352_v46, %v7351_v34  ;;  %v1586_v47 = vadd.f32 %v7356_v44, %v7355_v6  ;;  %v7360_v34 = vld [vmem:[#allocation44_spill] sm:$0xff]  ;;  %v7361_v46 = vld [vmem:[#allocation82_spill] sm:$0xff] }
 0x2f9   : > { %v6584_v9 = vpop.permute.xlu0 %2757  ;;  %v1614_v20 = vmax.f32 %v1276_v8, %v1583_v63  ;;  %v6600_v36 = vpop.f32.mrf.mxu1  ;;  %v1251_v30 = vadd.f32 %v7360_v34, %v7359_v40 }
 0x2fb   : > { %v1952_v43 = vmax.f32 %v1614_v20, %v1921_v25  ;;  %v7358_v20 = vld [vmem:[#allocation21_spill] sm:$0xff] }
 0x2fc   : > { %v2982_v58 = vpop.permute.xlu1 %2981  ;;  %3887 = vmatmul.msk.f32.gmra.mxu0 %vm2455_vm11, %v7105_v2  ;;  %3116 = vperm.xlu1 %4131, %v4196_v38   ;;  %v7354_v38 = vld [vmem:[#allocation17_spill] sm:$0xff]  ;;  %vm3119_vm11 = vcmp.eq.s32.totalorder %v6489_v28, %v4832_v62  ;;  %v7376_v28 = vld [vmem:[#allocation43_spill] sm:$0xff] }
 0x2fd   : > { %vm3024_vm14 = vcmp.eq.s32.totalorder %v2982_v58, %v4832_v62  ;;  %3941 = vmatmul.msk.f32.gmra.mxu2 %vm2783_vm13, %v7105_v2  ;;  %3963 = vmatmul.msk.f32.gmra.mxu3 %vm2693_vm12, %v7105_v2  ;;  %v2193_v13 = vpop.f32.mrf.mxu2  ;;  %v1248_v26 = vadd.f32 %v7354_v38, %v7353_v35  ;;  %vm2697_vm12 = vcmp.eq.s32.totalorder %v6429_v12, %v4832_v62 }
 0x2fe   : > { %v2259_v18 = vadd.f32 %v2258_v54, %v2193_v13  ;;  %4020 = vmatmul.msk.f32.gmra.mxu1 %vm3024_vm14, %v7105_v2  ;;  %v6609_v27 = vpop.permute.xlu2 %3086  ;;  %v1924_v54 = vadd.f32 %v6211_v16, %v6425_v23  ;;  %v7357_v23 = vld [vmem:[#allocation33_spill] sm:$0xff]  ;;  %vm2787_vm13 = vcmp.eq.s32.totalorder %v6554_v1, %v4832_v62 }
 0x2ff   : > { %v1277_v8 = vmax.f32 %v926_v11, %v1248_v26  ;;  %v929_v61 = vadd.f32 %v7358_v20, %v7357_v23  ;;  %v7362_v11 = vld [vmem:[#allocation83_spill] sm:$0xff]  ;;  %v6638_v26 = vpop.f32.mrf.mxu0  ;;  %v7367_v20 = vld [vmem:[#allocation84_spill] sm:$0xff]  ;;  %v7378_v1 = vld [vmem:[#allocation41_spill] sm:$0xff] }
 0x300   : > { %v2261_v57 = vpop.f32.mrf.mxu3  ;;  %v6611_v45 = vmax.f32 %v1952_v43, %v2259_v18  ;;  %v1589_v43 = vadd.f32 %v7362_v11, %v7361_v46  ;;  %v7366_v23 = vld [vmem:[#allocation19_spill] sm:$0xff]  ;;  %v1930_v11 = vadd.f32 %v6279_v37, %v6499_v49  ;;  %v7370_v49 = vld [vmem:[#allocation9_spill] sm:$0xff] }
 0x301   : > { %v6613_v63 = vpop.permute.xlu0 %2760  ;;  %v1615_v19 = vmax.f32 %v1277_v8, %v1586_v47  ;;  %v6634_v18 = vpop.f32.mrf.mxu1  ;;  %v1278_v44 = vmax.f32 %v929_v61, %v1251_v30  ;;  %v1927_v47 = vadd.f32 %v6244_v42, %v6465_v33  ;;  %v7363_v33 = vld [vmem:[#allocation37_spill] sm:$0xff]  ;;  %v1254_v60 = vadd.f32 %v7366_v23, %v7365_v22 }
 0x302   : > { %v7368_v61 = vld [vmem:[#allocation85_spill] sm:$0xff] }
 0x303   : > { %v1953_v58 = vmax.f32 %v1615_v19, %v1924_v54  ;;  %v1616_v8 = vmax.f32 %v1278_v44, %v1589_v43  ;;  %v7364_v19 = vld [vmem:[#allocation45_spill] sm:$0xff] }
 0x304   : > { %v2985_v25 = vpop.permute.xlu1 %2984  ;;  %3888 = vmatmul.msk.f32.gmra.mxu0 %vm2456_vm15, %v7105_v2  ;;  %v932_v52 = vadd.f32 %v7364_v19, %v7363_v33  ;;  %v7373_v19 = vld [vmem:[#allocation86_spill] sm:$0xff]  ;;  %vm3120_vm15 = vcmp.eq.s32.totalorder %v6518_v31, %v4832_v62  ;;  %v7385_v31 = vld [vmem:[#allocation65_spill] sm:$0xff] }
 0x305   : > { %vm3025_vm2 = vcmp.eq.s32.totalorder %v2985_v25, %v4832_v62  ;;  %3942 = vmatmul.msk.f32.gmra.mxu2 %vm2784_vm0, %v7105_v2  ;;  %3964 = vmatmul.msk.f32.gmra.mxu3 %vm2694_vm1, %v7105_v2  ;;  %v2196_v16 = vpop.f32.mrf.mxu2  ;;  %v1954_v25 = vmax.f32 %v1616_v8, %v1927_v47  ;;  %v935_v8 = vadd.f32 %v7370_v49, %v7369_v3  ;;  %v7379_v49 = vld [vmem:[#allocation32_spill] sm:$0xff] }
 0x306   : > { %v2262_v13 = vadd.f32 %v2261_v57, %v2196_v16  ;;  %4021 = vmatmul.msk.f32.gmra.mxu1 %vm3025_vm2, %v7105_v2  ;;  %v6644_v57 = vpop.permute.xlu2 %3089  ;;  %v1279_v46 = vmax.f32 %v932_v52, %v1254_v60  ;;  %v7374_v52 = vld [vmem:[#allocation87_spill] sm:$0xff]  ;;  %vm2788_vm0 = vcmp.eq.s32.totalorder %v6584_v9, %v4832_v62 }
 0x308   : > { %v2264_v35 = vpop.f32.mrf.mxu3  ;;  %v6636_v38 = vmax.f32 %v1953_v58, %v2262_v13  ;;  %v1592_v58 = vadd.f32 %v7368_v61, %v7367_v20  ;;  %v7375_v61 = vld [vmem:[#allocation92_spill] sm:$0xff] }
 0x309   : > { %v6640_v6 = vpop.permute.xlu0 %2763  ;;  %v6671_v43 = vpop.f32.mrf.mxu1 }
 0x30c   : > { %v2988_v54 = vpop.permute.xlu1 %2987  ;;  %3889 = vmatmul.msk.f32.gmra.mxu0 %vm2457_vm3, %v7105_v2  ;;  %vm3121_vm3 = vcmp.eq.s32.totalorder %v6546_v48, %v4832_v62 }
 0x30d   : > { %vm3026_vm6 = vcmp.eq.s32.totalorder %v2988_v54, %v4832_v62  ;;  %3943 = vmatmul.msk.f32.gmra.mxu2 %vm2785_vm5, %v7105_v2  ;;  %3965 = vmatmul.msk.f32.gmra.mxu3 %vm2695_vm4, %v7105_v2  ;;  %v2199_v42 = vpop.f32.mrf.mxu2  ;;  %vm2789_vm4 = vcmp.eq.s32.totalorder %v6613_v63, %v4832_v62  ;;  %v1942_v63 = vadd.f32 %v6435_v50, %v6638_v26 }
 0x30e   : > { %v2265_v16 = vadd.f32 %v2264_v35, %v2199_v42  ;;  %4022 = vmatmul.msk.f32.gmra.mxu1 %vm3026_vm6, %v7105_v2  ;;  %v1617_v35 = vmax.f32 %v1279_v46, %v1592_v58  ;;  %v6679_v44 = vpop.permute.xlu2 %3092  ;;  %v7372_v42 = vld [vmem:[#allocation16_spill] sm:$0xff]  ;;  %v1933_v58 = vadd.f32 %v7375_v61, %v6534_v21  ;;  %vm3122_vm6 = vcmp.eq.s32.totalorder %v6576_v15, %v4832_v62 }
 0x30f   : > { %v1257_v33 = vadd.f32 %v7372_v42, %v7371_v14 }
 0x310   : > { %v2267_v13 = vpop.f32.mrf.mxu3  ;;  %v6663_v40 = vmax.f32 %v1954_v25, %v2265_v16  ;;  %v1955_v54 = vmax.f32 %v1617_v35, %v1930_v11  ;;  %v1595_v25 = vadd.f32 %v7374_v52, %v7373_v19  ;;  %v7377_v35 = vld [vmem:[#allocation29_spill] sm:$0xff] }
 0x311   : > { %v6665_v34 = vpop.permute.xlu0 %2766  ;;  %v6667_v30 = vpop.f32.mrf.mxu0  ;;  %v1280_v20 = vmax.f32 %v935_v8, %v1257_v33  ;;  %v1260_v8 = vadd.f32 %v7379_v49, %v7378_v1  ;;  %v7388_v1 = vld [vmem:[#allocation91_spill] sm:$0xff] }
 0x312   : > { %v6706_v46 = vpop.f32.mrf.mxu1 }
 0x314   : > { %v2991_v47 = vpop.permute.xlu1 %2990  ;;  %4002 = vmatmul.msk.f32.vlgmr.msra.gmra.mxu0 %vm3118_vm7, %v7105_v2  ;;  %vm2790_vm7 = vcmp.eq.s32.totalorder %v6640_v6, %v4832_v62 }
 0x315   : > { %vm3027_vm10 = vcmp.eq.s32.totalorder %v2991_v47, %v4832_v62  ;;  %3944 = vmatmul.msk.f32.gmra.mxu2 %vm2786_vm9, %v7105_v2  ;;  %3966 = vmatmul.msk.f32.gmra.mxu3 %vm2696_vm8, %v7105_v2  ;;  %v2202_v37 = vpop.f32.mrf.mxu2  ;;  %v938_v47 = vadd.f32 %v7377_v35, %v7376_v28  ;;  %vm3123_vm9 = vcmp.eq.s32.totalorder %v6609_v27, %v4832_v62 }
 0x316   : > { %v2268_v29 = vadd.f32 %v2267_v13, %v2202_v37  ;;  %4023 = vmatmul.msk.f32.gmra.mxu1 %vm3027_vm10, %v7105_v2  ;;  %v1618_v13 = vmax.f32 %v1280_v20, %v1595_v25  ;;  %v6714_v12 = vpop.permute.xlu2 %3095  ;;  %v7382_v20 = vld [vmem:[#allocation40_spill] sm:$0xff]  ;;  %vm2791_vm10 = vcmp.eq.s32.totalorder %v6665_v34, %v4832_v62 }
 0x317   : > { %v1281_v25 = vmax.f32 %v938_v47, %v1260_v8  ;;  %v1936_v61 = vadd.f32 %v7382_v20, %v6567_v0  ;;  %v1939_v20 = vadd.f32 %v6393_v7, %v6603_v10 }
 0x318   : > { %v2270_v16 = vpop.f32.mrf.mxu3  ;;  %v6692_v22 = vmax.f32 %v1955_v54, %v2268_v29  ;;  %v1956_v37 = vmax.f32 %v1618_v13, %v1933_v58  ;;  %v7380_v54 = vld [vmem:[#allocation88_spill] sm:$0xff]  ;;  %v7381_v29 = vld [vmem:[#allocation89_spill] sm:$0xff] }
 0x319   : > { %v6694_v23 = vpop.permute.xlu0 %2769  ;;  %v6696_v60 = vpop.f32.mrf.mxu0  ;;  %v1598_v14 = vadd.f32 %v7381_v29, %v7380_v54 }
 0x31a   : > { %v6738_v0 = vpop.f32.mrf.mxu1 }
 0x31c   : > { %v2994_v11 = vpop.permute.xlu1 %2993  ;;  %4003 = vmatmul.msk.f32.gmra.mxu0 %vm3119_vm11, %v7105_v2 }
 0x31d   : > { %vm3028_vm14 = vcmp.eq.s32.totalorder %v2994_v11, %v4832_v62  ;;  %3945 = vmatmul.msk.f32.gmra.mxu2 %vm2787_vm13, %v7105_v2  ;;  %3967 = vmatmul.msk.f32.gmra.mxu3 %vm2697_vm12, %v7105_v2  ;;  %v2205_v21 = vpop.f32.mrf.mxu2  ;;  %v7383_v11 = vld [vmem:[#allocation28_spill] sm:$0xff]  ;;  %vm3124_vm12 = vcmp.eq.s32.totalorder %v6644_v57, %v4832_v62  ;;  %vm2792_vm13 = vcmp.eq.s32.totalorder %v6694_v23, %v4832_v62 }
 0x31e   : > { %v2271_v3 = vadd.f32 %v2270_v16, %v2205_v21  ;;  %4024 = vmatmul.msk.f32.gmra.mxu1 %vm3028_vm14, %v7105_v2  ;;  %v1619_v16 = vmax.f32 %v1281_v25, %v1598_v14  ;;  %v7384_v21 = vld [vmem:[#allocation62_spill] sm:$0xff]  ;;  %v6745_v8 = vpop.permute.xlu2 %3098 }
 0x31f   : > { %v941_v28 = vadd.f32 %v7384_v21, %v7383_v11 }
 0x320   : > { %v2273_v42 = vpop.f32.mrf.mxu3  ;;  %v6721_v33 = vmax.f32 %v1956_v37, %v2271_v3  ;;  %v1957_v35 = vmax.f32 %v1619_v16, %v1936_v61  ;;  %v7386_v37 = vld [vmem:[#allocation10_spill] sm:$0xff] }
 0x321   : > { %v6723_v19 = vpop.permute.xlu0 %2772  ;;  %v6725_v52 = vpop.f32.mrf.mxu0  ;;  %v1263_v9 = vadd.f32 %v7386_v37, %v7385_v31  ;;  %v7387_v3 = vld [vmem:[#allocation90_spill] sm:$0xff]  ;;  %v7389_v31 = vld [vmem:[#allocation93_spill] sm:$0xff] }
 0x322   : > { %v1601_v49 = vadd.f32 %v7388_v1, %v7387_v3  ;;  %v2599_v48 = vpop.f32.mrf.mxu1  ;;  %v1959_v37 = vmax.f32 %v7389_v31, %v1942_v63 }
 0x323   : > { %v1282_v25 = vmax.f32 %v941_v28, %v1263_v9 }
 0x324   : > { %v2997_v58 = vpop.permute.xlu1 %2996  ;;  %4004 = vmatmul.msk.f32.gmra.mxu0 %vm3120_vm15, %v7105_v2  ;;  %vm3125_vm15 = vcmp.eq.s32.totalorder %v6679_v44, %v4832_v62 }
 0x325   : > { %vm3029_vm1 = vcmp.eq.s32.totalorder %v2997_v58, %v4832_v62  ;;  %3946 = vmatmul.msk.f32.gmra.mxu2 %vm2788_vm0, %v7105_v2  ;;  %v2208_v13 = vpop.f32.mrf.mxu2  ;;  %v1620_v61 = vmax.f32 %v1282_v25, %v1601_v49  ;;  %vm2793_vm0 = vcmp.eq.s32.totalorder %v6723_v19, %v4832_v62 }
 0x326   : > { %v2274_v47 = vadd.f32 %v2273_v42, %v2208_v13  ;;  %4025 = vmatmul.msk.f32.gmra.mxu1 %vm3029_vm1, %v7105_v2  ;;  %v6771_v21 = vpop.permute.xlu2 %3101 }
 0x327   : > { %v1958_v10 = vmax.f32 %v1620_v61, %v1939_v20 }
 0x328   : > { %v6747_v54 = vmax.f32 %v1957_v35, %v2274_v47  ;;  %v2276_v42 = vpop.f32.mrf.mxu3 }
 0x329   : > { %v2680_v29 = vpop.permute.xlu0 %2679  ;;  %v6749_v14 = vpop.f32.mrf.mxu0 }
 0x32a   : > { %vm2698_vm2 = vcmp.eq.s32.totalorder %v2680_v29, %v4832_v62  ;;  %v2602_v9 = vpop.f32.mrf.mxu1 }
 0x32b   : > { %3968 = vmatmul.msk.f32.gmra.mxu3 %vm2698_vm2, %v7105_v2  ;;  %vm3126_vm2 = vcmp.eq.s32.totalorder %v6714_v12, %v4832_v62 }
 0x32c   : > { %v3000_v16 = vpop.permute.xlu1 %2999  ;;  %4005 = vmatmul.msk.f32.gmra.mxu0 %vm3121_vm3, %v7105_v2 }
 0x32d   : > { %vm3030_vm5 = vcmp.eq.s32.totalorder %v3000_v16, %v4832_v62  ;;  %3947 = vmatmul.msk.f32.gmra.mxu2 %vm2789_vm4, %v7105_v2  ;;  %v2211_v7 = vpop.f32.mrf.mxu2 }
 0x32e   : > { %v2277_v58 = vadd.f32 %v2276_v42, %v2211_v7  ;;  %4026 = vmatmul.msk.f32.gmra.mxu1 %vm3030_vm5, %v7105_v2  ;;  %v3105_v3 = vpop.permute.xlu2 %3104  ;;  %vm3127_vm5 = vcmp.eq.s32.totalorder %v6745_v8, %v4832_v62 }
 0x330   : > { %v6763_v13 = vmax.f32 %v1958_v10, %v2277_v58  ;;  %v2279_v35 = vpop.f32.mrf.mxu3 }
 0x331   : > { %v6765_v11 = vpop.f32.mrf.mxu0  ;;  %v3111_v58 = vpop.permute.xlu0 %3110 }
 0x332   : > { %v2605_v27 = vpop.f32.mrf.mxu1 }
 0x334   : > { %v3003_v28 = vpop.permute.xlu1 %3002  ;;  %4006 = vmatmul.msk.f32.gmra.mxu0 %vm3122_vm6, %v7105_v2 }
 0x335   : > { %vm3031_vm8 = vcmp.eq.s32.totalorder %v3003_v28, %v4832_v62  ;;  %3948 = vmatmul.msk.f32.gmra.mxu2 %vm2790_vm7, %v7105_v2  ;;  %v2214_v47 = vpop.f32.mrf.mxu2 }
 0x336   : > { %v2280_v50 = vadd.f32 %v2279_v35, %v2214_v47  ;;  %4027 = vmatmul.msk.f32.gmra.mxu1 %vm3031_vm8, %v7105_v2  ;;  %v3108_v49 = vpop.permute.xlu2 %3107  ;;  %vm3128_vm8 = vcmp.eq.s32.totalorder %v6771_v21, %v4832_v62 }
 0x338   : > { %v6780_v15 = vmax.f32 %v1959_v37, %v2280_v50 }
 0x339   : > { %v6782_v26 = vpop.f32.mrf.mxu0  ;;  %v3021_v37 = vpop.permute.xlu0 %3020 }
 0x33a   : > { %v2608_v23 = vpop.f32.mrf.mxu1 }
 0x33c   : > { %v3006_v6 = vpop.permute.xlu1 %3005  ;;  %4007 = vmatmul.msk.f32.gmra.mxu0 %vm3123_vm9, %v7105_v2 }
 0x33d   : > { %vm3032_vm11 = vcmp.eq.s32.totalorder %v3006_v6, %v4832_v62  ;;  %3949 = vmatmul.msk.f32.gmra.mxu2 %vm2791_vm10, %v7105_v2  ;;  %vm3129_vm10 = vcmp.eq.s32.totalorder %v3105_v3, %v4832_v62 }
 0x33e   : > { %4028 = vmatmul.msk.f32.gmra.mxu1 %vm3032_vm11, %v7105_v2  ;;  %v3015_v25 = vpop.permute.xlu2 %3014  ;;  %vm3037_vm11 = vcmp.eq.s32.totalorder %v3021_v37, %v4832_v62 }
 0x33f   : > { %vm3035_vm3 = vcmp.eq.s32.totalorder %v3015_v25, %v4832_v62 }
 0x341   : > { %v6792_v1 = vpop.f32.mrf.mxu0 }
 0x342   : > { %v2611_v61 = vpop.f32.mrf.mxu1 }
 0x344   : > { %v3009_v34 = vpop.permute.xlu1 %3008  ;;  %4008 = vmatmul.msk.f32.gmra.mxu0 %vm3124_vm12, %v7105_v2  ;;  %vm3130_vm12 = vcmp.eq.s32.totalorder %v3108_v49, %v4832_v62 }
 0x345   : > { %vm3033_vm14 = vcmp.eq.s32.totalorder %v3009_v34, %v4832_v62  ;;  %3950 = vmatmul.msk.f32.gmra.mxu2 %vm2792_vm13, %v7105_v2  ;;  %vm3131_vm13 = vcmp.eq.s32.totalorder %v3111_v58, %v4832_v62 }
 0x346   : > { %4029 = vmatmul.msk.f32.gmra.mxu1 %vm3033_vm14, %v7105_v2 }
 0x348   : > { %v2779_v16 = vpop.permute.xlu2 %2778 }
 0x349   : > { %v6802_v29 = vpop.f32.mrf.mxu0  ;;  %vm2795_vm6 = vcmp.eq.s32.totalorder %v2779_v16, %v4832_v62  ;;  %v2573_v16 = vadd.f32 %v6463_v55, %v6667_v30  ;;  %v2576_v55 = vadd.f32 %v6497_v51, %v6696_v60 }
 0x34a   : > { %v2614_v8 = vpop.f32.mrf.mxu1 }
 0x34b   : > { %v2620_v3 = vmax.f32 %v6380_v5, %v2573_v16  ;;  %v2621_v5 = vmax.f32 %v6412_v24, %v2576_v55  ;;  %v2579_v16 = vadd.f32 %v6530_v32, %v6725_v52 }
 0x34c   : > { %v3012_v57 = vpop.permute.xlu1 %3011  ;;  %4009 = vmatmul.msk.f32.gmra.mxu0 %vm3125_vm15, %v7105_v2 }
 0x34d   : > { %vm3034_vm1 = vcmp.eq.s32.totalorder %v3012_v57, %v4832_v62  ;;  %3951 = vmatmul.msk.f32.gmra.mxu2 %vm2793_vm0, %v7105_v2  ;;  %v2622_v60 = vmax.f32 %v6441_v39, %v2579_v16 }
 0x34e   : > { %4030 = vmatmul.msk.f32.gmra.mxu1 %vm3034_vm1, %v7105_v2 }
 0x351   : > { %v2531_v20 = vpop.f32.mrf.mxu0 }
 0x352   : > { %v6813_v42 = vadd.f32 %v6738_v0, %v2531_v20  ;;  %v2617_v50 = vpop.f32.mrf.mxu1 }
 0x354   : > { %4010 = vmatmul.msk.f32.gmra.mxu0 %vm3126_vm2, %v7105_v2 }
 0x355   : > { %v2776_v19 = vpop.permute.xlu1 %2775 }
 0x356   : > { %vm2794_vm4 = vcmp.eq.s32.totalorder %v2776_v19, %v4832_v62  ;;  %4031 = vmatmul.msk.f32.gmra.mxu1 %vm3035_vm3, %v7105_v2 }
 0x357   : > { %3952 = vmatmul.msk.f32.gmra.mxu2 %vm2794_vm4, %v7105_v2 }
 0x359   : > { %v2534_v0 = vpop.f32.mrf.mxu0 }
 0x35a   : > { %v6824_v7 = vadd.f32 %v2599_v48, %v2534_v0 }
 0x35c   : > { %4011 = vmatmul.msk.f32.gmra.mxu0 %vm3127_vm5, %v7105_v2 }
 0x35d   : > { %v2683_v10 = vpop.permute.xlu1 %2682 }
 0x35e   : > { %vm2699_vm7 = vcmp.eq.s32.totalorder %v2683_v10, %v4832_v62 }
 0x35f   : > { %3953 = vmatmul.msk.f32.gmra.mxu2 %vm2795_vm6, %v7105_v2  ;;  %3969 = vmatmul.msk.f32.gmra.mxu3 %vm2699_vm7, %v7105_v2 }
 0x361   : > { %v2537_v48 = vpop.f32.mrf.mxu0 }
 0x362   : > { %v6835_v63 = vadd.f32 %v2602_v9, %v2537_v48  ;;  %v2910_v9 = vpop.f32.mrf.mxu3 }
 0x364   : > { %4012 = vmatmul.msk.f32.gmra.mxu0 %vm3128_vm8, %v7105_v2 }
 0x366   : > { %v3018_v35 = vpop.permute.xlu1 %3017 }
 0x367   : > { %vm3036_vm9 = vcmp.eq.s32.totalorder %v3018_v35, %v4832_v62 }
 0x368   : > { %4032 = vmatmul.msk.f32.gmra.mxu1 %vm3036_vm9, %v7105_v2  ;;  %v2845_v6 = vpop.f32.mrf.mxu2 }
 0x369   : > { %v2540_v47 = vpop.f32.mrf.mxu0  ;;  %v2911_v58 = vadd.f32 %v2910_v9, %v2845_v6 }
 0x36a   : > { %v6844_v31 = vadd.f32 %v2605_v27, %v2540_v47  ;;  %v2913_v25 = vpop.f32.mrf.mxu3 }
 0x36b   : > { %v3248_v27 = vpop.f32.mrf.mxu1  ;;  %v2958_v28 = vmax.f32 %v2620_v3, %v2911_v58 }
 0x36c   : > { %4013 = vmatmul.msk.f32.gmra.mxu0 %vm3129_vm10, %v7105_v2 }
 0x370   : > { %4033 = vmatmul.msk.f32.gmra.mxu1 %vm3037_vm11, %v7105_v2  ;;  %v2848_v20 = vpop.f32.mrf.mxu2 }
 0x371   : > { %v2543_v34 = vpop.f32.mrf.mxu0 }
 0x372   : > { %v6852_v57 = vadd.f32 %v2608_v23, %v2543_v34  ;;  %v3114_v23 = vpop.permute.xlu2 %3113  ;;  %v2916_v48 = vpop.f32.mrf.mxu3 }
 0x373   : > { %v3251_v49 = vpop.f32.mrf.mxu1  ;;  %vm3132_vm14 = vcmp.eq.s32.totalorder %v3114_v23, %v4832_v62 }
 0x374   : > { %4014 = vmatmul.msk.f32.gmra.mxu0 %vm3130_vm12, %v7105_v2 }
 0x378   : > { %v2851_v47 = vpop.f32.mrf.mxu2 }
 0x379   : > { %v2546_v19 = vpop.f32.mrf.mxu0  ;;  %v2917_v44 = vadd.f32 %v2916_v48, %v2851_v47 }
 0x37a   : > { %v6859_v0 = vadd.f32 %v2611_v61, %v2546_v19  ;;  %v3117_v61 = vpop.permute.xlu1 %3116  ;;  %v2919_v23 = vpop.f32.mrf.mxu3 }
 0x37b   : > { %v3254_v37 = vpop.f32.mrf.mxu1  ;;  %vm3133_vm15 = vcmp.eq.s32.totalorder %v3117_v61, %v4832_v62  ;;  %v6882_v62 = vld [vmem:[%s6990_s5] ss:$0 sm:$0xff]  ;;  %v2960_v24 = vmax.f32 %v2622_v60, %v2917_v44  ;;  %v2585_v44 = vadd.f32 %v6600_v36, %v6765_v11 }
 0x37c   : > { %4015 = vmatmul.msk.f32.gmra.mxu0 %vm3131_vm13, %v7105_v2 }
 0x381   : > { %v2549_v10 = vpop.f32.mrf.mxu0 }
 0x382   : > { %v6865_v35 = vadd.f32 %v2614_v8, %v2549_v10  ;;  %v2854_v10 = vpop.f32.mrf.mxu2  ;;  %v2922_v61 = vpop.f32.mrf.mxu3 }
 0x384   : > { %4016 = vmatmul.msk.f32.gmra.mxu0 %vm3132_vm14, %v7105_v2 }
 0x389   : > { %v2552_v34 = vpop.f32.mrf.mxu0 }
 0x38a   : > { %v6870_v19 = vadd.f32 %v2617_v50, %v2552_v34  ;;  %v3257_v50 = vpop.f32.mrf.mxu1  ;;  %v2914_v34 = vadd.f32 %v2913_v25, %v2848_v20  ;;  %v2857_v9 = vpop.f32.mrf.mxu2 }
 0x38c   : > { %4017 = vmatmul.msk.f32.gmra.mxu0 %vm3133_vm15, %v7105_v2 }
 0x391   : > { %v3183_v21 = vpop.f32.mrf.mxu0 }
 0x392   : > { %v3249_v12 = vadd.f32 %v3248_v27, %v3183_v21  ;;  %v2959_v21 = vmax.f32 %v2621_v5, %v2914_v34  ;;  %v3260_v8 = vpop.f32.mrf.mxu1  ;;  %v2860_v25 = vpop.f32.mrf.mxu2  ;;  %v2920_v34 = vadd.f32 %v2919_v23, %v2854_v10 }
 0x394   : > { %v3296_v30 = vmax.f32 %v2958_v28, %v3249_v12  ;;  %v2925_v12 = vpop.f32.mrf.mxu3 }
 0x396   : > { %v3316_v2 = vadd.f32 %v6882_v62, %v3296_v30 }
 0x398   : > { %v3332_v6 = vmax.f32 %v3316_v2, 0.0 }
 0x399   : > { %v3186_v3 = vpop.f32.mrf.mxu0 }
 0x39a   : > { %v3252_v27 = vadd.f32 %v3251_v49, %v3186_v3  ;;  %3348 = vxpose.xlu2.b32.start [1/16] %v3332_v6, 128  ;;  %v2582_v49 = vadd.f32 %v6563_v53, %v6749_v14  ;;  %v3263_v52 = vpop.f32.mrf.mxu1  ;;  %v2863_v3 = vpop.f32.mrf.mxu2  ;;  %v7390_v14 = vld [vmem:[#allocation61_spill] sm:$0xff] }
 0x39b   : > { %v2624_v23 = vmax.f32 %v7390_v14, %v2585_v44 }
 0x39c   : > { %v3297_v58 = vmax.f32 %v2959_v21, %v3252_v27  ;;  %v2623_v48 = vmax.f32 %v6471_v59, %v2582_v49  ;;  %v2928_v39 = vpop.f32.mrf.mxu3  ;;  %v2923_v21 = vadd.f32 %v2922_v61, %v2857_v9 }
 0x39e   : > { %v3317_v51 = vadd.f32 %v6882_v62, %v3297_v58  ;;  %v2961_v5 = vmax.f32 %v2623_v48, %v2920_v34  ;;  %v2962_v59 = vmax.f32 %v2624_v23, %v2923_v21  ;;  %v7394_v48 = vld [vmem:[#allocation42_spill] sm:$0xff] }
 0x39f   : > { %v7398_v21 = vld [vmem:[#allocation78_spill] sm:$0xff] }
 0x3a0   : > { %v3333_v28 = vmax.f32 %v3317_v51, 0.0 }
 0x3a1   : > { %v3189_v20 = vpop.f32.mrf.mxu0 }
 0x3a2   : > { %v3255_v55 = vadd.f32 %v3254_v37, %v3189_v20  ;;  %3349 = vxpose.xlu2.b32.cont [2/16] %v3333_v28, 128  ;;  %v3266_v27 = vpop.f32.mrf.mxu1  ;;  %v2866_v28 = vpop.f32.mrf.mxu2  ;;  %v2926_v20 = vadd.f32 %v2925_v12, %v2860_v25  ;;  %v7395_v25 = vld [vmem:[#allocation72_spill] sm:$0xff] }
 0x3a4   : > { %v3298_v30 = vmax.f32 %v2960_v24, %v3255_v55  ;;  %v2931_v51 = vpop.f32.mrf.mxu3 }
 0x3a6   : > { %v3318_v32 = vadd.f32 %v6882_v62, %v3298_v30  ;;  %v7391_v30 = vld [vmem:[#allocation22_spill] sm:$0xff] }
 0x3a8   : > { %v3334_v47 = vmax.f32 %v3318_v32, 0.0  ;;  %v7393_v32 = vld [vmem:[#allocation7_spill] sm:$0xff] }
 0x3a9   : > { %v3192_v2 = vpop.f32.mrf.mxu0  ;;  %v1242_v12 = vadd.f32 %v7394_v48, %v7393_v32 }
 0x3aa   : > { %v3258_v6 = vadd.f32 %v3257_v50, %v3192_v2  ;;  %3350 = vxpose.xlu2.b32.cont [3/16] %v3334_v47, 128  ;;  %v2588_v50 = vadd.f32 %v6634_v18, %v6782_v26  ;;  %v3269_v49 = vpop.f32.mrf.mxu1  ;;  %v2591_v18 = vadd.f32 %v6671_v43, %v6792_v1  ;;  %v7396_v47 = vld [vmem:[#allocation73_spill] sm:$0xff] }
 0x3ab   : > { %v1580_v2 = vadd.f32 %v7396_v47, %v7395_v25 }
 0x3ac   : > { %v3299_v37 = vmax.f32 %v2961_v5, %v3258_v6  ;;  %v2625_v11 = vmax.f32 %v6524_v17, %v2588_v50  ;;  %v2934_v17 = vpop.f32.mrf.mxu3  ;;  %v2929_v5 = vadd.f32 %v2928_v39, %v2863_v3  ;;  %v2626_v14 = vmax.f32 %v6552_v4, %v2591_v18 }
 0x3ad   : > { %v2594_v39 = vadd.f32 %v6706_v46, %v6802_v29 }
 0x3ae   : > { %v3319_v53 = vadd.f32 %v6882_v62, %v3299_v37  ;;  %v2963_v24 = vmax.f32 %v2625_v11, %v2926_v20  ;;  %v7397_v37 = vld [vmem:[#allocation12_spill] sm:$0xff]  ;;  %v2932_v20 = vadd.f32 %v2931_v51, %v2866_v28  ;;  %v7399_v51 = vmax.f32 %v6611_v45, %v6813_v42 }
 0x3b0   : > { %v3335_v10 = vmax.f32 %v3319_v53, 0.0  ;;  %v1918_v53 = vadd.f32 %v7398_v21, %v7397_v37 }
 0x3b1   : > { %v3195_v16 = vpop.f32.mrf.mxu0 }
 0x3b2   : > { %v3261_v58 = vadd.f32 %v3260_v8, %v3195_v16  ;;  %3351 = vxpose.xlu2.b32.cont [4/16] %v3335_v10, 128  ;;  %v7392_v8 = vld [vmem:[#allocation38_spill] sm:$0xff]  ;;  %v2256_v10 = vadd.f32 %v6550_v56, %v6572_v41  ;;  %v2964_v16 = vmax.f32 %v2626_v14, %v2929_v5  ;;  %v3272_v50 = vpop.f32.mrf.mxu1 }
 0x3b3   : > { %v920_v34 = vadd.f32 %v7392_v8, %v7391_v30 }
 0x3b4   : > { %v3300_v60 = vmax.f32 %v2962_v59, %v3261_v58  ;;  %v2937_v11 = vpop.f32.mrf.mxu3 }
 0x3b5   : > { %v1275_v44 = vmax.f32 %v920_v34, %v1242_v12 }
 0x3b6   : > { %v3320_v36 = vadd.f32 %v6882_v62, %v3300_v60 }
 0x3b7   : > { %v1613_v1 = vmax.f32 %v1275_v44, %v1580_v2  ;;  %v7400_v2 = vmax.f32 %v6636_v38, %v6824_v7 }
 0x3b8   : > { %v3336_v61 = vmax.f32 %v3320_v36, 0.0 }
 0x3b9   : > { %v3198_v9 = vpop.f32.mrf.mxu0  ;;  %v1951_v58 = vmax.f32 %v1613_v1, %v1918_v53  ;;  %v7401_v53 = vmax.f32 %v6663_v40, %v6835_v63 }
 0x3ba   : > { %v3264_v55 = vadd.f32 %v3263_v52, %v3198_v9  ;;  %3352 = vxpose.xlu2.b32.cont [5/16] %v3336_v61, 128  ;;  %v2869_v52 = vpop.f32.mrf.mxu2  ;;  %v3275_v8 = vpop.f32.mrf.mxu1 }
 0x3bb   : > { %v2289_v60 = vmax.f32 %v1951_v58, %v2256_v10 }
 0x3bc   : > { %v3301_v26 = vmax.f32 %v2963_v24, %v3264_v55  ;;  %v2940_v34 = vpop.f32.mrf.mxu3 }
 0x3bd   : > { %v2627_v4 = vmax.f32 %v2289_v60, %v2594_v39  ;;  %v7402_v39 = vmax.f32 %v6692_v22, %v6844_v31 }
 0x3be   : > { %v3321_v6 = vadd.f32 %v6882_v62, %v3301_v26 }
 0x3bf   : > { %v2965_v55 = vmax.f32 %v2627_v4, %v2932_v20 }
 0x3c0   : > { %v3337_v23 = vmax.f32 %v3321_v6, 0.0 }
 0x3c1   : > { %v3201_v43 = vpop.f32.mrf.mxu0 }
 0x3c2   : > { %v3267_v59 = vadd.f32 %v3266_v27, %v3201_v43  ;;  %3353 = vxpose.xlu2.b32.cont [6/16] %v3337_v23, 128  ;;  %v2872_v9 = vpop.f32.mrf.mxu2  ;;  %v2935_v27 = vadd.f32 %v2934_v17, %v2869_v52  ;;  %v3278_v25 = vpop.f32.mrf.mxu1 }
 0x3c3   : > { %v2938_v48 = vadd.f32 %v2937_v11, %v2872_v9  ;;  %v7403_v9 = vmax.f32 %v6721_v33, %v6852_v57 }
 0x3c4   : > { %v3302_v3 = vmax.f32 %v2964_v16, %v3267_v59  ;;  %v2966_v28 = vmax.f32 %v7399_v51, %v2935_v27  ;;  %v2943_v6 = vpop.f32.mrf.mxu3 }
 0x3c5   : > { %v2967_v17 = vmax.f32 %v7400_v2, %v2938_v48  ;;  %v7405_v48 = vmax.f32 %v6763_v13, %v6865_v35 }
 0x3c6   : > { %v3322_v36 = vadd.f32 %v6882_v62, %v3302_v3 }
 0x3c8   : > { %v3338_v61 = vmax.f32 %v3322_v36, 0.0 }
 0x3c9   : > { %v3204_v24 = vpop.f32.mrf.mxu0 }
 0x3ca   : > { %v3270_v56 = vadd.f32 %v3269_v49, %v3204_v24  ;;  %3354 = vxpose.xlu2.b32.cont [7/16] %v3338_v61, 128  ;;  %v2875_v26 = vpop.f32.mrf.mxu2  ;;  %v3281_v43 = vpop.f32.mrf.mxu1 }
 0x3cb   : > { %v2941_v42 = vadd.f32 %v2940_v34, %v2875_v26 }
 0x3cc   : > { %v3303_v41 = vmax.f32 %v2965_v55, %v3270_v56  ;;  %v2946_v38 = vpop.f32.mrf.mxu3 }
 0x3cd   : > { %v2968_v14 = vmax.f32 %v7401_v53, %v2941_v42 }
 0x3ce   : > { %v3323_v30 = vadd.f32 %v6882_v62, %v3303_v41 }
 0x3d0   : > { %v3339_v46 = vmax.f32 %v3323_v30, 0.0 }
 0x3d1   : > { %v3207_v29 = vpop.f32.mrf.mxu0 }
 0x3d2   : > { %v3273_v18 = vadd.f32 %v3272_v50, %v3207_v29  ;;  %3355 = vxpose.xlu2.b32.cont [8/16] %v3339_v46, 128  ;;  %v2878_v45 = vpop.f32.mrf.mxu2  ;;  %v3284_v40 = vpop.f32.mrf.mxu1  ;;  %v7404_v46 = vmax.f32 %v6747_v54, %v6859_v0 }
 0x3d3   : > { %v2944_v7 = vadd.f32 %v2943_v6, %v2878_v45 }
 0x3d4   : > { %v3304_v32 = vmax.f32 %v2966_v28, %v3273_v18  ;;  %v2949_v36 = vpop.f32.mrf.mxu3 }
 0x3d5   : > { %v2969_v3 = vmax.f32 %v7402_v39, %v2944_v7 }
 0x3d6   : > { %v3324_v49 = vadd.f32 %v6882_v62, %v3304_v32 }
 0x3d8   : > { %v3340_v12 = vmax.f32 %v3324_v49, 0.0 }
 0x3d9   : > { %v3210_v47 = vpop.f32.mrf.mxu0 }
 0x3da   : > { %v3276_v5 = vadd.f32 %v3275_v8, %v3210_v47  ;;  %3356 = vxpose.xlu2.b32.cont [9/16] %v3340_v12, 128  ;;  %v2881_v16 = vpop.f32.mrf.mxu2  ;;  %v3287_v41 = vpop.f32.mrf.mxu1 }
 0x3db   : > { %v2947_v63 = vadd.f32 %v2946_v38, %v2881_v16 }
 0x3dc   : > { %v3305_v52 = vmax.f32 %v2967_v17, %v3276_v5  ;;  %v2952_v51 = vpop.f32.mrf.mxu3 }
 0x3dd   : > { %v2970_v24 = vmax.f32 %v7403_v9, %v2947_v63 }
 0x3de   : > { %v3325_v44 = vadd.f32 %v6882_v62, %v3305_v52  ;;  %v7406_v52 = vmax.f32 %v6780_v15, %v6870_v19 }
 0x3e0   : > { %v3341_v37 = vmax.f32 %v3325_v44, 0.0 }
 0x3e1   : > { %v3213_v21 = vpop.f32.mrf.mxu0 }
 0x3e2   : > { %v3279_v23 = vadd.f32 %v3278_v25, %v3213_v21  ;;  %3357 = vxpose.xlu2.b32.cont [10/16] %v3341_v37, 128  ;;  %v2884_v11 = vpop.f32.mrf.mxu2 }
 0x3e3   : > { %v2950_v22 = vadd.f32 %v2949_v36, %v2884_v11 }
 0x3e4   : > { %v3306_v1 = vmax.f32 %v2968_v14, %v3279_v23  ;;  %v2955_v54 = vpop.f32.mrf.mxu3 }
 0x3e5   : > { %v2971_v29 = vmax.f32 %v7404_v46, %v2950_v22  ;;  %v3290_v18 = vpop.f32.mrf.mxu1 }
 0x3e6   : > { %v3326_v10 = vadd.f32 %v6882_v62, %v3306_v1 }
 0x3e8   : > { %v3342_v59 = vmax.f32 %v3326_v10, 0.0 }
 0x3e9   : > { %v3216_v58 = vpop.f32.mrf.mxu0 }
 0x3ea   : > { %v3282_v50 = vadd.f32 %v3281_v43, %v3216_v58  ;;  %3358 = vxpose.xlu2.b32.cont [11/16] %v3342_v59, 128  ;;  %v2887_v30 = vpop.f32.mrf.mxu2 }
 0x3eb   : > { %v2953_v33 = vadd.f32 %v2952_v51, %v2887_v30 }
 0x3ec   : > { %v3307_v60 = vmax.f32 %v2969_v3, %v3282_v50 }
 0x3ed   : > { %v2972_v49 = vmax.f32 %v7405_v48, %v2953_v33  ;;  %v3293_v5 = vpop.f32.mrf.mxu1 }
 0x3ee   : > { %v3327_v20 = vadd.f32 %v6882_v62, %v3307_v60 }
 0x3f0   : > { %v3343_v4 = vmax.f32 %v3327_v20, 0.0 }
 0x3f1   : > { %v3219_v61 = vpop.f32.mrf.mxu0 }
 0x3f2   : > { %v3285_v55 = vadd.f32 %v3284_v40, %v3219_v61  ;;  %3359 = vxpose.xlu2.b32.cont [12/16] %v3343_v4, 128  ;;  %v2890_v25 = vpop.f32.mrf.mxu2 }
 0x3f3   : > { %v2956_v47 = vadd.f32 %v2955_v54, %v2890_v25 }
 0x3f4   : > { %v3308_v56 = vmax.f32 %v2970_v24, %v3285_v55 }
 0x3f5   : > { %v2973_v45 = vmax.f32 %v7406_v52, %v2956_v47 }
 0x3f6   : > { %v3328_v31 = vadd.f32 %v6882_v62, %v3308_v56 }
 0x3f8   : > { %v3344_v27 = vmax.f32 %v3328_v31, 0.0 }
 0x3f9   : > { %v3222_v8 = vpop.f32.mrf.mxu0 }
 0x3fa   : > { %v3288_v34 = vadd.f32 %v3287_v41, %v3222_v8  ;;  %3360 = vxpose.xlu2.b32.cont [13/16] %v3344_v27, 128 }
 0x3fc   : > { %v3309_v28 = vmax.f32 %v2971_v29, %v3288_v34 }
 0x3fe   : > { %v3329_v57 = vadd.f32 %v6882_v62, %v3309_v28 }
 0x400   : > { %v3345_v26 = vmax.f32 %v3329_v57, 0.0 }
 0x401   : > { %v3225_v32 = vpop.f32.mrf.mxu0 }
 0x402   : > { %v3291_v12 = vadd.f32 %v3290_v18, %v3225_v32  ;;  %3361 = vxpose.xlu2.b32.cont [14/16] %v3345_v26, 128 }
 0x404   : > { %v3310_v0 = vmax.f32 %v2972_v49, %v3291_v12 }
 0x406   : > { %v3330_v2 = vadd.f32 %v6882_v62, %v3310_v0 }
 0x408   : > { %v3346_v17 = vmax.f32 %v3330_v2, 0.0 }
 0x409   : > { %v3228_v6 = vpop.f32.mrf.mxu0 }
 0x40a   : > { %v3294_v42 = vadd.f32 %v3293_v5, %v3228_v6  ;;  %3362 = vxpose.xlu2.b32.cont [15/16] %v3346_v17, 128 }
 0x40c   : > { %v3311_v13 = vmax.f32 %v2973_v45, %v3294_v42 }
 0x40e   : > { %v3331_v35 = vadd.f32 %v6882_v62, %v3311_v13 }
 0x410   : > { %v3347_v44 = vmax.f32 %v3331_v35, 0.0 }
 0x412   : > { %3363 = vxpose.xlu2.b32.end [16/16] %v3347_v44, 128 }
 0x433   : > { %v3364_v15 = vpop.trf.xlu2 }
 0x434   : > { %3380 = vst [vmem:[%s6958_s25] sm:$0xff] %v3364_v15 }
 0x43b   : > { %v3365_v19 = vpop.trf.xlu2 }
 0x43c   : > { %3381 = vst [vmem:[%s6958_s25 + $0x8] sm:$0xff] %v3365_v19 }
 0x443   : > { %v3366_v62 = vpop.trf.xlu2 }
 0x444   : > { %3382 = vst [vmem:[%s6958_s25 + $0x10] sm:$0xff] %v3366_v62 }
 0x44b   : > { %v3367_v37 = vpop.trf.xlu2 }
 0x44c   : > { %3383 = vst [vmem:[%s6958_s25 + $0x18] sm:$0xff] %v3367_v37 }
 0x453   : > { %v3368_v21 = vpop.trf.xlu2 }
 0x454   : > { %3384 = vst [vmem:[%s6958_s25 + $0x20] sm:$0xff] %v3368_v21 }
 0x45b   : > { %v3369_v53 = vpop.trf.xlu2 }
 0x45c   : > { %3385 = vst [vmem:[%s6958_s25 + $0x28] sm:$0xff] %v3369_v53 }
 0x463   : > { %v3370_v14 = vpop.trf.xlu2 }
 0x464   : > { %3386 = vst [vmem:[%s6958_s25 + $0x30] sm:$0xff] %v3370_v14 }
 0x46b   : > { %v3371_v23 = vpop.trf.xlu2 }
 0x46c   : > { %3387 = vst [vmem:[%s6958_s25 + $0x38] sm:$0xff] %v3371_v23 }
 0x473   : > { %v3372_v43 = vpop.trf.xlu2 }
 0x474   : > { %3388 = vst [vmem:[%s6958_s25 + $0x40] sm:$0xff] %v3372_v43 }
 0x47b   : > { %v3373_v1 = vpop.trf.xlu2 }
 0x47c   : > { %3389 = vst [vmem:[%s6958_s25 + $0x48] sm:$0xff] %v3373_v1 }
 0x483   : > { %v3374_v38 = vpop.trf.xlu2 }
 0x484   : > { %3390 = vst [vmem:[%s6958_s25 + $0x50] sm:$0xff] %v3374_v38 }
 0x48b   : > { %v3375_v7 = vpop.trf.xlu2 }
 0x48c   : > { %3391 = vst [vmem:[%s6958_s25 + $0x58] sm:$0xff] %v3375_v7 }
 0x493   : > { %v3376_v10 = vpop.trf.xlu2 }
 0x494   : > { %3392 = vst [vmem:[%s6958_s25 + $0x60] sm:$0xff] %v3376_v10 }
 0x49b   : > { %v3377_v16 = vpop.trf.xlu2 }
 0x49c   : > { %3393 = vst [vmem:[%s6958_s25 + $0x68] sm:$0xff] %v3377_v16 }
 0x4a3   : > { %v3378_v59 = vpop.trf.xlu2 }
 0x4a4   : > { %3394 = vst [vmem:[%s6958_s25 + $0x70] sm:$0xff] %v3378_v59 }
 0x4ab   : > { %v3379_v58 = vpop.trf.xlu2 }
 0x4ac   : > { %3395 = vst [vmem:[%s6958_s25 + $0x78] sm:$0xff] %v3379_v58 }
 0x4ad PF: > { %s16_s23 = sadd.s32 1, %s4219_s23   ;;  %s7407_s21 = smov %s4215_s22 }
 0x4ae   : > { %p13_p5 = scmp.ge.s32.totalorder %s16_s23, 4   ;;  %s7408_s22 = smov %s7410_s24 }
 0x4b0   :  { %15 = sbr.rel (!%p13_p5) target bundleno = 2 (0x2), region = 84 }

</bundles_post_ra>
